<compile_context>
chip_gen: v6e
topology: v6e:2x2x1
jax: 0.10.0
libtpu: 0.0.40
codegen_flags: <defaults>
</compile_context>

<pallas_src>
import functools

import jax
import jax.numpy as jnp
import numpy as np
from jax.experimental import pallas as pl
from jax.experimental.pallas import tpu as pltpu


# --------------------------------------------------------------------------- #
# Host-side helper matrices / masks (tiny, static shapes, built at trace time)
# --------------------------------------------------------------------------- #
def _maxpool_gather_matrix(H, W, pitch_in, pitch_out, pad_out):
    """0/1 gather: stride-2 decimation of a stride-1 3x3/p1 max map (row pitch
    pitch_in) fused with embedding into the next conv's zero-padded canvas
    (halo pad_out, row pitch pitch_out).  Shape (H*pitch_in, canvas_len)."""
    Ho, Wo = H // 2, W // 2
    n_out = (Ho + 2 * pad_out) * pitch_out + 2 * pad_out        # core + slack
    m = np.zeros((H * pitch_in, n_out), np.float32)
    for ho in range(Ho):
        for wo in range(Wo):
            m[(2 * ho) * pitch_in + 2 * wo,
              (pad_out + ho) * pitch_out + pad_out + wo] = 1.0
    return m


def _avgpool_embed_matrix(H, W, pitch_in, pitch_out, pad_out):
    """AvgPool2d(3,2,1) (count_include_pad=True) as a linear map, fused with
    embedding into the next conv's zero-padded canvas."""
    Ho, Wo = H // 2, W // 2
    n_out = (Ho + 2 * pad_out) * pitch_out + 2 * pad_out
    m = np.zeros((H * pitch_in, n_out), np.float32)
    inv = 1.0 / 9.0
    for ho in range(Ho):
        for wo in range(Wo):
            col = (pad_out + ho) * pitch_out + pad_out + wo
            for kh in range(3):
                for kw in range(3):
                    h, w = 2 * ho - 1 + kh, 2 * wo - 1 + kw
                    if 0 <= h < H and 0 <= w < W:
                        m[h * pitch_in + w, col] += inv
    return m


def _canvas_mask(H, W, pitch, pad, slack):
    """(1, canvas_len) 0/1 mask: 1 at valid positions (pad+h)*pitch + pad+w."""
    m = np.zeros((1, (H + 2 * pad) * pitch + slack), np.float32)
    for h in range(H):
        m[0, (pad + h) * pitch + pad:(pad + h) * pitch + pad + W] = 1.0
    return m


def _gap_mask(H, W, pitch):
    """(1, H*pitch) mask carrying the 1/(H*W) global-average weight."""
    m = np.zeros((1, H * pitch), np.float32)
    for h in range(H):
        m[0, h * pitch:h * pitch + W] = 1.0 / (H * W)
    return m


# --------------------------------------------------------------------------- #
# Fused whole-network kernel (one image per grid step)
# --------------------------------------------------------------------------- #
def _basenet_kernel(x_ref, w1, b1, w2, b2, w3, b3, w4, b4, w5, b5, w6, b6,
                    mp_gather_ref, ap_embed_ref, mp_mask_ref, gap_ref,
                    o_ref, *, hw):
    f32, bf16 = jnp.float32, jnp.bfloat16

    def taps(canvas, K, pitch, n_out):
        # bf16 im2col: K*K lane-shifted static slices of the zero-padded
        # canvas, stacked on sublanes -> ONE MXU matmul operand per conv.
        return jnp.concatenate(
            [canvas[:, kh * pitch + kw: kh * pitch + kw + n_out]
             for kh in range(K) for kw in range(K)], axis=0)

    def conv_relu(acts_bf16, w_ref, b_ref):
        y = jnp.dot(w_ref[...], acts_bf16, preferred_element_type=f32)  # MXU
        return jnp.maximum(y + b_ref[...], 0.0)          # bias + ReLU in f32

    # ---------------- stage A: 32x32, row pitch 36 ------------------------ #
    H, P = hw, hw + 4                                     # 32, 36
    NA = H * P                                            # 1152
    # conv1 5x5 p2 (3->24): input is already a bf16 zero-padded canvas (host).
    a = conv_relu(taps(x_ref[...], 5, P, NA), w1, b1)     # (24, 1152) f32
    # conv2 1x1 (24->12, Cout padded to 16 sublanes)
    a = conv_relu(a.astype(bf16), w2, b2).astype(bf16)    # (16, 1152) bf16
    # MaxPool2d(3,2,1): re-embed into a halo-1 canvas (same pitch) with one
    # 3-piece lane shift + one 0/1 mask multiply (junk lanes & halo -> 0;
    # junk is always finite here, so multiply-by-zero is exact).  Zero halo is
    # exact for max because the input is post-ReLU (>= 0).
    z = jnp.zeros((a.shape[0], P + 1), bf16)              # shift = P + 1 = 37
    canvas = jnp.concatenate([z, a, z], axis=1) * mp_mask_ref[...]
    red = canvas[:, 0:NA]
    for kh in range(3):
        for kw in range(3):
            if kh == 0 and kw == 0:
                continue
            red = jnp.maximum(red, canvas[:, kh * P + kw: kh * P + kw + NA])
    # stride-2 decimation fused with the conv3 canvas embedding: one bf16 0/1
    # gather matmul; halo zeros come for free from all-zero matrix columns.
    a = jnp.dot(red, mp_gather_ref[...], preferred_element_type=f32).astype(bf16)

    # ---------------- stage B: 16x16, row pitch 20 ------------------------ #
    H, P = hw // 2, hw // 2 + 4                           # 16, 20
    NB = H * P                                            # 320
    a = conv_relu(taps(a, 5, P, NB), w3, b3)              # conv3 5x5 (16->24)
    a = conv_relu(a.astype(bf16), w4, b4).astype(bf16)    # conv4 1x1 (24->24)
    # AvgPool2d(3,2,1) is linear: window sum, 1/9, stride-2 decimation and the
    # conv5 canvas embedding are ONE precomputed bf16 matrix (MXU).
    a = jnp.dot(a, ap_embed_ref[...], preferred_element_type=f32).astype(bf16)

    # ---------------- stage C: 8x8, row pitch 10 --------------------------- #
    H, P = hw // 4, hw // 4 + 2                           # 8, 10
    NC = H * P                                            # 80
    a = conv_relu(taps(a, 3, P, NC), w5, b5)              # conv5 3x3 (24->24)
    a = conv_relu(a.astype(bf16), w6, b6)                 # conv6 1x1 (24->10), f32
    # Global AvgPool2d(8): lane mask carries the 1/64 weight, junk lanes -> 0.
    o_ref[...] = jnp.sum(a * gap_ref[...], axis=1, keepdims=True)


# --------------------------------------------------------------------------- #
# Wrapper
# --------------------------------------------------------------------------- #
def basenet_forward(params, x_nchw):
    """params: list of 6 (w_hwio, b) pairs; x: (B, 3, 32, 32) NCHW float."""
    B, cin0, HW, HW2 = x_nchw.shape
    assert HW == HW2 == 32, "BaseNet's final AvgPool2d(8) implies 32x32 inputs"
    assert cin0 == 3

    # Sublane-aligned channel padding plan for the im2col stacks.
    cin_pads = (8, 24, 16, 24, 24, 24)
    cout_pads = (24, 16, 24, 24, 24, 10)

    # Host weight prep: HWIO -> (Cout_pad, K*K*Cin_pad) bf16, biases f32.
    w_mats, biases = [], []
    for (w, b), cip, cop in zip(params, cin_pads, cout_pads):
        K, _, ci, co = w.shape
        wp = jnp.pad(w, ((0, 0), (0, 0), (0, cip - ci), (0, cop - co)))
        w_mats.append(jnp.transpose(wp, (3, 0, 1, 2))
                      .reshape(cop, K * K * cip).astype(jnp.bfloat16))
        biases.append(jnp.pad(b, (0, cop - co)).reshape(cop, 1).astype(jnp.float32))

    PA, PB, PC = HW + 4, HW // 2 + 4, HW // 4 + 2         # row pitches 36/20/10
    mp_gather = jnp.asarray(_maxpool_gather_matrix(HW, HW, PA, PB, 2), jnp.bfloat16)
    ap_embed = jnp.asarray(_avgpool_embed_matrix(HW // 2, HW // 2, PB, PC, 1),
                           jnp.bfloat16)
    mp_mask = jnp.asarray(_canvas_mask(HW, HW, PA, 1, 2), jnp.bfloat16)
    gap_mask = jnp.asarray(_gap_mask(HW // 4, HW // 4, PC), jnp.float32)

    # Host-side input prep: bf16 cast, channel pad 3->8, zero-padded 36x36
    # conv1 canvas (+4 slack lanes).  Kernel does no input cast/padding.
    xb = jnp.pad(x_nchw.astype(jnp.bfloat16), ((0, 0), (0, 8 - cin0), (2, 2), (2, 2)))
    xb = jnp.pad(xb.reshape(B, 8, PA * PA), ((0, 0), (0, 0), (0, 4)))

    operands = [xb]
    in_specs = [pl.BlockSpec((None, 8, xb.shape[2]), lambda bi: (bi, 0, 0))]
    for wm, bv in zip(w_mats, biases):
        operands += [wm, bv]
        in_specs += [pl.BlockSpec(wm.shape, lambda bi: (0, 0)),
                     pl.BlockSpec(bv.shape, lambda bi: (0, 0))]
    for c in (mp_gather, ap_embed, mp_mask, gap_mask):
        operands.append(c)
        in_specs.append(pl.BlockSpec(c.shape, lambda bi: (0, 0)))

    kernel = functools.partial(_basenet_kernel, hw=HW)
    out = pl.pallas_call(
        kernel,
        out_shape=jax.ShapeDtypeStruct((B, 10, 1), jnp.float32),
        grid=(B,),
        in_specs=in_specs,
        out_specs=pl.BlockSpec((None, 10, 1), lambda bi: (bi, 0, 0)),
        compiler_params=pltpu.CompilerParams(
            dimension_semantics=("parallel",)),  # v7x: images across both TCs
    )(*operands)
    return out[:, :, 0]


# --------------------------------------------------------------------------- #
# Parameters & pure-JAX reference (validation only)
# --------------------------------------------------------------------------- #
def init_params(key, cut_ratio=0.125):
    c192 = int(192 * cut_ratio)   # 24
    c96 = int(96 * cut_ratio)     # 12
    cfg = [(3, c192, 5), (c192, c96, 1), (c96, c192, 5),
           (c192, c192, 1), (c192, c192, 3), (c192, 10, 1)]
    params = []
    for i, (cin, cout, ksz) in enumerate(cfg):
        kw_, kb_ = jax.random.split(jax.random.fold_in(key, i))
        fan_in = cin * ksz * ksz
        w = jax.random.normal(kw_, (ksz, ksz, cin, cout), jnp.float32) * (2.0 / fan_in) ** 0.5
        b = jax.random.normal(kb_, (cout,), jnp.float32) * 0.01
        params.append((w, b))
    return params


def ref_forward(params, x_nchw):
    x = jnp.transpose(x_nchw, (0, 2, 3, 1)).astype(jnp.float32)   # NCHW -> NHWC

    def conv(x, w, b):
        pad = (w.shape[0] - 1) // 2
        y = jax.lax.conv_general_dilated(
            x, w, (1, 1), [(pad, pad), (pad, pad)],
            dimension_numbers=("NHWC", "HWIO", "NHWC"))
        return jax.nn.relu(y + b)

    def maxpool(x):
        return jax.lax.reduce_window(x, -jnp.inf, jax.lax.max,
                                     (1, 3, 3, 1), (1, 2, 2, 1),
                                     ((0, 0), (1, 1), (1, 1), (0, 0)))

    def avgpool(x, k, s, p):
        y = jax.lax.reduce_window(x, 0.0, jax.lax.add,
                                  (1, k, k, 1), (1, s, s, 1),
                                  ((0, 0), (p, p), (p, p), (0, 0)))
        return y / (k * k)

    (w1, b1), (w2, b2), (w3, b3), (w4, b4), (w5, b5), (w6, b6) = params
    x = conv(x, w1, b1)
    x = conv(x, w2, b2)
    x = maxpool(x)
    x = conv(x, w3, b3)
    x = conv(x, w4, b4)
    x = avgpool(x, 3, 2, 1)
    x = conv(x, w5, b5)
    x = conv(x, w6, b6)
    x = avgpool(x, 8, 1, 0)
    return x.reshape(x.shape[0], 10)


if __name__ == "__main__":
    key = jax.random.PRNGKey(0)
    params = init_params(jax.random.fold_in(key, 1), cut_ratio=0.125)
    # Spatial 32x32 is required by the architecture (final AvgPool2d(8) -> 1x1).
    x = jax.random.normal(jax.random.fold_in(key, 2), (2, 3, 32, 32), jnp.float32)

    fwd = jax.jit(basenet_forward)
    out = jax.block_until_ready(fwd(params, x))
    assert out.shape == (2, 10)
    assert bool(jnp.all(jnp.isfinite(out)))

    # Loose tolerance: kernel runs bf16 MXU inputs, bf16 activations between
    # layers and a bf16 avgpool gather; the reference runs f32 convs.
    # Indexing/layout bugs would show up as O(1) errors.
    ref = jax.block_until_ready(ref_forward(params, x))
    np.testing.assert_allclose(np.asarray(out), np.asarray(ref), rtol=6e-2, atol=6e-2)

    print("KERNEL_OK")
</pallas_src>

<mosaic_0001>
module attributes {stable_mosaic.version = 11 : i64} {
  func.func @_basenet_kernel(%arg0: i32, %arg1: memref<1x8x1300xbf16, #tpu.memory_space<vmem>>, %arg2: memref<24x200xbf16, #tpu.memory_space<vmem>>, %arg3: memref<24x1xf32, #tpu.memory_space<vmem>>, %arg4: memref<16x24xbf16, #tpu.memory_space<vmem>>, %arg5: memref<16x1xf32, #tpu.memory_space<vmem>>, %arg6: memref<24x400xbf16, #tpu.memory_space<vmem>>, %arg7: memref<24x1xf32, #tpu.memory_space<vmem>>, %arg8: memref<24x24xbf16, #tpu.memory_space<vmem>>, %arg9: memref<24x1xf32, #tpu.memory_space<vmem>>, %arg10: memref<24x216xbf16, #tpu.memory_space<vmem>>, %arg11: memref<24x1xf32, #tpu.memory_space<vmem>>, %arg12: memref<10x24xbf16, #tpu.memory_space<vmem>>, %arg13: memref<10x1xf32, #tpu.memory_space<vmem>>, %arg14: memref<1152x404xbf16, #tpu.memory_space<vmem>>, %arg15: memref<320x102xbf16, #tpu.memory_space<vmem>>, %arg16: memref<1x1226xbf16, #tpu.memory_space<vmem>>, %arg17: memref<1x80xf32, #tpu.memory_space<vmem>>, %arg18: memref<1x10x1xf32, #tpu.memory_space<vmem>>) attributes {dimension_semantics = [#tpu.dimension_semantics<parallel>], iteration_bounds = array<i64: 2>, scalar_prefetch = 0 : i64, scratch_operands = 0 : i64, tpu.core_type = #tpu.core_type<tc>, window_params = [{transform_indices = @transform_0, window_bounds = array<i64: 1, 8, 1300>}, {pipeline_mode = #tpu.pipeline_mode<synchronous>, transform_indices = @transform_1, window_bounds = array<i64: 24, 200>}, {pipeline_mode = #tpu.pipeline_mode<synchronous>, transform_indices = @transform_2, window_bounds = array<i64: 24, 1>}, {pipeline_mode = #tpu.pipeline_mode<synchronous>, transform_indices = @transform_3, window_bounds = array<i64: 16, 24>}, {pipeline_mode = #tpu.pipeline_mode<synchronous>, transform_indices = @transform_4, window_bounds = array<i64: 16, 1>}, {pipeline_mode = #tpu.pipeline_mode<synchronous>, transform_indices = @transform_5, window_bounds = array<i64: 24, 400>}, {pipeline_mode = #tpu.pipeline_mode<synchronous>, transform_indices = @transform_6, window_bounds = array<i64: 24, 1>}, {pipeline_mode = #tpu.pipeline_mode<synchronous>, transform_indices = @transform_7, window_bounds = array<i64: 24, 24>}, {pipeline_mode = #tpu.pipeline_mode<synchronous>, transform_indices = @transform_8, window_bounds = array<i64: 24, 1>}, {pipeline_mode = #tpu.pipeline_mode<synchronous>, transform_indices = @transform_9, window_bounds = array<i64: 24, 216>}, {pipeline_mode = #tpu.pipeline_mode<synchronous>, transform_indices = @transform_10, window_bounds = array<i64: 24, 1>}, {pipeline_mode = #tpu.pipeline_mode<synchronous>, transform_indices = @transform_11, window_bounds = array<i64: 10, 24>}, {pipeline_mode = #tpu.pipeline_mode<synchronous>, transform_indices = @transform_12, window_bounds = array<i64: 10, 1>}, {pipeline_mode = #tpu.pipeline_mode<synchronous>, transform_indices = @transform_13, window_bounds = array<i64: 1152, 404>}, {pipeline_mode = #tpu.pipeline_mode<synchronous>, transform_indices = @transform_14, window_bounds = array<i64: 320, 102>}, {pipeline_mode = #tpu.pipeline_mode<synchronous>, transform_indices = @transform_15, window_bounds = array<i64: 1, 1226>}, {pipeline_mode = #tpu.pipeline_mode<synchronous>, transform_indices = @transform_16, window_bounds = array<i64: 1, 80>}, {transform_indices = @transform_17, window_bounds = array<i64: 1, 10, 1>}]} {
    %c0 = arith.constant 0 : index
    %c0_0 = arith.constant 0 : index
    %c0_1 = arith.constant 0 : index
    %0 = vector.load %arg1[%c0, %c0_0, %c0_1] : memref<1x8x1300xbf16, #tpu.memory_space<vmem>>, vector<1x8x1300xbf16>
    %1 = vector.shape_cast %0 : vector<1x8x1300xbf16> to vector<8x1300xbf16>
    %2 = vector.extract_strided_slice %1 {offsets = [0, 0], sizes = [8, 1152], strides = [1, 1]} : vector<8x1300xbf16> to vector<8x1152xbf16>
    %3 = vector.extract_strided_slice %1 {offsets = [0, 1], sizes = [8, 1152], strides = [1, 1]} : vector<8x1300xbf16> to vector<8x1152xbf16>
    %4 = vector.extract_strided_slice %1 {offsets = [0, 2], sizes = [8, 1152], strides = [1, 1]} : vector<8x1300xbf16> to vector<8x1152xbf16>
    %5 = vector.extract_strided_slice %1 {offsets = [0, 3], sizes = [8, 1152], strides = [1, 1]} : vector<8x1300xbf16> to vector<8x1152xbf16>
    %6 = vector.extract_strided_slice %1 {offsets = [0, 4], sizes = [8, 1152], strides = [1, 1]} : vector<8x1300xbf16> to vector<8x1152xbf16>
    %7 = vector.extract_strided_slice %1 {offsets = [0, 36], sizes = [8, 1152], strides = [1, 1]} : vector<8x1300xbf16> to vector<8x1152xbf16>
    %8 = vector.extract_strided_slice %1 {offsets = [0, 37], sizes = [8, 1152], strides = [1, 1]} : vector<8x1300xbf16> to vector<8x1152xbf16>
    %9 = vector.extract_strided_slice %1 {offsets = [0, 38], sizes = [8, 1152], strides = [1, 1]} : vector<8x1300xbf16> to vector<8x1152xbf16>
    %10 = vector.extract_strided_slice %1 {offsets = [0, 39], sizes = [8, 1152], strides = [1, 1]} : vector<8x1300xbf16> to vector<8x1152xbf16>
    %11 = vector.extract_strided_slice %1 {offsets = [0, 40], sizes = [8, 1152], strides = [1, 1]} : vector<8x1300xbf16> to vector<8x1152xbf16>
    %12 = vector.extract_strided_slice %1 {offsets = [0, 72], sizes = [8, 1152], strides = [1, 1]} : vector<8x1300xbf16> to vector<8x1152xbf16>
    %13 = vector.extract_strided_slice %1 {offsets = [0, 73], sizes = [8, 1152], strides = [1, 1]} : vector<8x1300xbf16> to vector<8x1152xbf16>
    %14 = vector.extract_strided_slice %1 {offsets = [0, 74], sizes = [8, 1152], strides = [1, 1]} : vector<8x1300xbf16> to vector<8x1152xbf16>
    %15 = vector.extract_strided_slice %1 {offsets = [0, 75], sizes = [8, 1152], strides = [1, 1]} : vector<8x1300xbf16> to vector<8x1152xbf16>
    %16 = vector.extract_strided_slice %1 {offsets = [0, 76], sizes = [8, 1152], strides = [1, 1]} : vector<8x1300xbf16> to vector<8x1152xbf16>
    %17 = vector.extract_strided_slice %1 {offsets = [0, 108], sizes = [8, 1152], strides = [1, 1]} : vector<8x1300xbf16> to vector<8x1152xbf16>
    %18 = vector.extract_strided_slice %1 {offsets = [0, 109], sizes = [8, 1152], strides = [1, 1]} : vector<8x1300xbf16> to vector<8x1152xbf16>
    %19 = vector.extract_strided_slice %1 {offsets = [0, 110], sizes = [8, 1152], strides = [1, 1]} : vector<8x1300xbf16> to vector<8x1152xbf16>
    %20 = vector.extract_strided_slice %1 {offsets = [0, 111], sizes = [8, 1152], strides = [1, 1]} : vector<8x1300xbf16> to vector<8x1152xbf16>
    %21 = vector.extract_strided_slice %1 {offsets = [0, 112], sizes = [8, 1152], strides = [1, 1]} : vector<8x1300xbf16> to vector<8x1152xbf16>
    %22 = vector.extract_strided_slice %1 {offsets = [0, 144], sizes = [8, 1152], strides = [1, 1]} : vector<8x1300xbf16> to vector<8x1152xbf16>
    %23 = vector.extract_strided_slice %1 {offsets = [0, 145], sizes = [8, 1152], strides = [1, 1]} : vector<8x1300xbf16> to vector<8x1152xbf16>
    %24 = vector.extract_strided_slice %1 {offsets = [0, 146], sizes = [8, 1152], strides = [1, 1]} : vector<8x1300xbf16> to vector<8x1152xbf16>
    %25 = vector.extract_strided_slice %1 {offsets = [0, 147], sizes = [8, 1152], strides = [1, 1]} : vector<8x1300xbf16> to vector<8x1152xbf16>
    %26 = vector.extract_strided_slice %1 {offsets = [0, 148], sizes = [8, 1152], strides = [1, 1]} : vector<8x1300xbf16> to vector<8x1152xbf16>
    %27 = tpu.concatenate %2, %3, %4, %5, %6, %7, %8, %9, %10, %11, %12, %13, %14, %15, %16, %17 in 0 : vector<8x1152xbf16>, vector<8x1152xbf16>, vector<8x1152xbf16>, vector<8x1152xbf16>, vector<8x1152xbf16>, vector<8x1152xbf16>, vector<8x1152xbf16>, vector<8x1152xbf16>, vector<8x1152xbf16>, vector<8x1152xbf16>, vector<8x1152xbf16>, vector<8x1152xbf16>, vector<8x1152xbf16>, vector<8x1152xbf16>, vector<8x1152xbf16>, vector<8x1152xbf16> -> vector<128x1152xbf16>
    %28 = tpu.concatenate %18, %19, %20, %21, %22, %23, %24, %25, %26 in 0 : vector<8x1152xbf16>, vector<8x1152xbf16>, vector<8x1152xbf16>, vector<8x1152xbf16>, vector<8x1152xbf16>, vector<8x1152xbf16>, vector<8x1152xbf16>, vector<8x1152xbf16>, vector<8x1152xbf16> -> vector<72x1152xbf16>
    %29 = tpu.concatenate %27, %28 in 0 : vector<128x1152xbf16>, vector<72x1152xbf16> -> vector<200x1152xbf16>
    %c0_2 = arith.constant 0 : index
    %c0_3 = arith.constant 0 : index
    %30 = vector.load %arg2[%c0_2, %c0_3] : memref<24x200xbf16, #tpu.memory_space<vmem>>, vector<24x200xbf16>
    %cst = arith.constant dense<0.000000e+00> : vector<24x1152xf32>
    %31 = tpu.matmul %30, %29, %cst {dimension_numbers = #tpu.dot_dimension_numbers<[1], [0], [0], [1], [0, 0, 1, 1], [], []>} : vector<24x200xbf16>, vector<200x1152xbf16>, vector<24x1152xf32> -> vector<24x1152xf32>
    %c0_4 = arith.constant 0 : index
    %c0_5 = arith.constant 0 : index
    %32 = vector.load %arg3[%c0_4, %c0_5] : memref<24x1xf32, #tpu.memory_space<vmem>>, vector<24x1xf32>
    %33 = vector.broadcast %32 : vector<24x1xf32> to vector<24x1152xf32>
    %34 = arith.addf %31, %33 : vector<24x1152xf32>
    %cst_6 = arith.constant 0.000000e+00 : f32
    %35 = vector.broadcast %cst_6 : f32 to vector<24x1152xf32>
    %36 = arith.maximumf %34, %35 : vector<24x1152xf32>
    %37 = arith.truncf %36 : vector<24x1152xf32> to vector<24x1152xbf16>
    %c0_7 = arith.constant 0 : index
    %c0_8 = arith.constant 0 : index
    %38 = vector.load %arg4[%c0_7, %c0_8] : memref<16x24xbf16, #tpu.memory_space<vmem>>, vector<16x24xbf16>
    %cst_9 = arith.constant dense<0.000000e+00> : vector<16x1152xf32>
    %39 = tpu.matmul %38, %37, %cst_9 {dimension_numbers = #tpu.dot_dimension_numbers<[1], [0], [0], [1], [0, 0, 1, 1], [], []>} : vector<16x24xbf16>, vector<24x1152xbf16>, vector<16x1152xf32> -> vector<16x1152xf32>
    %c0_10 = arith.constant 0 : index
    %c0_11 = arith.constant 0 : index
    %40 = vector.load %arg5[%c0_10, %c0_11] : memref<16x1xf32, #tpu.memory_space<vmem>>, vector<16x1xf32>
    %41 = vector.broadcast %40 : vector<16x1xf32> to vector<16x1152xf32>
    %42 = arith.addf %39, %41 : vector<16x1152xf32>
    %cst_12 = arith.constant 0.000000e+00 : f32
    %43 = vector.broadcast %cst_12 : f32 to vector<16x1152xf32>
    %44 = arith.maximumf %42, %43 : vector<16x1152xf32>
    %45 = arith.truncf %44 : vector<16x1152xf32> to vector<16x1152xbf16>
    %cst_13 = arith.constant 0.000000e+00 : bf16
    %46 = vector.broadcast %cst_13 : bf16 to vector<16x37xbf16>
    %47 = tpu.concatenate %46, %45, %46 in 1 : vector<16x37xbf16>, vector<16x1152xbf16>, vector<16x37xbf16> -> vector<16x1226xbf16>
    %c0_14 = arith.constant 0 : index
    %c0_15 = arith.constant 0 : index
    %48 = vector.load %arg16[%c0_14, %c0_15] : memref<1x1226xbf16, #tpu.memory_space<vmem>>, vector<1x1226xbf16>
    %49 = vector.broadcast %48 : vector<1x1226xbf16> to vector<16x1226xbf16>
    %50 = arith.mulf %47, %49 : vector<16x1226xbf16>
    %51 = vector.extract_strided_slice %50 {offsets = [0, 0], sizes = [16, 1152], strides = [1, 1]} : vector<16x1226xbf16> to vector<16x1152xbf16>
    %52 = vector.extract_strided_slice %50 {offsets = [0, 1], sizes = [16, 1152], strides = [1, 1]} : vector<16x1226xbf16> to vector<16x1152xbf16>
    %53 = arith.maximumf %51, %52 : vector<16x1152xbf16>
    %54 = vector.extract_strided_slice %50 {offsets = [0, 2], sizes = [16, 1152], strides = [1, 1]} : vector<16x1226xbf16> to vector<16x1152xbf16>
    %55 = arith.maximumf %53, %54 : vector<16x1152xbf16>
    %56 = vector.extract_strided_slice %50 {offsets = [0, 36], sizes = [16, 1152], strides = [1, 1]} : vector<16x1226xbf16> to vector<16x1152xbf16>
    %57 = arith.maximumf %55, %56 : vector<16x1152xbf16>
    %58 = vector.extract_strided_slice %50 {offsets = [0, 37], sizes = [16, 1152], strides = [1, 1]} : vector<16x1226xbf16> to vector<16x1152xbf16>
    %59 = arith.maximumf %57, %58 : vector<16x1152xbf16>
    %60 = vector.extract_strided_slice %50 {offsets = [0, 38], sizes = [16, 1152], strides = [1, 1]} : vector<16x1226xbf16> to vector<16x1152xbf16>
    %61 = arith.maximumf %59, %60 : vector<16x1152xbf16>
    %62 = vector.extract_strided_slice %50 {offsets = [0, 72], sizes = [16, 1152], strides = [1, 1]} : vector<16x1226xbf16> to vector<16x1152xbf16>
    %63 = arith.maximumf %61, %62 : vector<16x1152xbf16>
    %64 = vector.extract_strided_slice %50 {offsets = [0, 73], sizes = [16, 1152], strides = [1, 1]} : vector<16x1226xbf16> to vector<16x1152xbf16>
    %65 = arith.maximumf %63, %64 : vector<16x1152xbf16>
    %66 = vector.extract_strided_slice %50 {offsets = [0, 74], sizes = [16, 1152], strides = [1, 1]} : vector<16x1226xbf16> to vector<16x1152xbf16>
    %67 = arith.maximumf %65, %66 : vector<16x1152xbf16>
    %c0_16 = arith.constant 0 : index
    %c0_17 = arith.constant 0 : index
    %68 = vector.load %arg14[%c0_16, %c0_17] : memref<1152x404xbf16, #tpu.memory_space<vmem>>, vector<1152x404xbf16>
    %cst_18 = arith.constant dense<0.000000e+00> : vector<16x404xf32>
    %69 = tpu.matmul %67, %68, %cst_18 {dimension_numbers = #tpu.dot_dimension_numbers<[1], [0], [0], [1], [0, 0, 1, 1], [], []>} : vector<16x1152xbf16>, vector<1152x404xbf16>, vector<16x404xf32> -> vector<16x404xf32>
    %70 = arith.truncf %69 : vector<16x404xf32> to vector<16x404xbf16>
    %71 = vector.extract_strided_slice %70 {offsets = [0, 0], sizes = [16, 320], strides = [1, 1]} : vector<16x404xbf16> to vector<16x320xbf16>
    %72 = vector.extract_strided_slice %70 {offsets = [0, 1], sizes = [16, 320], strides = [1, 1]} : vector<16x404xbf16> to vector<16x320xbf16>
    %73 = vector.extract_strided_slice %70 {offsets = [0, 2], sizes = [16, 320], strides = [1, 1]} : vector<16x404xbf16> to vector<16x320xbf16>
    %74 = vector.extract_strided_slice %70 {offsets = [0, 3], sizes = [16, 320], strides = [1, 1]} : vector<16x404xbf16> to vector<16x320xbf16>
    %75 = vector.extract_strided_slice %70 {offsets = [0, 4], sizes = [16, 320], strides = [1, 1]} : vector<16x404xbf16> to vector<16x320xbf16>
    %76 = vector.extract_strided_slice %70 {offsets = [0, 20], sizes = [16, 320], strides = [1, 1]} : vector<16x404xbf16> to vector<16x320xbf16>
    %77 = vector.extract_strided_slice %70 {offsets = [0, 21], sizes = [16, 320], strides = [1, 1]} : vector<16x404xbf16> to vector<16x320xbf16>
    %78 = vector.extract_strided_slice %70 {offsets = [0, 22], sizes = [16, 320], strides = [1, 1]} : vector<16x404xbf16> to vector<16x320xbf16>
    %79 = vector.extract_strided_slice %70 {offsets = [0, 23], sizes = [16, 320], strides = [1, 1]} : vector<16x404xbf16> to vector<16x320xbf16>
    %80 = vector.extract_strided_slice %70 {offsets = [0, 24], sizes = [16, 320], strides = [1, 1]} : vector<16x404xbf16> to vector<16x320xbf16>
    %81 = vector.extract_strided_slice %70 {offsets = [0, 40], sizes = [16, 320], strides = [1, 1]} : vector<16x404xbf16> to vector<16x320xbf16>
    %82 = vector.extract_strided_slice %70 {offsets = [0, 41], sizes = [16, 320], strides = [1, 1]} : vector<16x404xbf16> to vector<16x320xbf16>
    %83 = vector.extract_strided_slice %70 {offsets = [0, 42], sizes = [16, 320], strides = [1, 1]} : vector<16x404xbf16> to vector<16x320xbf16>
    %84 = vector.extract_strided_slice %70 {offsets = [0, 43], sizes = [16, 320], strides = [1, 1]} : vector<16x404xbf16> to vector<16x320xbf16>
    %85 = vector.extract_strided_slice %70 {offsets = [0, 44], sizes = [16, 320], strides = [1, 1]} : vector<16x404xbf16> to vector<16x320xbf16>
    %86 = vector.extract_strided_slice %70 {offsets = [0, 60], sizes = [16, 320], strides = [1, 1]} : vector<16x404xbf16> to vector<16x320xbf16>
    %87 = vector.extract_strided_slice %70 {offsets = [0, 61], sizes = [16, 320], strides = [1, 1]} : vector<16x404xbf16> to vector<16x320xbf16>
    %88 = vector.extract_strided_slice %70 {offsets = [0, 62], sizes = [16, 320], strides = [1, 1]} : vector<16x404xbf16> to vector<16x320xbf16>
    %89 = vector.extract_strided_slice %70 {offsets = [0, 63], sizes = [16, 320], strides = [1, 1]} : vector<16x404xbf16> to vector<16x320xbf16>
    %90 = vector.extract_strided_slice %70 {offsets = [0, 64], sizes = [16, 320], strides = [1, 1]} : vector<16x404xbf16> to vector<16x320xbf16>
    %91 = vector.extract_strided_slice %70 {offsets = [0, 80], sizes = [16, 320], strides = [1, 1]} : vector<16x404xbf16> to vector<16x320xbf16>
    %92 = vector.extract_strided_slice %70 {offsets = [0, 81], sizes = [16, 320], strides = [1, 1]} : vector<16x404xbf16> to vector<16x320xbf16>
    %93 = vector.extract_strided_slice %70 {offsets = [0, 82], sizes = [16, 320], strides = [1, 1]} : vector<16x404xbf16> to vector<16x320xbf16>
    %94 = vector.extract_strided_slice %70 {offsets = [0, 83], sizes = [16, 320], strides = [1, 1]} : vector<16x404xbf16> to vector<16x320xbf16>
    %95 = vector.extract_strided_slice %70 {offsets = [0, 84], sizes = [16, 320], strides = [1, 1]} : vector<16x404xbf16> to vector<16x320xbf16>
    %96 = tpu.concatenate %71, %72, %73, %74, %75, %76, %77, %78, %79, %80, %81, %82, %83, %84, %85, %86 in 0 : vector<16x320xbf16>, vector<16x320xbf16>, vector<16x320xbf16>, vector<16x320xbf16>, vector<16x320xbf16>, vector<16x320xbf16>, vector<16x320xbf16>, vector<16x320xbf16>, vector<16x320xbf16>, vector<16x320xbf16>, vector<16x320xbf16>, vector<16x320xbf16>, vector<16x320xbf16>, vector<16x320xbf16>, vector<16x320xbf16>, vector<16x320xbf16> -> vector<256x320xbf16>
    %97 = tpu.concatenate %87, %88, %89, %90, %91, %92, %93, %94, %95 in 0 : vector<16x320xbf16>, vector<16x320xbf16>, vector<16x320xbf16>, vector<16x320xbf16>, vector<16x320xbf16>, vector<16x320xbf16>, vector<16x320xbf16>, vector<16x320xbf16>, vector<16x320xbf16> -> vector<144x320xbf16>
    %98 = tpu.concatenate %96, %97 in 0 : vector<256x320xbf16>, vector<144x320xbf16> -> vector<400x320xbf16>
    %c0_19 = arith.constant 0 : index
    %c0_20 = arith.constant 0 : index
    %99 = vector.load %arg6[%c0_19, %c0_20] : memref<24x400xbf16, #tpu.memory_space<vmem>>, vector<24x400xbf16>
    %cst_21 = arith.constant dense<0.000000e+00> : vector<24x320xf32>
    %100 = tpu.matmul %99, %98, %cst_21 {dimension_numbers = #tpu.dot_dimension_numbers<[1], [0], [0], [1], [0, 0, 1, 1], [], []>} : vector<24x400xbf16>, vector<400x320xbf16>, vector<24x320xf32> -> vector<24x320xf32>
    %c0_22 = arith.constant 0 : index
    %c0_23 = arith.constant 0 : index
    %101 = vector.load %arg7[%c0_22, %c0_23] : memref<24x1xf32, #tpu.memory_space<vmem>>, vector<24x1xf32>
    %102 = vector.broadcast %101 : vector<24x1xf32> to vector<24x320xf32>
    %103 = arith.addf %100, %102 : vector<24x320xf32>
    %cst_24 = arith.constant 0.000000e+00 : f32
    %104 = vector.broadcast %cst_24 : f32 to vector<24x320xf32>
    %105 = arith.maximumf %103, %104 : vector<24x320xf32>
    %106 = arith.truncf %105 : vector<24x320xf32> to vector<24x320xbf16>
    %c0_25 = arith.constant 0 : index
    %c0_26 = arith.constant 0 : index
    %107 = vector.load %arg8[%c0_25, %c0_26] : memref<24x24xbf16, #tpu.memory_space<vmem>>, vector<24x24xbf16>
    %cst_27 = arith.constant dense<0.000000e+00> : vector<24x320xf32>
    %108 = tpu.matmul %107, %106, %cst_27 {dimension_numbers = #tpu.dot_dimension_numbers<[1], [0], [0], [1], [0, 0, 1, 1], [], []>} : vector<24x24xbf16>, vector<24x320xbf16>, vector<24x320xf32> -> vector<24x320xf32>
    %c0_28 = arith.constant 0 : index
    %c0_29 = arith.constant 0 : index
    %109 = vector.load %arg9[%c0_28, %c0_29] : memref<24x1xf32, #tpu.memory_space<vmem>>, vector<24x1xf32>
    %110 = vector.broadcast %109 : vector<24x1xf32> to vector<24x320xf32>
    %111 = arith.addf %108, %110 : vector<24x320xf32>
    %cst_30 = arith.constant 0.000000e+00 : f32
    %112 = vector.broadcast %cst_30 : f32 to vector<24x320xf32>
    %113 = arith.maximumf %111, %112 : vector<24x320xf32>
    %114 = arith.truncf %113 : vector<24x320xf32> to vector<24x320xbf16>
    %c0_31 = arith.constant 0 : index
    %c0_32 = arith.constant 0 : index
    %115 = vector.load %arg15[%c0_31, %c0_32] : memref<320x102xbf16, #tpu.memory_space<vmem>>, vector<320x102xbf16>
    %cst_33 = arith.constant dense<0.000000e+00> : vector<24x102xf32>
    %116 = tpu.matmul %114, %115, %cst_33 {dimension_numbers = #tpu.dot_dimension_numbers<[1], [0], [0], [1], [0, 0, 1, 1], [], []>} : vector<24x320xbf16>, vector<320x102xbf16>, vector<24x102xf32> -> vector<24x102xf32>
    %117 = arith.truncf %116 : vector<24x102xf32> to vector<24x102xbf16>
    %118 = vector.extract_strided_slice %117 {offsets = [0, 0], sizes = [24, 80], strides = [1, 1]} : vector<24x102xbf16> to vector<24x80xbf16>
    %119 = vector.extract_strided_slice %117 {offsets = [0, 1], sizes = [24, 80], strides = [1, 1]} : vector<24x102xbf16> to vector<24x80xbf16>
    %120 = vector.extract_strided_slice %117 {offsets = [0, 2], sizes = [24, 80], strides = [1, 1]} : vector<24x102xbf16> to vector<24x80xbf16>
    %121 = vector.extract_strided_slice %117 {offsets = [0, 10], sizes = [24, 80], strides = [1, 1]} : vector<24x102xbf16> to vector<24x80xbf16>
    %122 = vector.extract_strided_slice %117 {offsets = [0, 11], sizes = [24, 80], strides = [1, 1]} : vector<24x102xbf16> to vector<24x80xbf16>
    %123 = vector.extract_strided_slice %117 {offsets = [0, 12], sizes = [24, 80], strides = [1, 1]} : vector<24x102xbf16> to vector<24x80xbf16>
    %124 = vector.extract_strided_slice %117 {offsets = [0, 20], sizes = [24, 80], strides = [1, 1]} : vector<24x102xbf16> to vector<24x80xbf16>
    %125 = vector.extract_strided_slice %117 {offsets = [0, 21], sizes = [24, 80], strides = [1, 1]} : vector<24x102xbf16> to vector<24x80xbf16>
    %126 = vector.extract_strided_slice %117 {offsets = [0, 22], sizes = [24, 80], strides = [1, 1]} : vector<24x102xbf16> to vector<24x80xbf16>
    %127 = tpu.concatenate %118, %119, %120, %121, %122, %123, %124, %125, %126 in 0 : vector<24x80xbf16>, vector<24x80xbf16>, vector<24x80xbf16>, vector<24x80xbf16>, vector<24x80xbf16>, vector<24x80xbf16>, vector<24x80xbf16>, vector<24x80xbf16>, vector<24x80xbf16> -> vector<216x80xbf16>
    %c0_34 = arith.constant 0 : index
    %c0_35 = arith.constant 0 : index
    %128 = vector.load %arg10[%c0_34, %c0_35] : memref<24x216xbf16, #tpu.memory_space<vmem>>, vector<24x216xbf16>
    %cst_36 = arith.constant dense<0.000000e+00> : vector<24x80xf32>
    %129 = tpu.matmul %128, %127, %cst_36 {dimension_numbers = #tpu.dot_dimension_numbers<[1], [0], [0], [1], [0, 0, 1, 1], [], []>} : vector<24x216xbf16>, vector<216x80xbf16>, vector<24x80xf32> -> vector<24x80xf32>
    %c0_37 = arith.constant 0 : index
    %c0_38 = arith.constant 0 : index
    %130 = vector.load %arg11[%c0_37, %c0_38] : memref<24x1xf32, #tpu.memory_space<vmem>>, vector<24x1xf32>
    %131 = vector.broadcast %130 : vector<24x1xf32> to vector<24x80xf32>
    %132 = arith.addf %129, %131 : vector<24x80xf32>
    %cst_39 = arith.constant 0.000000e+00 : f32
    %133 = vector.broadcast %cst_39 : f32 to vector<24x80xf32>
    %134 = arith.maximumf %132, %133 : vector<24x80xf32>
    %135 = arith.truncf %134 : vector<24x80xf32> to vector<24x80xbf16>
    %c0_40 = arith.constant 0 : index
    %c0_41 = arith.constant 0 : index
    %136 = vector.load %arg12[%c0_40, %c0_41] : memref<10x24xbf16, #tpu.memory_space<vmem>>, vector<10x24xbf16>
    %cst_42 = arith.constant dense<0.000000e+00> : vector<10x80xf32>
    %137 = tpu.matmul %136, %135, %cst_42 {dimension_numbers = #tpu.dot_dimension_numbers<[1], [0], [0], [1], [0, 0, 1, 1], [], []>} : vector<10x24xbf16>, vector<24x80xbf16>, vector<10x80xf32> -> vector<10x80xf32>
    %c0_43 = arith.constant 0 : index
    %c0_44 = arith.constant 0 : index
    %138 = vector.load %arg13[%c0_43, %c0_44] : memref<10x1xf32, #tpu.memory_space<vmem>>, vector<10x1xf32>
    %139 = vector.broadcast %138 : vector<10x1xf32> to vector<10x80xf32>
    %140 = arith.addf %137, %139 : vector<10x80xf32>
    %cst_45 = arith.constant 0.000000e+00 : f32
    %141 = vector.broadcast %cst_45 : f32 to vector<10x80xf32>
    %142 = arith.maximumf %140, %141 : vector<10x80xf32>
    %c0_46 = arith.constant 0 : index
    %c0_47 = arith.constant 0 : index
    %143 = vector.load %arg17[%c0_46, %c0_47] : memref<1x80xf32, #tpu.memory_space<vmem>>, vector<1x80xf32>
    %144 = vector.broadcast %143 : vector<1x80xf32> to vector<10x80xf32>
    %145 = arith.mulf %142, %144 : vector<10x80xf32>
    %cst_48 = arith.constant dense<0.000000e+00> : vector<10xf32>
    %146 = vector.multi_reduction <add>, %145, %cst_48 [1] : vector<10x80xf32> to vector<10xf32>
    %147 = vector.shape_cast %146 : vector<10xf32> to vector<10x1xf32>
    %c0_49 = arith.constant 0 : index
    %c0_50 = arith.constant 0 : index
    %c0_51 = arith.constant 0 : index
    %148 = vector.load %arg18[%c0_49, %c0_50, %c0_51] : memref<1x10x1xf32, #tpu.memory_space<vmem>>, vector<1x10x1xf32>
    %149 = vector.shape_cast %148 : vector<1x10x1xf32> to vector<10x1xf32>
    %150 = vector.shape_cast %147 : vector<10x1xf32> to vector<1x10x1xf32>
    tpu.vector_store %arg18[%c0_49, %c0_50, %c0_51], %150 {strides = array<i32>} : memref<1x10x1xf32, #tpu.memory_space<vmem>>, vector<1x10x1xf32>,
    return
  }
  func.func @transform_0(%arg0: i32) -> (i32, i32, i32) {
    %c0_i32 = arith.constant 0 : i32
    %c0_i32_0 = arith.constant 0 : i32
    %c0_i32_1 = arith.constant 0 : i32
    return %arg0, %c0_i32, %c0_i32_0 : i32, i32, i32
  }
  func.func @transform_1(%arg0: i32) -> (i32, i32) {
    %c0_i32 = arith.constant 0 : i32
    %c0_i32_0 = arith.constant 0 : i32
    %c0_i32_1 = arith.constant 0 : i32
    return %c0_i32, %c0_i32_0 : i32, i32
  }
  func.func @transform_2(%arg0: i32) -> (i32, i32) {
    %c0_i32 = arith.constant 0 : i32
    %c0_i32_0 = arith.constant 0 : i32
    %c0_i32_1 = arith.constant 0 : i32
    return %c0_i32, %c0_i32_0 : i32, i32
  }
  func.func @transform_3(%arg0: i32) -> (i32, i32) {
    %c0_i32 = arith.constant 0 : i32
    %c0_i32_0 = arith.constant 0 : i32
    %c0_i32_1 = arith.constant 0 : i32
    return %c0_i32, %c0_i32_0 : i32, i32
  }
  func.func @transform_4(%arg0: i32) -> (i32, i32) {
    %c0_i32 = arith.constant 0 : i32
    %c0_i32_0 = arith.constant 0 : i32
    %c0_i32_1 = arith.constant 0 : i32
    return %c0_i32, %c0_i32_0 : i32, i32
  }
  func.func @transform_5(%arg0: i32) -> (i32, i32) {
    %c0_i32 = arith.constant 0 : i32
    %c0_i32_0 = arith.constant 0 : i32
    %c0_i32_1 = arith.constant 0 : i32
    return %c0_i32, %c0_i32_0 : i32, i32
  }
  func.func @transform_6(%arg0: i32) -> (i32, i32) {
    %c0_i32 = arith.constant 0 : i32
    %c0_i32_0 = arith.constant 0 : i32
    %c0_i32_1 = arith.constant 0 : i32
    return %c0_i32, %c0_i32_0 : i32, i32
  }
  func.func @transform_7(%arg0: i32) -> (i32, i32) {
    %c0_i32 = arith.constant 0 : i32
    %c0_i32_0 = arith.constant 0 : i32
    %c0_i32_1 = arith.constant 0 : i32
    return %c0_i32, %c0_i32_0 : i32, i32
  }
  func.func @transform_8(%arg0: i32) -> (i32, i32) {
    %c0_i32 = arith.constant 0 : i32
    %c0_i32_0 = arith.constant 0 : i32
    %c0_i32_1 = arith.constant 0 : i32
    return %c0_i32, %c0_i32_0 : i32, i32
  }
  func.func @transform_9(%arg0: i32) -> (i32, i32) {
    %c0_i32 = arith.constant 0 : i32
    %c0_i32_0 = arith.constant 0 : i32
    %c0_i32_1 = arith.constant 0 : i32
    return %c0_i32, %c0_i32_0 : i32, i32
  }
  func.func @transform_10(%arg0: i32) -> (i32, i32) {
    %c0_i32 = arith.constant 0 : i32
    %c0_i32_0 = arith.constant 0 : i32
    %c0_i32_1 = arith.constant 0 : i32
    return %c0_i32, %c0_i32_0 : i32, i32
  }
  func.func @transform_11(%arg0: i32) -> (i32, i32) {
    %c0_i32 = arith.constant 0 : i32
    %c0_i32_0 = arith.constant 0 : i32
    %c0_i32_1 = arith.constant 0 : i32
    return %c0_i32, %c0_i32_0 : i32, i32
  }
  func.func @transform_12(%arg0: i32) -> (i32, i32) {
    %c0_i32 = arith.constant 0 : i32
    %c0_i32_0 = arith.constant 0 : i32
    %c0_i32_1 = arith.constant 0 : i32
    return %c0_i32, %c0_i32_0 : i32, i32
  }
  func.func @transform_13(%arg0: i32) -> (i32, i32) {
    %c0_i32 = arith.constant 0 : i32
    %c0_i32_0 = arith.constant 0 : i32
    %c0_i32_1 = arith.constant 0 : i32
    return %c0_i32, %c0_i32_0 : i32, i32
  }
  func.func @transform_14(%arg0: i32) -> (i32, i32) {
    %c0_i32 = arith.constant 0 : i32
    %c0_i32_0 = arith.constant 0 : i32
    %c0_i32_1 = arith.constant 0 : i32
    return %c0_i32, %c0_i32_0 : i32, i32
  }
  func.func @transform_15(%arg0: i32) -> (i32, i32) {
    %c0_i32 = arith.constant 0 : i32
    %c0_i32_0 = arith.constant 0 : i32
    %c0_i32_1 = arith.constant 0 : i32
    return %c0_i32, %c0_i32_0 : i32, i32
  }
  func.func @transform_16(%arg0: i32) -> (i32, i32) {
    %c0_i32 = arith.constant 0 : i32
    %c0_i32_0 = arith.constant 0 : i32
    %c0_i32_1 = arith.constant 0 : i32
    return %c0_i32, %c0_i32_0 : i32, i32
  }
  func.func @transform_17(%arg0: i32) -> (i32, i32, i32) {
    %c0_i32 = arith.constant 0 : i32
    %c0_i32_0 = arith.constant 0 : i32
    %c0_i32_1 = arith.constant 0 : i32
    return %arg0, %c0_i32, %c0_i32_0 : i32, i32, i32
  }
}

</mosaic_0001>

<bundles_post_ra>
// kernel: basenet_forward.1
= control target key start
LH: loop header
LB: loop body
LE: loop exit
PB: predicated region body
PF: predicated region fallthrough
CT: control target
= control target key end

     0   :  { %s7510_s24 = smov 0   ;;  %s10928_s0 = inlined_call_operand.vmem [shape: bf16[2,8,1300], index: 0, kind: input, shape index: {}]   ;;  %s10929_s1 = inlined_call_operand.vmem [shape: bf16[24,200], index: 1, kind: input, shape index: {}]   ;;  %s10930_s2 = inlined_call_operand.vmem [shape: f32[24,1], index: 2, kind: input, shape index: {}]   ;;  %s10931_s3 = inlined_call_operand.vmem [shape: bf16[16,24], index: 3, kind: input, shape index: {}]   ;;  %s10932_s4 = inlined_call_operand.vmem [shape: f32[16,1], index: 4, kind: input, shape index: {}]   ;;  %s10933_s5 = inlined_call_operand.vmem [shape: bf16[24,400], index: 5, kind: input, shape index: {}]   ;;  %s10934_s6 = inlined_call_operand.vmem [shape: f32[24,1], index: 6, kind: input, shape index: {}]   ;;  %s10935_s7 = inlined_call_operand.vmem [shape: bf16[24,24], index: 7, kind: input, shape index: {}]   ;;  %s10936_s8 = inlined_call_operand.vmem [shape: f32[24,1], index: 8, kind: input, shape index: {}]   ;;  %s10937_s9 = inlined_call_operand.vmem [shape: bf16[24,216], index: 9, kind: input, shape index: {}]   ;;  %s10938_s10 = inlined_call_operand.vmem [shape: f32[24,1], index: 10, kind: input, shape index: {}]   ;;  %s10939_s11 = inlined_call_operand.vmem [shape: bf16[10,24], index: 11, kind: input, shape index: {}]   ;;  %s10940_s12 = inlined_call_operand.vmem [shape: f32[10,1], index: 12, kind: input, shape index: {}]   ;;  %s10941_s13 = inlined_call_operand.vmem [shape: bf16[1152,404], index: 13, kind: input, shape index: {}]   ;;  %s10942_s14 = inlined_call_operand.vmem [shape: bf16[320,102], index: 14, kind: input, shape index: {}]   ;;  %s10943_s15 = inlined_call_operand.vmem [shape: bf16[1,1226], index: 15, kind: input, shape index: {}]   ;;  %s10944_s16 = inlined_call_operand.vmem [shape: f32[1,80], index: 16, kind: input, shape index: {}]   ;;  %s10945_s17 = inlined_call_operand.vmem [shape: f32[2,10,1], index: 17, kind: output, shape index: {}]  }
   0x1   :  { %10996 = sst [smem:[#allocation9_spill]] %s10928_s0 }
   0x2   :  { %10997 = sst [smem:[#allocation10_spill]] %s10929_s1 }
   0x3   :  { %10998 = sst [smem:[#allocation11_spill]] %s10930_s2 }
   0x4   :  { %10999 = sst [smem:[#allocation12_spill]] %s10931_s3 }
   0x5   :  { %11000 = sst [smem:[#allocation13_spill]] %s10932_s4 }
   0x6   :  { %11001 = sst [smem:[#allocation14_spill]] %s10944_s16 }
   0x7   :  { %11002 = sst [smem:[#allocation15_spill]] %s10945_s17 }
   0x8 LB: > { %11003 = sst [smem:[#allocation2_spill]] %s7381_s24  ;;  %s6340_s25 = sadd.s32 4294967295, %s7381_s24   ;;  %s7381_s24 = sphi %s7510_s24, %s27_s24  }
   0x9   : > { %p6344_p0 = scmp.ge.s32.totalorder %s7381_s24, 1  ;;  %p487_p1 = scmp.lt.s32.totalorder %s7381_s24, 3 }
   0xb   : > { %p488_p2 = pnand %p6344_p0, %p487_p1 }
   0xd   : > { %491 = sbr.rel (%p488_p2) target bundleno = 3375 (0xd2f), region = 88 }
  0x12   : > { %p539_p3 = scmp.lt.s32.totalorder %s6340_s25, 1  ;;  %s11005_s29 = sld [smem:[#allocation9_spill]]  ;;  %vm811_vm0 = vcmask 728064   ;;  %vm781_vm1 = vcmask 736256   ;;  %vm751_vm2 = vcmask 744448   ;;  %vm1031_vm3 = vcmask 1043456  }
  0x13   : > { %s10971_s30 = smov 89   ;;  %s10968_s18 = smov 91   ;;  %vm991_vm4 = vcmask 424960   ;;  %vm1021_vm5 = vcmask 162816   ;;  %vm1343_vm6 = vcmask 760832   ;;  %vm721_vm7 = vcmask 752640  }
  0x14   : > { %s11106_s25 = smov (!%p539_p3, %s6340_s25), 1  ;;  %s10955_s19 = smov 90   ;;  %vm931_vm8 = vcmask 441344   ;;  %vm961_vm9 = vcmask 433152   ;;  %vm10991_vm10 = vcmask 1022976   ;;  %vm10992_vm11 = vcmask 1031168  }
  0x15   : > { %11004 = sst [smem:[#allocation3_spill]] %s11106_s25  ;;  %s6838_s26 = smul.u32 44, %s11106_s25  ;;  %vm10993_vm12 = vcmask 457728   ;;  %vm10970_vm13 = vcmask 449536   ;;  %vm10963_vm14 = vcmask 719872   ;;  %vm601_vm15 = vcmask 1039360  }
  0x16   : > { %s10966_s1 = smov 92   ;;  %s10964_s20 = smov 93  }
  0x17   : > { %s10961_s21 = smov 126   ;;  %s10959_s22 = smov 125  }
  0x18   : > { %s7524_s0 = scalar_lea.vmem %s11005_s29, %s6838_s26  ;;  %s10957_s23 = smov 127  }
  0x19   : > { %v551_v0 = vld [vmem:[%s7524_s0 + $0x8] sm:$0xff]  ;;  %v550_v1 = vld [vmem:[%s7524_s0] sm:$0xff]  ;;  %s10949_s26 = smov 52   ;;  %s10947_s27 = smov 20   ;;  %v552_v6 = vld [vmem:[%s7524_s0 + $0x10] sm:$0xff] }
  0x1a   : > { %v7528_v2 = vcombine.high %v551_v0, %v551_v0  ;;  %v7530_v3 = vcombine.high %v550_v1, %v550_v1  ;;  %v7536_v4 = vcombine.low %v551_v0, %v551_v0  ;;  %v7574_v5 = vcombine.low %v550_v1, %v550_v1  ;;  %s10984_s28 = smov 54   ;;  %s10951_s29 = smov 53   ;;  %v553_v13 = vld [vmem:[%s7524_s0 + $0x18] sm:$0xff] }
  0x1b   : > { %v7637_v7 = vcombine.low %v552_v6, %v552_v6  ;;  %v7643_v8 = vcombine.high %v552_v6, %v552_v6  ;;  %v7680_v16 = vcombine.low %v553_v13, %v553_v13  ;;  %v7688_v19 = vcombine.high %v553_v13, %v553_v13  ;;  %s11024_s17 = smov 19   ;;  %s11029_s24 = smov 54  }
  0x1c   : > { %797 = vrot.lane.b32.xlu1 %v7528_v2, %s10971_s30  ;;  %793 = vrot.lane.b32.xlu0 %v7530_v3, %s10971_s30  ;;  %s11030_s25 = smov 56   ;;  %s11047_s2 = sld [smem:[#allocation11_spill]] }
  0x1d   : > { %s11048_s4 = sld [smem:[#allocation13_spill]] }
  0x1e   : > { %s11063_s3 = sld [smem:[#allocation12_spill]] }
  0x20   : > { %733 = vrot.lane.b32.xlu1 %v7530_v3, %s10968_s18  ;;  %795 = vrot.lane.b32.xlu0 %v7536_v4, %s10971_s30 }
  0x24   : > { %737 = vrot.lane.b32.xlu1 %v7528_v2, %s10968_s18  ;;  %735 = vrot.lane.b32.xlu0 %v7536_v4, %s10968_s18 }
  0x28   : > { %765 = vrot.lane.b32.xlu1 %v7536_v4, %s10955_s19  ;;  %763 = vrot.lane.b32.xlu0 %v7530_v3, %s10955_s19 }
  0x2c   : > { %703 = vrot.lane.b32.xlu1 %v7530_v3, %s10966_s1  ;;  %767 = vrot.lane.b32.xlu0 %v7528_v2, %s10955_s19 }
  0x30   : > { %707 = vrot.lane.b32.xlu1 %v7528_v2, %s10966_s1  ;;  %705 = vrot.lane.b32.xlu0 %v7536_v4, %s10966_s1 }
  0x34   : > { %1325 = vrot.lane.b32.xlu1 %v7536_v4, %s10964_s20  ;;  %1323 = vrot.lane.b32.xlu0 %v7530_v3, %s10964_s20 }
  0x38   : > { %613 = vrot.lane.b32.xlu1 %v7530_v3, %s10961_s21  ;;  %1327 = vrot.lane.b32.xlu0 %v7528_v2, %s10964_s20 }
  0x3c   : > { %617 = vrot.lane.b32.xlu1 %v7528_v2, %s10961_s21  ;;  %615 = vrot.lane.b32.xlu0 %v7536_v4, %s10961_s21 }
  0x40   : > { %645 = vrot.lane.b32.xlu1 %v7536_v4, %s10959_s22  ;;  %643 = vrot.lane.b32.xlu0 %v7530_v3, %s10959_s22 }
  0x44   : > { %647 = vrot.lane.b32.xlu0 %v7528_v2, %s10959_s22  ;;  %611 = vrot.lane.b32.xlu1 %v7574_v5, %s10961_s21 }
  0x48   : > { %641 = vrot.lane.b32.xlu0 %v7574_v5, %s10959_s22  ;;  %583 = vrot.lane.b32.xlu1 %v7530_v3, %s10957_s23 }
  0x4c   : > { %585 = vrot.lane.b32.xlu0 %v7536_v4, %s10957_s23  ;;  %587 = vrot.lane.b32.xlu1 %v7528_v2, %s10957_s23 }
  0x50   : > { %581 = vrot.lane.b32.xlu0 %v7574_v5, %s10957_s23  ;;  %973 = vrot.lane.b32.xlu1 %v7530_v3, %s10949_s26 }
  0x54   : > { %975 = vrot.lane.b32.xlu0 %v7536_v4, %s10949_s26  ;;  %1003 = vrot.lane.b32.xlu1 %v7530_v3, %s10947_s27 }
  0x58   : > { %1005 = vrot.lane.b32.xlu0 %v7536_v4, %s10947_s27  ;;  %971 = vrot.lane.b32.xlu1 %v7574_v5, %s10949_s26  ;;  %s10953_s26 = smov 55  }
  0x5c   : > { %1001 = vrot.lane.b32.xlu0 %v7574_v5, %s10947_s27  ;;  %913 = vrot.lane.b32.xlu1 %v7530_v3, %s10984_s28  ;;  %s10979_s27 = smov 56  }
  0x60   : > { %915 = vrot.lane.b32.xlu0 %v7536_v4, %s10984_s28  ;;  %943 = vrot.lane.b32.xlu1 %v7530_v3, %s10951_s29 }
  0x64   : > { %945 = vrot.lane.b32.xlu0 %v7536_v4, %s10951_s29  ;;  %911 = vrot.lane.b32.xlu1 %v7574_v5, %s10984_s28 }
  0x68   : > { %941 = vrot.lane.b32.xlu0 %v7574_v5, %s10951_s29  ;;  %853 = vrot.lane.b32.xlu1 %v7530_v3, %s10979_s27  ;;  %s10976_s29 = smov 88  }
  0x6c   : > { %855 = vrot.lane.b32.xlu0 %v7536_v4, %s10979_s27  ;;  %883 = vrot.lane.b32.xlu1 %v7530_v3, %s10953_s26 }
  0x70   : > { %885 = vrot.lane.b32.xlu0 %v7536_v4, %s10953_s26  ;;  %851 = vrot.lane.b32.xlu1 %v7574_v5, %s10979_s27 }
  0x74   : > { %881 = vrot.lane.b32.xlu0 %v7574_v5, %s10953_s26  ;;  %823 = vrot.lane.b32.xlu1 %v7530_v3, %s10976_s29  ;;  %s10974_s26 = smov 124  }
  0x78   : > { %825 = vrot.lane.b32.xlu0 %v7536_v4, %s10976_s29  ;;  %791 = vrot.lane.b32.xlu1 %v7574_v5, %s10971_s30 }
  0x7c   : > { %821 = vrot.lane.b32.xlu0 %v7574_v5, %s10976_s29  ;;  %731 = vrot.lane.b32.xlu1 %v7574_v5, %s10968_s18 }
  0x80   : > { %761 = vrot.lane.b32.xlu0 %v7574_v5, %s10955_s19  ;;  %799 = vrot.lane.b32.xlu1 %v7637_v7, %s10971_s30 }
  0x84   : > { %801 = vrot.lane.b32.xlu0 %v7643_v8, %s10971_s30  ;;  %673 = vrot.lane.b32.xlu1 %v7530_v3, %s10974_s26 }
  0x88   : > { %675 = vrot.lane.b32.xlu0 %v7536_v4, %s10974_s26  ;;  %671 = vrot.lane.b32.xlu1 %v7574_v5, %s10974_s26 }
  0x8c   : > { %701 = vrot.lane.b32.xlu0 %v7574_v5, %s10966_s1  ;;  %739 = vrot.lane.b32.xlu1 %v7637_v7, %s10968_s18 }
  0x8e   : > { %v7657_v9 = vpop.permute.xlu1 %797  ;;  %v7659_v10 = vpop.permute.xlu0 %793 }
  0x90   : > { %741 = vrot.lane.b32.xlu0 %v7643_v8, %s10968_s18  ;;  %769 = vrot.lane.b32.xlu1 %v7637_v7, %s10955_s19 }
  0x92   : > { %v7665_v11 = vpop.permute.xlu1 %733  ;;  %v796_v12 = vpop.permute.xlu0 %795 }
  0x93   : > { %v7760_v38 = vsel %vm811_vm0, %v7659_v10, %v796_v12  ;;  %v7764_v39 = vsel %vm811_vm0, %v796_v12, %v7657_v9 }
  0x94   : > { %771 = vrot.lane.b32.xlu0 %v7643_v8, %s10955_s19  ;;  %709 = vrot.lane.b32.xlu1 %v7637_v7, %s10966_s1 }
  0x96   : > { %v7672_v14 = vpop.permute.xlu1 %737  ;;  %v7674_v15 = vpop.permute.xlu0 %735 }
  0x97   : > { %v753_v46 = vsel %vm751_vm2, %v7665_v11, %v7674_v15  ;;  %v754_v47 = vsel %vm751_vm2, %v7674_v15, %v7672_v14 }
  0x98   : > { %711 = vrot.lane.b32.xlu0 %v7643_v8, %s10966_s1  ;;  %1329 = vrot.lane.b32.xlu1 %v7637_v7, %s10964_s20 }
  0x9a   : > { %v766_v17 = vpop.permute.xlu1 %765  ;;  %v7682_v18 = vpop.permute.xlu0 %763 }
  0x9b   : > { %v783_v45 = vsel %vm781_vm1, %v7682_v18, %v766_v17  ;;  %v1395_v59 = vsel %vm1031_vm3, %v7665_v11, %v7682_v18 }
  0x9c   : > { %1331 = vrot.lane.b32.xlu0 %v7643_v8, %s10964_s20  ;;  %803 = vrot.lane.b32.xlu1 %v7680_v16, %s10971_s30  ;;  %v7795_v50 = vsel %vm1031_vm3, %v753_v46, %v783_v45 }
  0x9e   : > { %v7690_v20 = vpop.permute.xlu1 %703  ;;  %v7692_v21 = vpop.permute.xlu0 %767 }
  0x9f   : > { %v784_v44 = vsel %vm781_vm1, %v766_v17, %v7692_v21 }
  0xa0   : > { %805 = vrot.lane.b32.xlu0 %v7688_v19, %s10971_s30  ;;  %619 = vrot.lane.b32.xlu1 %v7637_v7, %s10961_s21  ;;  %v7798_v51 = vsel %vm1031_vm3, %v754_v47, %v784_v44  ;;  %s11010_s30 = smov 55  }
  0xa2   : > { %v7698_v22 = vpop.permute.xlu1 %707  ;;  %v7700_v23 = vpop.permute.xlu0 %705 }
  0xa3   : > { %v7824_v62 = vsel %vm721_vm7, %v7690_v20, %v7700_v23  ;;  %v7839_v12 = vsel %vm721_vm7, %v7700_v23, %v7698_v22 }
  0xa4   : > { %621 = vrot.lane.b32.xlu0 %v7643_v8, %s10961_s21  ;;  %649 = vrot.lane.b32.xlu1 %v7637_v7, %s10959_s22 }
  0xa6   : > { %v7706_v24 = vpop.permute.xlu1 %1325  ;;  %v7708_v25 = vpop.permute.xlu0 %1323 }
  0xa7   : > { %v1344_v60 = vsel %vm1343_vm6, %v7708_v25, %v7706_v24 }
  0xa8   : > { %651 = vrot.lane.b32.xlu0 %v7643_v8, %s10959_s22  ;;  %743 = vrot.lane.b32.xlu1 %v7680_v16, %s10968_s18  ;;  %v1375_v1 = vsel %vm1031_vm3, %v1344_v60, %v7824_v62 }
  0xaa   : > { %v7714_v26 = vpop.permute.xlu1 %613  ;;  %v7716_v27 = vpop.permute.xlu0 %1327 }
  0xab   : > { %v1345_v6 = vsel %vm1343_vm6, %v7706_v24, %v7716_v27 }
  0xac   : > { %745 = vrot.lane.b32.xlu0 %v7688_v19, %s10968_s18  ;;  %773 = vrot.lane.b32.xlu1 %v7680_v16, %s10955_s19  ;;  %s11009_s18 = sld [smem:[#allocation10_spill]] }
  0xae   : > { %v7722_v28 = vpop.permute.xlu1 %617  ;;  %v7724_v29 = vpop.permute.xlu0 %615 }
  0xb0   : > { %775 = vrot.lane.b32.xlu0 %v7688_v19, %s10955_s19  ;;  %589 = vrot.lane.b32.xlu1 %v7637_v7, %s10957_s23  ;;  %s10988_s19 = smov 19  }
  0xb2   : > { %v7730_v30 = vpop.permute.xlu1 %645  ;;  %v7732_v31 = vpop.permute.xlu0 %643 }
  0xb4   : > { %591 = vrot.lane.b32.xlu0 %v7643_v8, %s10957_s23  ;;  %713 = vrot.lane.b32.xlu1 %v7680_v16, %s10966_s1 }
  0xb6   : > { %v7738_v32 = vpop.permute.xlu0 %647  ;;  %v7740_v33 = vpop.permute.xlu1 %611 }
  0xb8   : > { %715 = vrot.lane.b32.xlu0 %v7688_v19, %s10966_s1  ;;  %1333 = vrot.lane.b32.xlu1 %v7680_v16, %s10964_s20  ;;  %s11012_s1 = smov 89  }
  0xba   : > { %v7746_v34 = vpop.permute.xlu0 %641  ;;  %v7748_v35 = vpop.permute.xlu1 %583 }
  0xbc   : > { %1335 = vrot.lane.b32.xlu0 %v7688_v19, %s10964_s20  ;;  %1519 = vrot.lane.b32.xlu1 %v7659_v10, %s10988_s19  ;;  %s11013_s20 = smov 91  }
  0xbe   : > { %v7754_v36 = vpop.permute.xlu0 %585  ;;  %v7756_v37 = vpop.permute.xlu1 %587 }
  0xc0   : > { %1521 = vrot.lane.b32.xlu0 %v7760_v38, %s10988_s19  ;;  %1523 = vrot.lane.b32.xlu1 %v7764_v39, %s10988_s19 }
  0xc2   : > { %v7770_v40 = vpop.permute.xlu0 %581  ;;  %v974_v41 = vpop.permute.xlu1 %973 }
  0xc4   : > { %623 = vrot.lane.b32.xlu0 %v7680_v16, %s10961_s21  ;;  %625 = vrot.lane.b32.xlu1 %v7688_v19, %s10961_s21  ;;  %s11008_s21 = smov 53  }
  0xc6   : > { %v7776_v42 = vpop.permute.xlu0 %975  ;;  %v1004_v43 = vpop.permute.xlu1 %1003 }
  0xc7   : > { %v993_v52 = vsel %vm991_vm4, %v974_v41, %v7776_v42 }
  0xc8   : > { %653 = vrot.lane.b32.xlu0 %v7680_v16, %s10959_s22  ;;  %655 = vrot.lane.b32.xlu1 %v7688_v19, %s10959_s22  ;;  %s11007_s22 = smov 20  }
  0xca   : > { %v7792_v48 = vpop.permute.xlu0 %1005  ;;  %v972_v49 = vpop.permute.xlu1 %971 }
  0xcb   : > { %v1023_v53 = vsel %vm1021_vm5, %v1004_v43, %v7792_v48  ;;  %v992_v57 = vsel %vm991_vm4, %v972_v49, %v974_v41  ;;  %v1377_v41 = vsel %vm1031_vm3, %v1345_v6, %v7839_v12 }
  0xcc   : > { %1501 = vrot.lane.b32.xlu0 %v7795_v50, %s10988_s19  ;;  %1503 = vrot.lane.b32.xlu1 %v7798_v51, %s10988_s19  ;;  %v1290_v54 = vsel %vm1031_vm3, %v993_v52, %v1023_v53  ;;  %v663_v53 = vsel %vm10991_vm10, %v7732_v31, %v7730_v30 }
  0xcd   : > { %1691 = vmatprep.subr.bf16.mxu0 %v1290_v54  ;;  %v664_v54 = vsel %vm10991_vm10, %v7730_v30, %v7738_v32 }
  0xce   : > { %v1002_v55 = vpop.permute.xlu0 %1001  ;;  %v914_v56 = vpop.permute.xlu1 %913 }
  0xcf   : > { %v1022_v58 = vsel %vm1021_vm5, %v1002_v55, %v1004_v43  ;;  %v1373_v43 = vsel %vm1031_vm3, %v7708_v25, %v7690_v20  ;;  %v633_v55 = vsel %vm10992_vm11, %v7714_v26, %v7724_v29 }
  0xd0   : > { %1499 = vrot.lane.b32.xlu0 %v1395_v59, %s10988_s19  ;;  %593 = vrot.lane.b32.xlu1 %v7680_v16, %s10957_s23  ;;  %v1286_v61 = vsel %vm1031_vm3, %v992_v57, %v1022_v58  ;;  %v7887_v60 = vsel %vm1031_vm3, %v633_v55, %v663_v53  ;;  %v602_v53 = vsel %vm601_vm15, %v7770_v40, %v7748_v35 }
  0xd1   : > { %1692 = vmatpush1.bf16.msra.mxu0 %v1286_v61 }
  0xd2   : > { %v7826_v63 = vpop.permute.xlu0 %915  ;;  %v944_v0 = vpop.permute.xlu1 %943 }
  0xd3   : > { %v933_v17 = vsel %vm931_vm8, %v914_v56, %v7826_v63 }
  0xd4   : > { %595 = vrot.lane.b32.xlu0 %v7688_v19, %s10957_s23  ;;  %1481 = vrot.lane.b32.xlu1 %v1375_v1, %s10988_s19  ;;  %s11006_s23 = smov 52   ;;  %v632_v1 = vsel %vm10992_vm11, %v7740_v33, %v7714_v26 }
  0xd6   : > { %v7841_v13 = vpop.permute.xlu0 %945  ;;  %v912_v15 = vpop.permute.xlu1 %911 }
  0xd7   : > { %v963_v24 = vsel %vm961_vm9, %v944_v0, %v7841_v13  ;;  %v932_v46 = vsel %vm931_vm8, %v912_v15, %v914_v56  ;;  %v634_v56 = vsel %vm10992_vm11, %v7724_v29, %v7722_v28 }
  0xd8   : > { %1483 = vrot.lane.b32.xlu0 %v1377_v41, %s10988_s19  ;;  %1479 = vrot.lane.b32.xlu1 %v1373_v43, %s10988_s19  ;;  %v1254_v23 = vsel %vm1031_vm3, %v933_v17, %v963_v24  ;;  %v7890_v61 = vsel %vm1031_vm3, %v634_v56, %v664_v54  ;;  %v603_v43 = vsel %vm601_vm15, %v7748_v35, %v7754_v36 }
  0xd9   : > { %1693 = vmatprep.subr.bf16.mxu0 %v1254_v23  ;;  %v1034_v35 = vsel %vm1031_vm3, %v7574_v5, %v602_v53 }
  0xda   : > { %v942_v44 = vpop.permute.xlu0 %941  ;;  %v854_v45 = vpop.permute.xlu1 %853 }
  0xdb   : > { %v962_v47 = vsel %vm961_vm9, %v942_v44, %v944_v0  ;;  %v662_v0 = vsel %vm10991_vm10, %v7746_v34, %v7732_v31 }
  0xdc   : > { %977 = vrot.lane.b32.xlu0 %v7528_v2, %s11006_s23  ;;  %979 = vrot.lane.b32.xlu1 %v7637_v7, %s11006_s23  ;;  %v1250_v25 = vsel %vm1031_vm3, %v932_v46, %v962_v47  ;;  %v7906_v31 = vsel %vm1031_vm3, %v632_v1, %v662_v0 }
  0xdd   : > { %1694 = vmatpush1.bf16.msra.mxu0 %v1250_v25  ;;  %v1038_v25 = vsel %vm1031_vm3, %v7530_v3, %v603_v43 }
  0xde   : > { %v7862_v49 = vpop.permute.xlu0 %855  ;;  %v884_v52 = vpop.permute.xlu1 %883 }
  0xdf   : > { %v873_v30 = vsel %vm10993_vm12, %v854_v45, %v7862_v49 }
  0xe0   : > { %1007 = vrot.lane.b32.xlu0 %v7528_v2, %s11007_s22  ;;  %1009 = vrot.lane.b32.xlu1 %v7637_v7, %s11007_s22 }
  0xe2   : > { %v7880_v57 = vpop.permute.xlu0 %885  ;;  %v852_v58 = vpop.permute.xlu1 %851 }
  0xe3   : > { %v903_v59 = vsel %vm10970_vm13, %v884_v52, %v7880_v57  ;;  %v872_v17 = vsel %vm10993_vm12, %v852_v58, %v854_v45 }
  0xe4   : > { %1461 = vrot.lane.b32.xlu0 %v7887_v60, %s10988_s19  ;;  %1463 = vrot.lane.b32.xlu1 %v7890_v61, %s10988_s19  ;;  %v1218_v29 = vsel %vm1031_vm3, %v873_v30, %v903_v59 }
  0xe5   : > { %1695 = vmatprep.subr.bf16.mxu0 %v1218_v29 }
  0xe6   : > { %v882_v6 = vpop.permute.xlu0 %881  ;;  %v824_v15 = vpop.permute.xlu1 %823 }
  0xe7   : > { %v902_v24 = vsel %vm10970_vm13, %v882_v6, %v884_v52  ;;  %v604_v52 = vsel %vm601_vm15, %v7754_v36, %v7756_v37  ;;  %vm1657_vm13 = vcmask 588800  }
  0xe8   : > { %917 = vrot.lane.b32.xlu1 %v7528_v2, %s10984_s28  ;;  %1459 = vrot.lane.b32.xlu0 %v7906_v31, %s10988_s19  ;;  %v1214_v34 = vsel %vm1031_vm3, %v872_v17, %v902_v24  ;;  %v7952_v40 = vsel %vm1031_vm3, %v7536_v4, %v604_v52  ;;  %v7967_v4 = vld [vmem:[%s11009_s18 + $0x4] ss:$8 sps:$4 sm:$0xff]  }
  0xe9   : > { %1696 = vmatpush1.bf16.msra.mxu0 %v1214_v34  ;;  %6364 = vmatprep.mubr.msk.bf16.mxu0 %vm1657_vm13, %v7967_v4 }
  0xea   : > { %v7913_v26 = vpop.permute.xlu0 %825  ;;  %v792_v33 = vpop.permute.xlu1 %791  ;;  %6367 = vmatprep.mubr.msk.bf16.mxu1 %vm1657_vm13, %v7967_v4 }
  0xeb   : > { %v843_v41 = vsel %vm10963_vm14, %v824_v15, %v7913_v26  ;;  %v812_v46 = vsel %vm811_vm0, %v792_v33, %v7659_v10 }
  0xec   : > { %947 = vrot.lane.b32.xlu1 %v7528_v2, %s11008_s21  ;;  %919 = vrot.lane.b32.xlu0 %v7637_v7, %s10984_s28  ;;  %v1182_v23 = vsel %vm1031_vm3, %v7760_v38, %v843_v41 }
  0xed   : > { %1697 = vmatprep.subr.bf16.mxu0 %v1182_v23 }
  0xee   : > { %v822_v44 = vpop.permute.xlu0 %821  ;;  %v732_v45 = vpop.permute.xlu1 %731 }
  0xef   : > { %v842_v47 = vsel %vm10963_vm14, %v822_v44, %v824_v15  ;;  %v752_v36 = vsel %vm751_vm2, %v732_v45, %v7665_v11  ;;  %vm10973_vm14 = vcmask 1014784  }
  0xf0   : > { %949 = vrot.lane.b32.xlu0 %v7637_v7, %s11008_s21  ;;  %1441 = vrot.lane.b32.xlu1 %v1038_v25, %s10988_s19  ;;  %v1178_v10 = vsel %vm1031_vm3, %v812_v46, %v842_v47 }
  0xf1   : > { %1698 = vmatpush1.bf16.msra.mxu0 %v1178_v10 }
  0xf2   : > { %v762_v38 = vpop.permute.xlu0 %761  ;;  %1699 = vmatprep.subr.bf16.mxu0 %v7795_v50  ;;  %v7942_v3 = vpop.permute.xlu1 %799 }
  0xf3   : > { %v782_v54 = vsel %vm781_vm1, %v762_v38, %v7682_v18  ;;  %v8075_v38 = vsel %vm811_vm0, %v7657_v9, %v7942_v3 }
  0xf4   : > { %1439 = vrot.lane.b32.xlu1 %v1034_v35, %s10988_s19  ;;  %1443 = vrot.lane.b32.xlu0 %v7952_v40, %s10988_s19  ;;  %v1142_v50 = vsel %vm1031_vm3, %v752_v36, %v782_v54 }
  0xf5   : > { %1700 = vmatpush1.bf16.msra.mxu0 %v1142_v50 }
  0xf6   : > { %v7958_v55 = vpop.permute.xlu0 %801  ;;  %v674_v11 = vpop.permute.xlu1 %673 }
  0xf7   : > { %v8070_v10 = vsel %vm811_vm0, %v7942_v3, %v7958_v55 }
  0xf8   : > { %859 = vrot.lane.b32.xlu1 %v7637_v7, %s10979_s27  ;;  %857 = vrot.lane.b32.xlu0 %v7528_v2, %s10979_s27 }
  0xfa   : > { %v7969_v5 = vpop.permute.xlu0 %675  ;;  %v672_v18 = vpop.permute.xlu1 %671 }
  0xfb   : > { %v693_v56 = vsel %vm10973_vm14, %v674_v11, %v7969_v5  ;;  %v692_v0 = vsel %vm10973_vm14, %v672_v18, %v674_v11  ;;  %vm1539_vm14 = vcmask 154624  }
  0xfc   : > { %889 = vrot.lane.b32.xlu1 %v7637_v7, %s11010_s30  ;;  %887 = vrot.lane.b32.xlu0 %v7528_v2, %s11010_s30  ;;  %v1110_v58 = vsel %vm1031_vm3, %v693_v56, %v7824_v62 }
  0xfd   : > { %1701 = vmatprep.subr.bf16.mxu0 %v1110_v58 }
  0xfe   : > { %v702_v30 = vpop.permute.xlu0 %701  ;;  %v740_v59 = vpop.permute.xlu1 %739 }
  0xff   : > { %v722_v29 = vsel %vm721_vm7, %v702_v30, %v7690_v20  ;;  %v755_v50 = vsel %vm751_vm2, %v7672_v14, %v740_v59 }
 0x100   : > { %983 = vrot.lane.b32.xlu1 %v7680_v16, %s11006_s23  ;;  %981 = vrot.lane.b32.xlu0 %v7643_v8, %s11006_s23  ;;  %v1106_v1 = vsel %vm1031_vm3, %v692_v0, %v722_v29 }
 0x101   : > { %1702 = vmatpush1.bf16.msra.mxu0 %v1106_v1 }
 0x102   : > { %v7991_v6 = vpop.permute.xlu0 %741  ;;  %1703 = vmatprep.subr.bf16.mxu0 %v7887_v60  ;;  %v770_v62 = vpop.permute.xlu1 %769 }
 0x103   : > { %v785_v36 = vsel %vm781_vm1, %v7692_v21, %v770_v62  ;;  %v756_v9 = vsel %vm751_vm2, %v740_v59, %v7991_v6 }
 0x104   : > { %1013 = vrot.lane.b32.xlu1 %v7680_v16, %s11007_s22  ;;  %1011 = vrot.lane.b32.xlu0 %v7643_v8, %s11007_s22  ;;  %v8098_v18 = vsel %vm1031_vm3, %v755_v50, %v785_v36 }
 0x105   : > { %1704 = vmatpush1.bf16.msra.mxu0 %v7906_v31 }
 0x106   : > { %v7999_v20 = vpop.permute.xlu0 %771  ;;  %1705 = vmatprep.subr.bf16.mxu0 %v1038_v25  ;;  %v8001_v15 = vpop.permute.xlu1 %709 }
 0x107   : > { %v786_v54 = vsel %vm781_vm1, %v770_v62, %v7999_v20 }
 0x108   : > { %829 = vrot.lane.b32.xlu1 %v7637_v7, %s10976_s29  ;;  %827 = vrot.lane.b32.xlu0 %v7528_v2, %s10976_s29  ;;  %v8095_v21 = vsel %vm1031_vm3, %v756_v9, %v786_v54  ;;  %v8142_v9 = vsel %vm721_vm7, %v7698_v22, %v8001_v15 }
 0x109   : > { %1706 = vmatpush1.bf16.msra.mxu0 %v1034_v35  ;;  %v554_v35 = vld [vmem:[%s7524_s0 + $0x20] sm:$0xff] }
 0x10a   : > { %v8007_v60 = vpop.permute.xlu0 %711  ;;  %v8009_v17 = vpop.permute.xlu1 %1329  ;;  %v8104_v14 = vcombine.high %v554_v35, %v554_v35  ;;  %v8106_v56 = vcombine.low %v554_v35, %v554_v35 }
 0x10b   : > { %v1346_v35 = vsel %vm1343_vm6, %v7716_v27, %v8009_v17 }
 0x10c   : > { %923 = vrot.lane.b32.xlu1 %v7680_v16, %s10984_s28  ;;  %921 = vrot.lane.b32.xlu0 %v7643_v8, %s10984_s28  ;;  %s11021_s28 = smov 126  }
 0x10e   : > { %v8015_v24 = vpop.permute.xlu0 %1331  ;;  %v8017_v31 = vpop.permute.xlu1 %803 }
 0x10f   : > { %v1347_v50 = vsel %vm1343_vm6, %v8009_v17, %v8015_v24 }
 0x110   : > { %951 = vrot.lane.b32.xlu0 %v7643_v8, %s11008_s21  ;;  %953 = vrot.lane.b32.xlu1 %v7680_v16, %s11008_s21 }
 0x112   : > { %v8023_v34 = vpop.permute.xlu0 %805  ;;  %v8025_v33 = vpop.permute.xlu1 %619 }
 0x113   : > { %11011 = vst [vmem:[#allocation4_spill] sm:$0xff] %v8023_v34 }
 0x114   : > { %861 = vrot.lane.b32.xlu0 %v7643_v8, %s10979_s27  ;;  %863 = vrot.lane.b32.xlu1 %v7680_v16, %s10979_s27  ;;  %s11019_s27 = smov 93  }
 0x116   : > { %v8031_v41 = vpop.permute.xlu0 %621  ;;  %v8033_v43 = vpop.permute.xlu1 %649 }
 0x118   : > { %891 = vrot.lane.b32.xlu0 %v7643_v8, %s11010_s30  ;;  %893 = vrot.lane.b32.xlu1 %v7680_v16, %s11010_s30 }
 0x11a   : > { %v8039_v23 = vpop.permute.xlu0 %651  ;;  %v8041_v44 = vpop.permute.xlu1 %743 }
 0x11c   : > { %677 = vrot.lane.b32.xlu0 %v7528_v2, %s10974_s26  ;;  %679 = vrot.lane.b32.xlu1 %v7637_v7, %s10974_s26 }
 0x11e   : > { %v8047_v45 = vpop.permute.xlu0 %745  ;;  %v8049_v46 = vpop.permute.xlu1 %773 }
 0x120   : > { %831 = vrot.lane.b32.xlu0 %v7643_v8, %s10976_s29  ;;  %833 = vrot.lane.b32.xlu1 %v7680_v16, %s10976_s29  ;;  %s11018_s29 = smov 92  }
 0x122   : > { %v8055_v47 = vpop.permute.xlu0 %775  ;;  %v8057_v25 = vpop.permute.xlu1 %589 }
 0x124   : > { %681 = vrot.lane.b32.xlu0 %v7643_v8, %s10974_s26  ;;  %683 = vrot.lane.b32.xlu1 %v7680_v16, %s10974_s26  ;;  %s11014_s26 = smov 90  }
 0x126   : > { %v8063_v52 = vpop.permute.xlu0 %591  ;;  %v8065_v53 = vpop.permute.xlu1 %713 }
 0x128   : > { %1527 = vrot.lane.b32.xlu1 %v8070_v10, %s10988_s19  ;;  %1525 = vrot.lane.b32.xlu0 %v8075_v38, %s10988_s19 }
 0x12a   : > { %v8090_v3 = vpop.permute.xlu0 %715  ;;  %v8092_v11 = vpop.permute.xlu1 %1333 }
 0x12c   : > { %1507 = vrot.lane.b32.xlu1 %v8095_v21, %s10988_s19  ;;  %1505 = vrot.lane.b32.xlu0 %v8098_v18, %s10988_s19 }
 0x12e   : > { %v8108_v58 = vpop.permute.xlu0 %1335  ;;  %v1520_v30 = vpop.permute.xlu1 %1519 }
 0x130   : > { %809 = vrot.lane.b32.xlu1 %v8104_v14, %s11012_s1  ;;  %807 = vrot.lane.b32.xlu0 %v8106_v56, %s11012_s1 }
 0x132   : > { %v1522_v59 = vpop.permute.xlu0 %1521  ;;  %v8114_v0 = vpop.permute.xlu1 %1523 }
 0x133   : > { %v1577_v29 = vsel %vm1539_vm14, %v1522_v59, %v8114_v0  ;;  %v1576_v1 = vsel %vm1539_vm14, %v1520_v30, %v1522_v59  ;;  %v8147_v30 = vsel %vm721_vm7, %v8001_v15, %v8007_v60  ;;  %v8164_v15 = vsel %vm811_vm0, %v8017_v31, %v8023_v34 }
 0x134   : > { %749 = vrot.lane.b32.xlu1 %v8104_v14, %s11013_s20  ;;  %747 = vrot.lane.b32.xlu0 %v8106_v56, %s11013_s20  ;;  %v1665_v62 = vsel %vm1031_vm3, %v1576_v1, 0  ;;  %11015 = vst [vmem:[#allocation5_spill] sm:$0xff] %v8147_v30  ;;  %v1381_v17 = vsel %vm1031_vm3, %v1347_v50, %v8147_v30  ;;  %11017 = vst [vmem:[#allocation7_spill] sm:$0xff] %v8164_v15 }
 0x135   : > { %6363 = vmatprep.subr.msk.bf16.mxu0 %vm1031_vm3, %v1577_v29  ;;  %v1379_v29 = vsel %vm1031_vm3, %v1346_v35, %v8142_v9 }
 0x136   : > { %1714 = vmatpush2.bf16.msra.mxu0 %v1665_v62  ;;  %v8125_v36 = vpop.permute.xlu0 %623  ;;  %v8127_v54 = vpop.permute.xlu1 %625  ;;  %v8169_v62 = vsel %vm811_vm0, %v7958_v55, %v8017_v31 }
 0x138   : > { %779 = vrot.lane.b32.xlu1 %v8104_v14, %s11014_s26  ;;  %777 = vrot.lane.b32.xlu0 %v8106_v56, %s11014_s26 }
 0x13a   : > { %v8149_v27 = vpop.permute.xlu0 %653  ;;  %v8151_v59 = vpop.permute.xlu1 %655 }
 0x13c   : > { %1487 = vrot.lane.b32.xlu1 %v1381_v17, %s10988_s19  ;;  %1485 = vrot.lane.b32.xlu0 %v1379_v29, %s10988_s19 }
 0x13e   : > { %v1502_v22 = vpop.permute.xlu0 %1501  ;;  %v8159_v1 = vpop.permute.xlu1 %1503 }
 0x13f   : > { %11016 = vst [vmem:[#allocation6_spill] sm:$0xff] %v8159_v1  ;;  %v1568_v35 = vsel %vm1539_vm14, %v1502_v22, %v8159_v1 }
 0x140   : > { %1531 = vrot.lane.b32.xlu1 %v8164_v15, %s10988_s19  ;;  %1529 = vrot.lane.b32.xlu0 %v8169_v62, %s10988_s19  ;;  %v665_v15 = vsel %vm10991_vm10, %v7738_v32, %v8033_v43 }
 0x141   : > { %1715 = vmatprep.subr.bf16.mxu0 %v1568_v35  ;;  %v666_v35 = vsel %vm10991_vm10, %v8033_v43, %v8039_v23 }
 0x142   : > { %v1500_v50 = vpop.permute.xlu0 %1499  ;;  %v8177_v17 = vpop.permute.xlu1 %593 }
 0x143   : > { %v1567_v29 = vsel %vm1539_vm14, %v1500_v50, %v1502_v22  ;;  %v635_v22 = vsel %vm10992_vm11, %v7722_v28, %v8025_v33  ;;  %v636_v50 = vsel %vm10992_vm11, %v8025_v33, %v8031_v41  ;;  %v787_v28 = vsel %vm781_vm1, %v7999_v20, %v8049_v46 }
 0x144   : > { %719 = vrot.lane.b32.xlu1 %v8104_v14, %s11018_s29  ;;  %717 = vrot.lane.b32.xlu0 %v8106_v56, %s11018_s29  ;;  %v8205_v34 = vsel %vm1031_vm3, %v636_v50, %v666_v35  ;;  %v8208_v43 = vsel %vm1031_vm3, %v635_v22, %v665_v15  ;;  %v788_v33 = vsel %vm781_vm1, %v8049_v46, %v8055_v47 }
 0x145   : > { %1716 = vmatpush2.bf16.msra.mxu0 %v1567_v29  ;;  %v757_v15 = vsel %vm751_vm2, %v7991_v6, %v8041_v44  ;;  %v8242_v6 = vld [vmem:[%s7524_s0 + $0x28] ss:$0 sps:$4 sm:$0xff]   ;;  %s11022_s0 = smov 125  }
 0x146   : > { %v8184_v55 = vpop.permute.xlu0 %595  ;;  %v1482_v31 = vpop.permute.xlu1 %1481  ;;  %v8235_v22 = vsel %vm1031_vm3, %v757_v15, %v787_v28 }
 0x148   : > { %1339 = vrot.lane.b32.xlu1 %v8104_v14, %s11019_s27  ;;  %1337 = vrot.lane.b32.xlu0 %v8106_v56, %s11019_s27 }
 0x14a   : > { %v8202_v29 = vpop.permute.xlu0 %1483  ;;  %v1480_v32 = vpop.permute.xlu1 %1479 }
 0x14b   : > { %v1559_v1 = vsel %vm1539_vm14, %v1482_v31, %v8202_v29  ;;  %v1558_v30 = vsel %vm1539_vm14, %v1480_v32, %v1482_v31  ;;  %v758_v31 = vsel %vm751_vm2, %v8041_v44, %v8047_v45 }
 0x14c   : > { %1467 = vrot.lane.b32.xlu1 %v8205_v34, %s10988_s19  ;;  %1465 = vrot.lane.b32.xlu0 %v8208_v43, %s10988_s19  ;;  %v8232_v46 = vsel %vm1031_vm3, %v758_v31, %v788_v33 }
 0x14d   : > { %1717 = vmatprep.subr.bf16.mxu0 %v1559_v1  ;;  %11020 = vst [vmem:[#allocation8_spill] sm:$0xff] %v8232_v46 }
 0x14e   : > { %1718 = vmatpush2.bf16.msra.mxu0 %v1558_v30  ;;  %v978_v20 = vpop.permute.xlu0 %977  ;;  %v8229_v35 = vpop.permute.xlu1 %979 }
 0x14f   : > { %v995_v30 = vsel %vm991_vm4, %v978_v20, %v8229_v35  ;;  %v994_v32 = vsel %vm991_vm4, %v7776_v42, %v978_v20 }
 0x150   : > { %1511 = vrot.lane.b32.xlu1 %v8232_v46, %s10988_s19  ;;  %1509 = vrot.lane.b32.xlu0 %v8235_v22, %s10988_s19 }
 0x152   : > { %v1008_v1 = vpop.permute.xlu0 %1007  ;;  %v8244_v44 = vpop.permute.xlu1 %1009 }
 0x153   : > { %v1025_v50 = vsel %vm1021_vm5, %v1008_v1, %v8244_v44  ;;  %v1024_v28 = vsel %vm1021_vm5, %v7792_v48, %v1008_v1  ;;  %v605_v48 = vsel %vm601_vm15, %v7756_v37, %v8057_v25  ;;  %v1348_v37 = vsel %vm1343_vm6, %v8015_v24, %v8092_v11 }
 0x154   : > { %627 = vrot.lane.b32.xlu1 %v8106_v56, %s11021_s28  ;;  %1362 = vrot.lane.b32.xlu0 %v8242_v6, %s11012_s1  ;;  %v1298_v33 = vsel %vm1031_vm3, %v995_v30, %v1025_v50  ;;  %v1294_v15 = vsel %vm1031_vm3, %v994_v32, %v1024_v28  ;;  %v8273_v30 = vsel %vm1031_vm3, %v7528_v2, %v605_v48  ;;  %s7412_s1 = smov 67  }
 0x155   : > { %1742 = vmatprep.subr.bf16.mxu1 %v1298_v33  ;;  %v606_v32 = vsel %vm601_vm15, %v8057_v25, %v8063_v52  ;;  %v8289_v2 = vsel %vm721_vm7, %v8007_v60, %v8065_v53  ;;  %v8308_v60 = vsel %vm721_vm7, %v8065_v53, %v8090_v3 }
 0x156   : > { %v1462_v31 = vpop.permute.xlu0 %1461  ;;  %1743 = vmatpush1.bf16.msra.mxu1 %v1294_v15  ;;  %v8260_v46 = vpop.permute.xlu1 %1463  ;;  %v8295_v25 = vsel %vm1031_vm3, %v7637_v7, %v606_v32  ;;  %v1383_v24 = vsel %vm1031_vm3, %v1348_v37, %v8289_v2  ;;  %v1349_v15 = vsel %vm1343_vm6, %v8092_v11, %v8108_v58 }
 0x157   : > { %v1550_v42 = vsel %vm1539_vm14, %v1462_v31, %v8260_v46 }
 0x158   : > { %657 = vrot.lane.b32.xlu1 %v8106_v56, %s11022_s0  ;;  %629 = vrot.lane.b32.xlu0 %v8104_v14, %s11021_s28 }
 0x159   : > { %1719 = vmatprep.subr.bf16.mxu0 %v1550_v42 }
 0x15a   : > { %v1460_v20 = vpop.permute.xlu0 %1459  ;;  %v918_v1 = vpop.permute.xlu1 %917 }
 0x15b   : > { %v1549_v50 = vsel %vm1539_vm14, %v1460_v20, %v1462_v31  ;;  %v1385_v20 = vsel %vm1031_vm3, %v1349_v15, %v8308_v60  ;;  %v8345_v15 = vld [vmem:[%s11009_s18] ss:$8 sps:$4 sm:$0xff]  }
 0x15c   : > { %659 = vrot.lane.b32.xlu0 %v8104_v14, %s11022_s0  ;;  %1445 = vrot.lane.b32.xlu1 %v8273_v30, %s10988_s19 }
 0x15d   : > { %1720 = vmatpush2.bf16.msra.mxu0 %v1549_v50  ;;  %v934_v50 = vsel %vm931_vm8, %v7826_v63, %v918_v1  ;;  %v1623_v63 = vld [vmem:[%s11009_s18 + $0x10] sm:$0xff] }
 0x15e   : > { %v8291_v28 = vpop.permute.xlu0 %919  ;;  %v948_v33 = vpop.permute.xlu1 %947 }
 0x15f   : > { %v964_v7 = vsel %vm961_vm9, %v7841_v13, %v948_v33  ;;  %v935_v48 = vsel %vm931_vm8, %v918_v1, %v8291_v28  ;;  %v667_v1 = vsel %vm10991_vm10, %v8039_v23, %v8149_v27  ;;  %v8352_v23 = vcombine.high %v1623_v63, %v1623_v63 }
 0x160   : > { %1447 = vrot.lane.b32.xlu0 %v8295_v25, %s10988_s19  ;;  %1489 = vrot.lane.b32.xlu1 %v1383_v24, %s10988_s19  ;;  %v1258_v53 = vsel %vm1031_vm3, %v934_v50, %v964_v7  ;;  %v637_v7 = vsel %vm10992_vm11, %v8031_v41, %v8125_v36  ;;  %v638_v41 = vsel %vm10992_vm11, %v8125_v36, %v8127_v54 }
 0x162   : > { %v8312_v31 = vpop.permute.xlu0 %949  ;;  %v1442_v42 = vpop.permute.xlu1 %1441 }
 0x163   : > { %v965_v11 = vsel %vm961_vm9, %v948_v33, %v8312_v31 }
 0x164   : > { %1491 = vrot.lane.b32.xlu0 %v1385_v20, %s10988_s19  ;;  %1356 = vrot.lane.b32.xlu1 %v8242_v6, %s11013_s20  ;;  %v1262_v13 = vsel %vm1031_vm3, %v935_v48, %v965_v11  ;;  %s11023_s19 = smov 127   ;;  %v668_v11 = vsel %vm10991_vm10, %v8149_v27, %v8151_v59  ;;  %v8358_v20 = vsel %vm1031_vm3, %v637_v7, %v667_v1  ;;  %vm11025_vm10 = vcmask 449536  }
 0x165   : > { %1744 = vmatprep.subr.bf16.mxu1 %v1262_v13  ;;  %vm11026_vm11 = vmmov %vm11025_vm10  ;;  %v8392_v7 = vcombine.low %v1623_v63, %v1623_v63 }
 0x166   : > { %v8327_v32 = vpop.permute.xlu0 %1443  ;;  %1745 = vmatpush1.bf16.msra.mxu1 %v1258_v53  ;;  %v1440_v37 = vpop.permute.xlu1 %1439  ;;  %v8373_v53 = vsel %vm1031_vm3, %v638_v41, %v668_v11 }
 0x167   : > { %v1541_v33 = vsel %vm1539_vm14, %v1442_v42, %v8327_v32  ;;  %v1540_v24 = vsel %vm1539_vm14, %v1440_v37, %v1442_v42 }
 0x168   : > { %1359 = vrot.lane.b32.xlu0 %v8242_v6, %s11014_s26  ;;  %597 = vrot.lane.b32.xlu1 %v8106_v56, %s11023_s19 }
 0x169   : > { %1721 = vmatprep.subr.bf16.mxu0 %v1541_v33 }
 0x16a   : > { %1722 = vmatpush2.bf16.msra.mxu0 %v1540_v24  ;;  %v858_v42 = vpop.permute.xlu0 %857  ;;  %v8350_v48 = vpop.permute.xlu1 %859 }
 0x16b   : > { %v874_v50 = vsel %vm10993_vm12, %v7862_v49, %v858_v42  ;;  %v875_v37 = vsel %vm10993_vm12, %v858_v42, %v8350_v48  ;;  %v607_v49 = vsel %vm601_vm15, %v8063_v52, %v8177_v17  ;;  %v608_v52 = vsel %vm601_vm15, %v8177_v17, %v8184_v55 }
 0x16c   : > { %599 = vrot.lane.b32.xlu0 %v8104_v14, %s11023_s19  ;;  %1469 = vrot.lane.b32.xlu1 %v8358_v20, %s11024_s17  ;;  %v8403_v41 = vsel %vm1031_vm3, %v7643_v8, %v607_v49 }
 0x16d   : > { %1724 = vmatmul.mubr.bf16.vlgmr.msra.gmra.mxu0 %v8345_v15 }
 0x16e   : > { %v888_v13 = vpop.permute.xlu0 %887  ;;  %v8370_v27 = vpop.permute.xlu1 %889  ;;  %6365 = vmatprep.mubr.msk.bf16.mxu0 %vm1657_vm13, %v8352_v23 }
 0x16f   : > { %v904_v36 = vsel %vm11025_vm10, %v7880_v57, %v888_v13  ;;  %v905_v33 = vsel %vm11026_vm11, %v888_v13, %v8370_v27  ;;  %v7400_v57 = vmov 0   ;;  %v8414_v13 = vsel %vm1031_vm3, %v7680_v16, %v608_v52 }
 0x170   : > { %1341 = vrot.lane.b32.xlu1 %v8242_v6, %s11019_s27  ;;  %1471 = vrot.lane.b32.xlu0 %v8373_v53, %s11024_s17  ;;  %v1226_v24 = vsel %vm1031_vm3, %v875_v37, %v905_v33  ;;  %v1222_v1 = vsel %vm1031_vm3, %v874_v50, %v904_v36  ;;  %vm11027_vm10 = vcmask 719872   ;;  %s7405_s27 = smov 106  }
 0x171   : > { %1746 = vmatprep.subr.bf16.mxu1 %v1226_v24  ;;  %6885 = vset.pattern.permute.xlu1 %v7400_v57  ;;  %vm11028_vm11 = vmmov %vm11027_vm10 }
 0x172   : > { %v982_v42 = vpop.permute.xlu0 %981  ;;  %1747 = vmatpush1.bf16.msra.mxu1 %v1222_v1  ;;  %v8395_v11 = vpop.permute.xlu1 %983  ;;  %6884 = vset.pattern.permute.xlu0 %v7400_v57 }
 0x173   : > { %v996_v8 = vsel %vm991_vm4, %v8229_v35, %v982_v42  ;;  %v997_v17 = vsel %vm991_vm4, %v982_v42, %v8395_v11 }
 0x174   : > { %1353 = vrot.lane.b32.xlu0 %v8242_v6, %s11018_s29  ;;  %1449 = vrot.lane.b32.xlu1 %v8403_v41, %s11024_s17 }
 0x175   : > { %1734 = vmatmul.mubr.bf16.gmra.mxu0 %v8392_v7 }
 0x176   : > { %v1012_v63 = vpop.permute.xlu0 %1011  ;;  %v8410_v50 = vpop.permute.xlu1 %1013  ;;  %6370 = vmatprep.mubr.msk.bf16.mxu0 %vm1657_vm13, %v7967_v4 }
 0x177   : > { %v1026_v6 = vsel %vm1021_vm5, %v8244_v44, %v1012_v63  ;;  %v1027_v37 = vsel %vm1021_vm5, %v1012_v63, %v8410_v50 }
 0x178   : > { %1451 = vrot.lane.b32.xlu0 %v8414_v13, %s11024_s17  ;;  %985 = vrot.lane.b32.xlu1 %v7688_v19, %s11006_s23  ;;  %v1306_v16 = vsel %vm1031_vm3, %v997_v17, %v1027_v37  ;;  %v1302_v36 = vsel %vm1031_vm3, %v996_v8, %v1026_v6 }
 0x179   : > { %1793 = vmatprep.subr.bf16.mxu0 %v1306_v16 }
 0x17a   : > { %v828_v35 = vpop.permute.xlu0 %827  ;;  %1794 = vmatpush1.bf16.msra.mxu0 %v1302_v36  ;;  %v830_v33 = vpop.permute.xlu1 %829 }
 0x17b   : > { %v844_v44 = vsel %vm11027_vm10, %v7913_v26, %v828_v35  ;;  %v845_v49 = vsel %vm11028_vm11, %v828_v35, %v830_v33  ;;  %vm11031_vm10 = vcmask 449536  }
 0x17c   : > { %987 = vrot.lane.b32.xlu0 %v8106_v56, %s11006_s23  ;;  %1015 = vrot.lane.b32.xlu1 %v7688_v19, %s11007_s22  ;;  %v1190_v24 = vsel %vm1031_vm3, %v8075_v38, %v845_v49  ;;  %v1186_v1 = vsel %vm1031_vm3, %v7764_v39, %v844_v44  ;;  %vm11032_vm11 = vmmov %vm11031_vm10 }
 0x17d   : > { %1748 = vmatprep.subr.bf16.mxu1 %v1190_v24 }
 0x17e   : > { %v922_v42 = vpop.permute.xlu0 %921  ;;  %1749 = vmatpush1.bf16.msra.mxu1 %v1186_v1  ;;  %v8443_v52 = vpop.permute.xlu1 %923 }
 0x17f   : > { %1750 = vmatprep.subr.bf16.mxu1 %v8098_v18  ;;  %v936_v39 = vsel %vm931_vm8, %v8291_v28, %v922_v42  ;;  %v937_v63 = vsel %vm931_vm8, %v922_v42, %v8443_v52 }
 0x180   : > { %1017 = vrot.lane.b32.xlu0 %v8106_v56, %s11007_s22  ;;  %925 = vrot.lane.b32.xlu1 %v7688_v19, %s11029_s24 }
 0x182   : > { %v952_v26 = vpop.permute.xlu0 %951  ;;  %1751 = vmatpush1.bf16.msra.mxu1 %v7798_v51  ;;  %v8451_v38 = vpop.permute.xlu1 %953 }
 0x183   : > { %v966_v18 = vsel %vm961_vm9, %v8312_v31, %v952_v26  ;;  %v967_v8 = vsel %vm961_vm9, %v952_v26, %v8451_v38 }
 0x184   : > { %927 = vrot.lane.b32.xlu0 %v8106_v56, %s11029_s24  ;;  %955 = vrot.lane.b32.xlu1 %v7688_v19, %s11008_s21  ;;  %v1270_v51 = vsel %vm1031_vm3, %v937_v63, %v967_v8  ;;  %v1266_v17 = vsel %vm1031_vm3, %v936_v39, %v966_v18 }
 0x185   : > { %1795 = vmatprep.subr.bf16.mxu0 %v1270_v51 }
 0x186   : > { %v862_v28 = vpop.permute.xlu0 %861  ;;  %1796 = vmatpush1.bf16.msra.mxu0 %v1266_v17  ;;  %v8467_v6 = vpop.permute.xlu1 %863 }
 0x187   : > { %v876_v16 = vsel %vm10993_vm12, %v8350_v48, %v862_v28  ;;  %v877_v36 = vsel %vm10993_vm12, %v862_v28, %v8467_v6  ;;  %vm11033_vm12 = vcmask 1014784  }
 0x188   : > { %957 = vrot.lane.b32.xlu0 %v8106_v56, %s11008_s21  ;;  %865 = vrot.lane.b32.xlu1 %v7688_v19, %s11030_s25 }
 0x18a   : > { %v892_v31 = vpop.permute.xlu0 %891  ;;  %v8473_v37 = vpop.permute.xlu1 %893 }
 0x18b   : > { %v906_v35 = vsel %vm11031_vm10, %v8370_v27, %v892_v31  ;;  %v907_v44 = vsel %vm11032_vm11, %v892_v31, %v8473_v37  ;;  %vm11034_vm10 = vmmov %vm11033_vm12 }
 0x18c   : > { %867 = vrot.lane.b32.xlu0 %v8106_v56, %s11030_s25  ;;  %895 = vrot.lane.b32.xlu1 %v7688_v19, %s11010_s30  ;;  %v1234_v49 = vsel %vm1031_vm3, %v877_v36, %v907_v44  ;;  %v1230_v24 = vsel %vm1031_vm3, %v876_v16, %v906_v35  ;;  %v11041_v16 = vld [vmem:[#allocation6_spill] sm:$0xff] }
 0x18d   : > { %1797 = vmatprep.subr.bf16.mxu0 %v1234_v49 }
 0x18e   : > { %v678_v48 = vpop.permute.xlu0 %677  ;;  %1798 = vmatpush1.bf16.msra.mxu0 %v1230_v24  ;;  %v680_v1 = vpop.permute.xlu1 %679  ;;  %v11042_v24 = vld [vmem:[#allocation4_spill] sm:$0xff] }
 0x18f   : > { %v694_v27 = vsel %vm11033_vm12, %v7969_v5, %v678_v48  ;;  %v695_v42 = vsel %vm11034_vm10, %v678_v48, %v680_v1  ;;  %vm11035_vm12 = vcmask 719872  }
 0x190   : > { %897 = vrot.lane.b32.xlu0 %v8106_v56, %s11010_s30  ;;  %989 = vrot.lane.b32.xlu1 %v8104_v14, %s11006_s23  ;;  %v1118_v26 = vsel %vm1031_vm3, %v695_v42, %v8142_v9  ;;  %v1114_v39 = vsel %vm1031_vm3, %v694_v27, %v7839_v12  ;;  %vm11036_vm11 = vmmov %vm11035_vm12  ;;  %s11037_s23 = smov 88  }
 0x191   : > { %1752 = vmatprep.subr.bf16.mxu1 %v1118_v26 }
 0x192   : > { %v832_v63 = vpop.permute.xlu0 %831  ;;  %1753 = vmatpush1.bf16.msra.mxu1 %v1114_v39  ;;  %v8500_v18 = vpop.permute.xlu1 %833 }
 0x193   : > { %v846_v5 = vsel %vm11035_vm12, %v830_v33, %v832_v63  ;;  %v847_v8 = vsel %vm11036_vm11, %v832_v63, %v8500_v18  ;;  %1754 = vmatprep.subr.bf16.mxu1 %v8208_v43  ;;  %vm11038_vm12 = vmmov %vm11034_vm10  ;;  %vm11043_vm11 = vcmask 1031168  }
 0x194   : > { %1019 = vrot.lane.b32.xlu0 %v8104_v14, %s11007_s22  ;;  %835 = vrot.lane.b32.xlu1 %v7688_v19, %s11037_s23  ;;  %v1198_v12 = vsel %vm1031_vm3, %v8169_v62, %v847_v8  ;;  %v1194_v9 = vsel %vm1031_vm3, %v8070_v10, %v846_v5  ;;  %s10994_s22 = smov 37  }
 0x195   : > { %1799 = vmatprep.subr.bf16.mxu0 %v1198_v12 }
 0x196   : > { %v682_v51 = vpop.permute.xlu0 %681  ;;  %1755 = vmatpush1.bf16.msra.mxu1 %v7890_v61  ;;  %1800 = vmatpush1.bf16.msra.mxu0 %v1194_v9  ;;  %v8515_v33 = vpop.permute.xlu1 %683 }
 0x197   : > { %v697_v43 = vsel %vm11034_vm10, %v682_v51, %v8515_v33  ;;  %1756 = vmatprep.subr.bf16.mxu1 %v8273_v30  ;;  %1801 = vmatprep.subr.bf16.mxu0 %v8235_v22  ;;  %v696_v10 = vsel %vm11038_vm12, %v680_v1, %v682_v51  ;;  %vm11044_vm10 = vcmask 1022976   ;;  %vm11045_vm12 = vmmov %vm11043_vm11 }
 0x198   : > { %837 = vrot.lane.b32.xlu0 %v8106_v56, %s11037_s23  ;;  %929 = vrot.lane.b32.xlu1 %v8104_v14, %s11029_s24  ;;  %v1126_v17 = vsel %vm1031_vm3, %v697_v43, %v8289_v2 }
 0x19a   : > { %v1526_v62 = vpop.permute.xlu0 %1525  ;;  %1757 = vmatpush1.bf16.msra.mxu1 %v7952_v40  ;;  %1802 = vmatpush1.bf16.msra.mxu0 %v8095_v21  ;;  %v1528_v61 = vpop.permute.xlu1 %1527  ;;  %v11039_v21 = vld [vmem:[#allocation5_spill] sm:$0xff] }
 0x19b   : > { %1803 = vmatprep.subr.bf16.mxu0 %v1126_v17  ;;  %v1579_v22 = vsel %vm1539_vm14, %v1526_v62, %v1528_v61  ;;  %v1578_v30 = vsel %vm1539_vm14, %v8114_v0, %v1526_v62  ;;  %v1122_v28 = vsel %vm1031_vm3, %v696_v10, %v11039_v21 }
 0x19c   : > { %959 = vrot.lane.b32.xlu0 %v8104_v14, %s11008_s21  ;;  %869 = vrot.lane.b32.xlu1 %v8104_v14, %s11030_s25  ;;  %v1671_v40 = vsel %vm1031_vm3, %v1578_v30, 0  ;;  %s11040_s21 = smov 124  }
 0x19d   : > { %6366 = vmatprep.subr.msk.bf16.mxu1 %vm1031_vm3, %v1579_v22 }
 0x19e   : > { %v1506_v2 = vpop.permute.xlu0 %1505  ;;  %1765 = vmatpush2.bf16.msra.mxu1 %v1671_v40  ;;  %1804 = vmatpush1.bf16.msra.mxu0 %v1122_v28  ;;  %v8541_v31 = vpop.permute.xlu1 %1507 }
 0x19f   : > { %1805 = vmatprep.subr.bf16.mxu0 %v8358_v20  ;;  %v1570_v0 = vsel %vm1539_vm14, %v1506_v2, %v8541_v31  ;;  %v1569_v36 = vsel %vm1539_vm14, %v11041_v16, %v1506_v2 }
 0x1a0   : > { %899 = vrot.lane.b32.xlu0 %v8104_v14, %s11010_s30  ;;  %685 = vrot.lane.b32.xlu1 %v7688_v19, %s11040_s21 }
 0x1a1   : > { %1766 = vmatprep.subr.bf16.mxu1 %v1570_v0 }
 0x1a2   : > { %v808_v35 = vpop.permute.xlu0 %807  ;;  %1767 = vmatpush2.bf16.msra.mxu1 %v1569_v36  ;;  %1806 = vmatpush1.bf16.msra.mxu0 %v8205_v34  ;;  %v810_v44 = vpop.permute.xlu1 %809 }
 0x1a3   : > { %1807 = vmatprep.subr.bf16.mxu0 %v8403_v41  ;;  %v8563_v48 = vsel %vm811_vm0, %v11042_v24, %v808_v35  ;;  %v8576_v27 = vsel %vm811_vm0, %v808_v35, %v810_v44 }
 0x1a4   : > { %687 = vrot.lane.b32.xlu0 %v8106_v56, %s11040_s21  ;;  %839 = vrot.lane.b32.xlu1 %v8104_v14, %s11037_s23 }
 0x1a6   : > { %v748_v20 = vpop.permute.xlu0 %747  ;;  %1808 = vmatpush1.bf16.msra.mxu0 %v8295_v25  ;;  %v8559_v49 = vpop.permute.xlu1 %749 }
 0x1a7   : > { %v759_v1 = vsel %vm751_vm2, %v8047_v45, %v748_v20  ;;  %v760_v45 = vsel %vm751_vm2, %v748_v20, %v8559_v49 }
 0x1a8   : > { %689 = vrot.lane.b32.xlu0 %v8104_v14, %s11040_s21  ;;  %1533 = vrot.lane.b32.xlu1 %v8563_v48, %s11024_s17 }
 0x1aa   : > { %v778_v34 = vpop.permute.xlu0 %777  ;;  %v8569_v41 = vpop.permute.xlu1 %779 }
 0x1ab   : > { %v789_v25 = vsel %vm781_vm1, %v8055_v47, %v778_v34  ;;  %v790_v42 = vsel %vm781_vm1, %v778_v34, %v8569_v41 }
 0x1ac   : > { %1535 = vrot.lane.b32.xlu0 %v8576_v27, %s11024_s17  ;;  %v8583_v26 = vsel %vm1031_vm3, %v759_v1, %v789_v25  ;;  %v8592_v63 = vsel %vm1031_vm3, %v760_v45, %v790_v42 }
 0x1ad   : > { %1513 = vrot.lane.b32.xlu1 %v8583_v26, %s11024_s17 }
 0x1ae   : > { %v1486_v39 = vpop.permute.xlu0 %1485  ;;  %v8589_v47 = vpop.permute.xlu1 %1487 }
 0x1af   : > { %v1561_v5 = vsel %vm1539_vm14, %v1486_v39, %v8589_v47  ;;  %v1560_v8 = vsel %vm1539_vm14, %v8202_v29, %v1486_v39 }
 0x1b0   : > { %1515 = vrot.lane.b32.xlu0 %v8592_v63, %s11024_s17  ;;  %1768 = vmatprep.subr.bf16.mxu1 %v1561_v5 }
 0x1b1   : > { %1769 = vmatpush2.bf16.msra.mxu1 %v1560_v8 }
 0x1b2   : > { %v1530_v12 = vpop.permute.xlu0 %1529  ;;  %v8600_v9 = vpop.permute.xlu1 %1531 }
 0x1b3   : > { %v1580_v51 = vsel %vm1539_vm14, %v1528_v61, %v1530_v12  ;;  %v1581_v43 = vsel %vm1539_vm14, %v1530_v12, %v8600_v9 }
 0x1b4   : > { %6369 = vmatprep.subr.msk.bf16.mxu0 %vm1031_vm3, %v1581_v43  ;;  %v1677_v10 = vsel %vm1031_vm3, %v1580_v51, 0 }
 0x1b5   : > { %1816 = vmatpush2.bf16.msra.mxu0 %v1677_v10 }
 0x1b6   : > { %v718_v62 = vpop.permute.xlu0 %717  ;;  %v8607_v29 = vpop.permute.xlu1 %719 }
 0x1b7   : > { %v8613_v30 = vsel %vm721_vm7, %v8090_v3, %v718_v62  ;;  %v8617_v61 = vsel %vm721_vm7, %v718_v62, %v8607_v29 }
 0x1ba   : > { %v1338_v17 = vpop.permute.xlu0 %1337  ;;  %v8609_v22 = vpop.permute.xlu1 %1339 }
 0x1bb   : > { %v1350_v40 = vsel %vm1343_vm6, %v8108_v58, %v1338_v17  ;;  %v1351_v21 = vsel %vm1343_vm6, %v1338_v17, %v8609_v22 }
 0x1bc   : > { %v1387_v28 = vsel %vm1031_vm3, %v1350_v40, %v8613_v30  ;;  %v1389_v2 = vsel %vm1031_vm3, %v1351_v21, %v8617_v61 }
 0x1bd   : > { %1493 = vrot.lane.b32.xlu1 %v1387_v28, %s11024_s17  ;;  %1495 = vrot.lane.b32.xlu0 %v1389_v2, %s11024_s17 }
 0x1be   : > { %v1466_v3 = vpop.permute.xlu0 %1465  ;;  %v8629_v0 = vpop.permute.xlu1 %1467 }
 0x1bf   : > { %v1552_v16 = vsel %vm1539_vm14, %v1466_v3, %v8629_v0  ;;  %v1551_v58 = vsel %vm1539_vm14, %v8260_v46, %v1466_v3 }
 0x1c0   : > { %1770 = vmatprep.subr.bf16.mxu1 %v1552_v16 }
 0x1c1   : > { %1771 = vmatpush2.bf16.msra.mxu1 %v1551_v58 }
 0x1c2   : > { %v1510_v36 = vpop.permute.xlu0 %1509  ;;  %v8635_v35 = vpop.permute.xlu1 %1511 }
 0x1c3   : > { %v1572_v20 = vsel %vm1539_vm14, %v1510_v36, %v8635_v35  ;;  %v1571_v24 = vsel %vm1539_vm14, %v8541_v31, %v1510_v36 }
 0x1c4   : > { %1817 = vmatprep.subr.bf16.mxu0 %v1572_v20 }
 0x1c5   : > { %1818 = vmatpush2.bf16.msra.mxu0 %v1571_v24 }
 0x1c6   : > { %v1363_v34 = vpop.permute.xlu0 %1362  ;;  %v628_v1 = vpop.permute.xlu1 %627 }
 0x1c7   : > { %v1364_v25 = vsel %vm811_vm0, %v810_v44, %v1363_v34  ;;  %v639_v45 = vsel %vm11043_vm11, %v8127_v54, %v628_v1  ;;  %vm11046_vm0 = vmmov %vm11044_vm10  ;;  %vm11050_vm11 = vcmask 449536  }
 0x1c8   : > { %1537 = vrot.lane.b32.xlu1 %v1364_v25, %s11024_s17 }
 0x1ca   : > { %v630_v46 = vpop.permute.xlu0 %629  ;;  %v658_v42 = vpop.permute.xlu1 %657 }
 0x1cb   : > { %v669_v39 = vsel %vm11044_vm10, %v8151_v59, %v658_v42  ;;  %v640_v44 = vsel %vm11045_vm12, %v628_v1, %v630_v46  ;;  %vm11051_vm10 = vmmov %vm11050_vm11 }
 0x1cc   : > { %v8648_v5 = vsel %vm1031_vm3, %v639_v45, %v669_v39 }
 0x1cd   : > { %1473 = vrot.lane.b32.xlu0 %v8648_v5, %s11024_s17 }
 0x1ce   : > { %v660_v31 = vpop.permute.xlu0 %659  ;;  %v1446_v8 = vpop.permute.xlu1 %1445 }
 0x1cf   : > { %v670_v12 = vsel %vm11046_vm0, %v658_v42, %v660_v31  ;;  %v1542_v10 = vsel %vm1539_vm14, %v8327_v32, %v1446_v8  ;;  %v1370_v34 = vsel %vm1031_vm3, %v630_v46, %v660_v31  ;;  %vm11053_vm0 = vcmask 719872  }
 0x1d0   : > { %v8655_v51 = vsel %vm1031_vm3, %v640_v44, %v670_v12 }
 0x1d1   : > { %1475 = vrot.lane.b32.xlu1 %v8655_v51, %s11024_s17 }
 0x1d2   : > { %v1448_v54 = vpop.permute.xlu0 %1447  ;;  %v1490_v59 = vpop.permute.xlu1 %1489 }
 0x1d3   : > { %v1543_v43 = vsel %vm1539_vm14, %v1446_v8, %v1448_v54  ;;  %v1562_v21 = vsel %vm1539_vm14, %v8589_v47, %v1490_v59  ;;  %v1990_v8 = vld [vmem:[%s11048_s4] sm:$0xff] }
 0x1d4   : > { %1772 = vmatprep.subr.bf16.mxu1 %v1543_v43 }
 0x1d5   : > { %1773 = vmatpush2.bf16.msra.mxu1 %v1542_v10 }
 0x1d6   : > { %v8662_v62 = vpop.permute.xlu0 %1491  ;;  %v1357_v17 = vpop.permute.xlu1 %1356 }
 0x1d7   : > { %v1563_v40 = vsel %vm1539_vm14, %v1490_v59, %v8662_v62  ;;  %v1358_v32 = vsel %vm751_vm2, %v8559_v49, %v1357_v17  ;;  %v1624_v59 = vld [vmem:[%s11047_s2] sm:$0xff]  ;;  %v1625_v17 = vld [vmem:[%s11047_s2 + $0x8] sm:$0xff] }
 0x1d8   : > { %1775 = vmatmul.mubr.bf16.vlgmr.msra.gmra.mxu1 %v8345_v15  ;;  %1819 = vmatprep.subr.bf16.mxu0 %v1563_v40 }
 0x1d9   : > { %1820 = vmatpush2.bf16.msra.mxu0 %v1562_v21  ;;  %6368 = vmatprep.mubr.msk.bf16.mxu1 %vm1657_vm13, %v8352_v23 }
 0x1da   : > { %v1360_v28 = vpop.permute.xlu0 %1359  ;;  %v598_v2 = vpop.permute.xlu1 %597 }
 0x1db   : > { %v1361_v3 = vsel %vm781_vm1, %v8569_v41, %v1360_v28  ;;  %v609_v16 = vsel %vm601_vm15, %v8184_v55, %v598_v2 }
 0x1dc   : > { %v1398_v58 = vsel %vm1031_vm3, %v1358_v32, %v1361_v3  ;;  %v8680_v47 = vsel %vm1031_vm3, %v7688_v19, %v609_v16  ;;  %v1991_v3 = vld [vmem:[%s11048_s4 + $0x8] sm:$0xff]  ;;  %s11103_s4 = sld [smem:[#allocation15_spill]] }
 0x1dd   : > { %1517 = vrot.lane.b32.xlu0 %v1398_v58, %s11024_s17  ;;  %1453 = vrot.lane.b32.xlu1 %v8680_v47, %s11024_s17 }
 0x1de   : > { %v600_v36 = vpop.permute.xlu0 %599  ;;  %v1470_v20 = vpop.permute.xlu1 %1469 }
 0x1df   : > { %v610_v49 = vsel %vm601_vm15, %v598_v2, %v600_v36  ;;  %v1553_v1 = vsel %vm1539_vm14, %v8629_v0, %v1470_v20 }
 0x1e0   : > { %1785 = vmatmul.mubr.bf16.gmra.mxu1 %v8392_v7  ;;  %v8689_v55 = vsel %vm1031_vm3, %v8106_v56, %v610_v49 }
 0x1e1   : > { %1455 = vrot.lane.b32.xlu0 %v8689_v55, %s11024_s17  ;;  %6373 = vmatprep.mubr.msk.bf16.mxu1 %vm1657_vm13, %v7967_v4  ;;  %v1626_v4 = vld [vmem:[%s11047_s2 + $0x10] sm:$0xff]  ;;  %s7418_s2 = smov 116  }
 0x1e2   : > { %v8695_v19 = vpop.permute.xlu0 %1471  ;;  %v1342_v41 = vpop.permute.xlu1 %1341 }
 0x1e3   : > { %v1554_v24 = vsel %vm1539_vm14, %v1470_v20, %v8695_v19  ;;  %v1352_v42 = vsel %vm1343_vm6, %v8609_v22, %v1342_v41  ;;  %v1367_v22 = vsel %vm1031_vm3, %v8104_v14, %v600_v36  ;;  %vm11049_vm6 = vcmask 457728  }
 0x1e4   : > { %1821 = vmatprep.subr.bf16.mxu0 %v1554_v24  ;;  %vm11052_vm12 = vmmov %vm11049_vm6 }
 0x1e5   : > { %1477 = vrot.lane.b32.xlu0 %v1370_v34, %s11024_s17  ;;  %1822 = vmatpush2.bf16.msra.mxu0 %v1553_v1 }
 0x1e6   : > { %v1354_v56 = vpop.permute.xlu0 %1353  ;;  %v1450_v25 = vpop.permute.xlu1 %1449 }
 0x1e7   : > { %v1355_v45 = vsel %vm721_vm7, %v8607_v29, %v1354_v56  ;;  %v1544_v29 = vsel %vm1539_vm14, %v1448_v54, %v1450_v25 }
 0x1e8   : > { %v1392_v46 = vsel %vm1031_vm3, %v1352_v42, %v1355_v45 }
 0x1e9   : > { %1497 = vrot.lane.b32.xlu1 %v1392_v46, %s11024_s17  ;;  %1639 = vperm.xlu0 %6884, %v1626_v4  }
 0x1ea   : > { %v8712_v0 = vpop.permute.xlu0 %1451  ;;  %v986_v39 = vpop.permute.xlu1 %985 }
 0x1eb   : > { %v1545_v31 = vsel %vm1539_vm14, %v1450_v25, %v8712_v0  ;;  %v998_v21 = vsel %vm991_vm4, %v8395_v11, %v986_v39  ;;  %v7374_v11 = vld [vmem:[%s11009_s18 + $0x4] ss:$8 sps:$4 sm:$0xff]  }
 0x1ec   : > { %1823 = vmatprep.subr.bf16.mxu0 %v1545_v31 }
 0x1ed   : > { %1457 = vrot.lane.b32.xlu1 %v1367_v22, %s11024_s17  ;;  %1824 = vmatpush2.bf16.msra.mxu0 %v1544_v29  ;;  %s7410_s17 = smov 109  }
 0x1ee   : > { %v988_v44 = vpop.permute.xlu0 %987  ;;  %v1016_v12 = vpop.permute.xlu1 %1015  ;;  %1895 = vmatprep.subr.bf16.mxu0 %v7400_v57  ;;  %1994 = vperm.xlu0 %6884, %v1990_v8  }
 0x1ef   : > { %v999_v43 = vsel %vm991_vm4, %v986_v39, %v988_v44  ;;  %v1028_v14 = vsel %vm1021_vm5, %v8410_v50, %v1016_v12 }
 0x1f0   : > { %1826 = vmatmul.mubr.bf16.vlgmr.msra.gmra.mxu0 %v8345_v15  ;;  %v1310_v2 = vsel %vm1031_vm3, %v998_v21, %v1028_v14 }
 0x1f1   : > { %1629 = vperm.xlu1 %6885, %v1624_v59   ;;  %6371 = vmatprep.mubr.msk.bf16.mxu0 %vm1657_vm13, %v8352_v23 }
 0x1f2   : > { %v1018_v54 = vpop.permute.xlu0 %1017  ;;  %v926_v10 = vpop.permute.xlu1 %925 }
 0x1f3   : > { %v1029_v40 = vsel %vm1021_vm5, %v1016_v12, %v1018_v54  ;;  %v938_v41 = vsel %vm931_vm8, %v8443_v52, %v926_v10 }
 0x1f4   : > { %v1314_v28 = vsel %vm1031_vm3, %v999_v43, %v1029_v40 }
 0x1f5   : > { %1634 = vperm.xlu1 %6885, %v1625_v17   ;;  %1844 = vmatprep.subr.bf16.mxu1 %v1314_v28 }
 0x1f6   : > { %v928_v32 = vpop.permute.xlu0 %927  ;;  %1845 = vmatpush1.bf16.msra.mxu1 %v1310_v2  ;;  %v956_v50 = vpop.permute.xlu1 %955 }
 0x1f7   : > { %v939_v16 = vsel %vm931_vm8, %v926_v10, %v928_v32  ;;  %v968_v58 = vsel %vm961_vm9, %v8451_v38, %v956_v50  ;;  %v11055_v10 = vld [vmem:[#allocation7_spill] sm:$0xff] }
 0x1f8   : > { %1836 = vmatmul.mubr.bf16.gmra.mxu0 %v8392_v7  ;;  %v1274_v34 = vsel %vm1031_vm3, %v938_v41, %v968_v58 }
 0x1f9   : > { %1999 = vperm.xlu1 %6885, %v1991_v3   ;;  %6375 = vmatprep.mubr.msk.bf16.mxu0 %vm1657_vm13, %v7374_v11 }
 0x1fa   : > { %v958_v36 = vpop.permute.xlu0 %957  ;;  %v866_v20 = vpop.permute.xlu1 %865 }
 0x1fb   : > { %v969_v49 = vsel %vm961_vm9, %v956_v50, %v958_v36  ;;  %v878_v52 = vsel %vm11052_vm12, %v8467_v6, %v866_v20 }
 0x1fc   : > { %v1278_v24 = vsel %vm1031_vm3, %v939_v16, %v969_v49 }
 0x1fd   : > { %1846 = vmatprep.subr.bf16.mxu1 %v1278_v24 }
 0x1fe   : > { %v868_v1 = vpop.permute.xlu0 %867  ;;  %1847 = vmatpush1.bf16.msra.mxu1 %v1274_v34  ;;  %v896_v56 = vpop.permute.xlu1 %895 }
 0x1ff   : > { %v879_v25 = vsel %vm11049_vm6, %v866_v20, %v868_v1  ;;  %v908_v38 = vsel %vm11050_vm11, %v8473_v37, %v896_v56  ;;  %vm11054_vm6 = vmmov %vm11053_vm0 }
 0x200   : > { %v1238_v31 = vsel %vm1031_vm3, %v878_v52, %v908_v38 }
 0x202   : > { %v898_v4 = vpop.permute.xlu0 %897  ;;  %v990_v42 = vpop.permute.xlu1 %989 }
 0x203   : > { %v909_v45 = vsel %vm11051_vm10, %v896_v56, %v898_v4  ;;  %v1000_v39 = vsel %vm991_vm4, %v988_v44, %v990_v42  ;;  %vm11056_vm4 = vmmov %vm11052_vm12 }
 0x204   : > { %v1242_v46 = vsel %vm1031_vm3, %v879_v25, %v909_v45 }
 0x205   : > { %1848 = vmatprep.subr.bf16.mxu1 %v1242_v46 }
 0x206   : > { %v1020_v8 = vpop.permute.xlu0 %1019  ;;  %1849 = vmatpush1.bf16.msra.mxu1 %v1238_v31  ;;  %v836_v22 = vpop.permute.xlu1 %835 }
 0x207   : > { %v1030_v29 = vsel %vm1021_vm5, %v1018_v54, %v1020_v8  ;;  %v848_v12 = vsel %vm11053_vm0, %v8500_v18, %v836_v22  ;;  %vm11058_vm5 = vmmov %vm11051_vm10 }
 0x208   : > { %v1318_v37 = vsel %vm1031_vm3, %v1000_v39, %v1030_v29  ;;  %v1202_v54 = vsel %vm1031_vm3, %v11055_v10, %v848_v12  ;;  %vm11061_vm10 = vmmov %vm11053_vm0  ;;  %vm2305_vm0 = vcmask 302080  }
 0x209   : > { %1896 = vmatpush1.bf16.msra.mxu0 %v1318_v37 }
 0x20a   : > { %v838_v59 = vpop.permute.xlu0 %837  ;;  %v930_v6 = vpop.permute.xlu1 %929  ;;  %1897 = vmatprep.subr.bf16.mxu0 %v7400_v57 }
 0x20b   : > { %v849_v44 = vsel %vm11054_vm6, %v836_v22, %v838_v59  ;;  %v940_v14 = vsel %vm931_vm8, %v928_v32, %v930_v6  ;;  %vm11065_vm6 = vcmask 1031168  }
 0x20c   : > { %v1206_v43 = vsel %vm1031_vm3, %v8563_v48, %v849_v44  ;;  %v11057_v48 = vld [vmem:[#allocation8_spill] sm:$0xff] }
 0x20d   : > { %1850 = vmatprep.subr.bf16.mxu1 %v1206_v43 }
 0x20e   : > { %v960_v17 = vpop.permute.xlu0 %959  ;;  %1851 = vmatpush1.bf16.msra.mxu1 %v1202_v54  ;;  %v870_v40 = vpop.permute.xlu1 %869 }
 0x20f   : > { %v970_v18 = vsel %vm961_vm9, %v958_v36, %v960_v17  ;;  %1852 = vmatprep.subr.bf16.mxu1 %v8583_v26  ;;  %v880_v28 = vsel %vm11056_vm4, %v868_v1, %v870_v40  ;;  %vm11059_vm9 = vcmask 1014784   ;;  %vm11066_vm4 = vmmov %vm11065_vm6 }
 0x210   : > { %v1282_v21 = vsel %vm1031_vm3, %v940_v14, %v970_v18  ;;  %vm11060_vm11 = vmmov %vm11059_vm9 }
 0x211   : > { %1898 = vmatpush1.bf16.msra.mxu0 %v1282_v21  ;;  %vm11062_vm12 = vmmov %vm11059_vm9 }
 0x212   : > { %v900_v2 = vpop.permute.xlu0 %899  ;;  %1853 = vmatpush1.bf16.msra.mxu1 %v11057_v48  ;;  %v686_v32 = vpop.permute.xlu1 %685  ;;  %1899 = vmatprep.subr.bf16.mxu0 %v7400_v57 }
 0x213   : > { %v910_v50 = vsel %vm11058_vm5, %v898_v4, %v900_v2  ;;  %v698_v16 = vsel %vm11059_vm9, %v8515_v33, %v686_v32  ;;  %vm11067_vm5 = vcmask 457728  }
 0x214   : > { %v1246_v3 = vsel %vm1031_vm3, %v880_v28, %v910_v50  ;;  %v1130_v41 = vsel %vm1031_vm3, %v698_v16, %v8308_v60  ;;  %vm11068_vm9 = vmmov %vm11067_vm5 }
 0x215   : > { %1900 = vmatpush1.bf16.msra.mxu0 %v1246_v3 }
 0x216   : > { %v688_v26 = vpop.permute.xlu0 %687  ;;  %v840_v11 = vpop.permute.xlu1 %839  ;;  %1901 = vmatprep.subr.bf16.mxu0 %v7400_v57 }
 0x217   : > { %v699_v58 = vsel %vm11060_vm11, %v686_v32, %v688_v26  ;;  %v850_v36 = vsel %vm11061_vm10, %v838_v59, %v840_v11  ;;  %vm11069_vm11 = vcmask 449536  }
 0x218   : > { %v1134_v20 = vsel %vm1031_vm3, %v699_v58, %v8613_v30  ;;  %v1210_v49 = vsel %vm1031_vm3, %v8576_v27, %v850_v36  ;;  %vm11070_vm10 = vmmov %vm11069_vm11 }
 0x219   : > { %1854 = vmatprep.subr.bf16.mxu1 %v1134_v20  ;;  %1902 = vmatpush1.bf16.msra.mxu0 %v1210_v49 }
 0x21a   : > { %v690_v33 = vpop.permute.xlu0 %689  ;;  %1855 = vmatpush1.bf16.msra.mxu1 %v1130_v41  ;;  %1903 = vmatprep.subr.bf16.mxu0 %v7400_v57  ;;  %v1534_v27 = vpop.permute.xlu1 %1533 }
 0x21b   : > { %1856 = vmatprep.subr.bf16.mxu1 %v8648_v5  ;;  %v700_v24 = vsel %vm11062_vm12, %v688_v26, %v690_v33  ;;  %v1582_v30 = vsel %vm1539_vm14, %v8600_v9, %v1534_v27  ;;  %vm11071_vm12 = vmmov %vm11066_vm4 }
 0x21c   : > { %v1138_v60 = vsel %vm1031_vm3, %v700_v24, %v8617_v61  ;;  %v8867_v24 = vld [vmem:[%s11063_s3] sm:$0xff]   ;;  %s7419_s3 = smov 118  }
 0x21d   : > { %1904 = vmatpush1.bf16.msra.mxu0 %v8592_v63 }
 0x21e   : > { %v1536_v34 = vpop.permute.xlu0 %1535  ;;  %1857 = vmatpush1.bf16.msra.mxu1 %v8373_v53  ;;  %1905 = vmatprep.subr.bf16.mxu0 %v7400_v57 }
 0x21f   : > { %1858 = vmatprep.subr.bf16.mxu1 %v8680_v47  ;;  %v1583_v5 = vsel %vm1539_vm14, %v1534_v27, %v1536_v34  ;;  %v1514_v53 = vpop.permute.xlu1 %1513  ;;  %v1683_v47 = vsel %vm1031_vm3, %v1582_v30, 0 }
 0x221   : > { %1906 = vmatpush1.bf16.msra.mxu0 %v1138_v60 }
 0x222   : > { %1859 = vmatpush1.bf16.msra.mxu1 %v8414_v13  ;;  %1907 = vmatprep.subr.bf16.mxu0 %v7400_v57  ;;  %v1516_v63 = vpop.permute.xlu0 %1515  ;;  %v1573_v13 = vsel %vm1539_vm14, %v8635_v35, %v1514_v53 }
 0x223   : > { %6372 = vmatprep.subr.msk.bf16.mxu1 %vm1031_vm3, %v1583_v5  ;;  %v1574_v61 = vsel %vm1539_vm14, %v1514_v53, %v1516_v63 }
 0x225   : > { %1908 = vmatpush1.bf16.msra.mxu0 %v8655_v51 }
 0x226   : > { %1867 = vmatpush2.bf16.msra.mxu1 %v1683_v47  ;;  %1909 = vmatprep.subr.bf16.mxu0 %v7400_v57 }
 0x227   : > { %1868 = vmatprep.subr.bf16.mxu1 %v1574_v61 }
 0x229   : > { %1910 = vmatpush1.bf16.msra.mxu0 %v8689_v55 }
 0x22a   : > { %1869 = vmatpush2.bf16.msra.mxu1 %v1573_v13  ;;  %1917 = vmatprep.subr.bf16.mxu0 %v7400_v57 }
 0x22d   : > { %v8819_v9 = vpop.f32.mrf.mxu0 }
 0x22f   : > { %v1496_v1 = vpop.permute.xlu0 %1495  ;;  %v1494_v51 = vpop.permute.xlu1 %1493 }
 0x230   : > { %v1565_v56 = vsel %vm1539_vm14, %v1494_v51, %v1496_v1  ;;  %v1564_v25 = vsel %vm1539_vm14, %v8662_v62, %v1494_v51  ;;  %v1727_v38 = vpop.f32.mrf.mxu0 }
 0x231   : > { %1870 = vmatprep.subr.bf16.mxu1 %v1565_v56 }
 0x232   : > { %1871 = vmatpush2.bf16.msra.mxu1 %v1564_v25  ;;  %v1729_v4 = vpop.f32.mrf.mxu0 }
 0x234   : > { %v1731_v55 = vpop.f32.mrf.mxu0 }
 0x236   : > { %v1735_v42 = vpop.f32.mrf.mxu0 }
 0x238   : > { %v1737_v45 = vpop.f32.mrf.mxu0 }
 0x23a   : > { %v1538_v35 = vpop.permute.xlu1 %1537  ;;  %v1739_v52 = vpop.f32.mrf.mxu0 }
 0x23b   : > { %v1584_v46 = vsel %vm1539_vm14, %v1536_v34, %v1538_v35 }
 0x23c   : > { %v1689_v39 = vsel %vm1031_vm3, %v1584_v46, 0  ;;  %v1740_v31 = vpop.f32.mrf.mxu0 }
 0x23d   : > { %1918 = vmatpush2.bf16.msra.mxu0 %v1689_v39 }
 0x23e   : > { %1919 = vmatprep.subr.bf16.mxu0 %v7400_v57 }
 0x23f   : > { %v1474_v8 = vpop.permute.xlu0 %1473 }
 0x240   : > { %v1555_v29 = vsel %vm1539_vm14, %v8695_v19, %v1474_v8 }
 0x243   : > { %v1476_v22 = vpop.permute.xlu1 %1475 }
 0x244   : > { %v1556_v62 = vsel %vm1539_vm14, %v1474_v8, %v1476_v22 }
 0x245   : > { %1872 = vmatprep.subr.bf16.mxu1 %v1556_v62 }
 0x246   : > { %1873 = vmatpush2.bf16.msra.mxu1 %v1555_v29 }
 0x24f   : > { %v1518_v37 = vpop.permute.xlu0 %1517  ;;  %v1454_v59 = vpop.permute.xlu1 %1453 }
 0x250   : > { %v1575_v12 = vsel %vm1539_vm14, %v1516_v63, %v1518_v37  ;;  %v1546_v43 = vsel %vm1539_vm14, %v8712_v0, %v1454_v59 }
 0x251   : > { %1920 = vmatpush2.bf16.msra.mxu0 %v1575_v12 }
 0x252   : > { %1921 = vmatprep.subr.bf16.mxu0 %v7400_v57 }
 0x253   : > { %v1456_v6 = vpop.permute.xlu0 %1455 }
 0x254   : > { %v1547_v44 = vsel %vm1539_vm14, %v1454_v59, %v1456_v6 }
 0x255   : > { %1874 = vmatprep.subr.bf16.mxu1 %v1547_v44 }
 0x256   : > { %1875 = vmatpush2.bf16.msra.mxu1 %v1546_v43 }
 0x257   : > { %v1478_v10 = vpop.permute.xlu0 %1477 }
 0x258   : > { %v1557_v54 = vsel %vm1539_vm14, %v1476_v22, %v1478_v10 }
 0x259   : > { %1877 = vmatmul.mubr.bf16.vlgmr.msra.gmra.mxu1 %v8345_v15 }
 0x25a   : > { %6374 = vmatprep.mubr.msk.bf16.mxu1 %vm1657_vm13, %v8352_v23 }
 0x25b   : > { %v1498_v19 = vpop.permute.xlu1 %1497 }
 0x25c   : > { %v1566_v14 = vsel %vm1539_vm14, %v1496_v1, %v1498_v19 }
 0x25d   : > { %1922 = vmatpush2.bf16.msra.mxu0 %v1566_v14 }
 0x25e   : > { %1923 = vmatprep.subr.bf16.mxu0 %v7400_v57 }
 0x25f   : > { %v1458_v17 = vpop.permute.xlu1 %1457 }
 0x260   : > { %v1548_v0 = vsel %vm1539_vm14, %v1456_v6, %v1458_v17  ;;  %vm7402_vm14 = vmmov 0  }
 0x261   : > { %1887 = vmatmul.mubr.bf16.gmra.mxu1 %v8392_v7  ;;  %1924 = vmatpush2.bf16.msra.mxu0 %v1557_v54 }
 0x262   : > { %1925 = vmatprep.subr.bf16.mxu0 %v7400_v57  ;;  %2070 = vmatprep.mubr.bf16.mxu1 %v7400_v57 }
 0x264   : > { %v8845_v40 = vpop.permute.xlu0 %1639 }
 0x265   : > { %1926 = vmatpush2.bf16.msra.mxu0 %v1548_v0  ;;  %v1738_v18 = vadd.f32 %v1737_v45, %v8845_v40  ;;  %v1736_v21 = vadd.f32 %v1735_v42, %v8845_v40 }
 0x267   : > { %v1962_v28 = vmax.f32 %v1738_v18, 0.0  ;;  %v1961_v2 = vmax.f32 %v1736_v21, 0.0 }
 0x268   : > { %1928 = vmatmul.mubr.bf16.vlgmr.msra.gmra.mxu0 %v8345_v15 }
 0x269   : > { %6376 = vmatprep.mubr.msk.bf16.mxu0 %vm1657_vm13, %v8352_v23  ;;  %v1980_v48 = vpack.c.bf16 %v1962_v28, %v1962_v28  ;;  %v1979_v32 = vpack.c.bf16 %v1961_v2, %v1961_v2  ;;  %vm2007_vm13 = vcmask 195584  }
 0x26b   : > { %6378 = vmatprep.subr.msk.bf16.mxu1 %vm1031_vm3, %v1980_v48  ;;  %v2012_v50 = vsel %vm1031_vm3, %v1979_v32, 0 }
 0x26c   : > { %v8854_v3 = vpop.permute.xlu1 %1629  ;;  %2051 = vmatpush1.bf16.msra.mxu1 %v2012_v50 }
 0x26d   : > { %v1728_v16 = vadd.f32 %v1727_v38, %v8854_v3  ;;  %v1726_v26 = vadd.f32 %v8819_v9, %v8854_v3 }
 0x26f   : > { %v1944_v11 = vmax.f32 %v1728_v16, 0.0  ;;  %v1943_v36 = vmax.f32 %v1726_v26, 0.0 }
 0x270   : > { %1936 = vmatmul.mubr.bf16.gmra.mxu0 %v8392_v7  ;;  %v8860_v15 = vpop.permute.xlu1 %1634 }
 0x271   : > { %v1732_v23 = vadd.f32 %v1731_v55, %v8860_v15  ;;  %v1730_v58 = vadd.f32 %v1729_v4, %v8860_v15 }
 0x273   : > { %v1953_v20 = vmax.f32 %v1732_v23, 0.0  ;;  %v1952_v49 = vmax.f32 %v1730_v58, 0.0 }
 0x275   : > { %v1971_v41 = vpack.c.bf16 %v1953_v20, %v1944_v11  ;;  %v1970_v33 = vpack.c.bf16 %v1952_v49, %v1943_v36 }
 0x277   : > { %2052 = vmatprep.subr.bf16.mxu1 %v1971_v41 }
 0x278   : > { %2053 = vmatpush1.bf16.msra.mxu1 %v1970_v33 }
 0x27b   : > { %6379 = vmatmul.mubr.msk.bf16.vlgmr.msra.gmra.mxu1 %vm2007_vm13, %v8867_v24 }
 0x27c   : > { %2113 = vmatprep.mubr.bf16.mxu1 %v7400_v57 }
 0x298   : > { %v1776_v7 = vpop.f32.mrf.mxu1 }
 0x299   : > { %v1777_v47 = vadd.f32 %v1776_v7, %v8854_v3 }
 0x29a   : > { %v1778_v34 = vpop.f32.mrf.mxu1 }
 0x29b   : > { %v1779_v30 = vadd.f32 %v1778_v34, %v8854_v3  ;;  %v1945_v55 = vmax.f32 %v1777_v47, 0.0 }
 0x29c   : > { %v1780_v27 = vpop.f32.mrf.mxu1 }
 0x29d   : > { %v1781_v61 = vadd.f32 %v1780_v27, %v8860_v15  ;;  %v1946_v9 = vmax.f32 %v1779_v30, 0.0 }
 0x29e   : > { %v1782_v60 = vpop.f32.mrf.mxu1 }
 0x29f   : > { %v1783_v5 = vadd.f32 %v1782_v60, %v8860_v15  ;;  %v1954_v42 = vmax.f32 %v1781_v61, 0.0 }
 0x2a0   : > { %v1786_v63 = vpop.f32.mrf.mxu1 }
 0x2a1   : > { %v1787_v53 = vadd.f32 %v1786_v63, %v8845_v40  ;;  %v1955_v1 = vmax.f32 %v1783_v5, 0.0  ;;  %v1972_v39 = vpack.c.bf16 %v1954_v42, %v1945_v55 }
 0x2a2   : > { %v1788_v13 = vpop.f32.mrf.mxu1 }
 0x2a3   : > { %v1963_v51 = vmax.f32 %v1787_v53, 0.0  ;;  %v1789_v56 = vadd.f32 %v1788_v13, %v8845_v40  ;;  %v1973_v35 = vpack.c.bf16 %v1955_v1, %v1946_v9 }
 0x2a4   : > { %v1790_v25 = vpop.f32.mrf.mxu1 }
 0x2a5   : > { %v1981_v38 = vpack.c.bf16 %v1963_v51, %v1963_v51  ;;  %v1964_v4 = vmax.f32 %v1789_v56, 0.0 }
 0x2a6   : > { %v1791_v45 = vpop.f32.mrf.mxu1 }
 0x2a7   : > { %v1982_v52 = vpack.c.bf16 %v1964_v4, %v1964_v4  ;;  %v2018_v46 = vsel %vm1031_vm3, %v1981_v38, 0 }
 0x2a9   : > { %6380 = vmatprep.subr.msk.bf16.mxu1 %vm1031_vm3, %v1982_v52 }
 0x2aa   : > { %2094 = vmatpush1.bf16.msra.mxu1 %v2018_v46 }
 0x2ab   : > { %2095 = vmatprep.subr.bf16.mxu1 %v1973_v35  ;;  %v7401_v35 = vmov 0.0  }
 0x2ae   : > { %2096 = vmatpush1.bf16.msra.mxu1 %v1972_v39 }
 0x2b0   : > { %v1827_v31 = vpop.f32.mrf.mxu0 }
 0x2b1   : > { %6381 = vmatmul.mubr.msk.bf16.vlgmr.msra.gmra.mxu1 %vm2007_vm13, %v8867_v24  ;;  %v1828_v6 = vadd.f32 %v1827_v31, %v8854_v3 }
 0x2b2   : > { %v1829_v8 = vpop.f32.mrf.mxu0  ;;  %2156 = vmatprep.mubr.bf16.mxu1 %v7400_v57 }
 0x2b3   : > { %v1830_v29 = vadd.f32 %v1829_v8, %v8854_v3  ;;  %v1947_v21 = vmax.f32 %v1828_v6, 0.0  ;;  %v8912_v6 = vpop.permute.xlu0 %1994 }
 0x2b4   : > { %v1831_v22 = vpop.f32.mrf.mxu0 }
 0x2b5   : > { %v1832_v44 = vadd.f32 %v1831_v22, %v8860_v15  ;;  %v1948_v19 = vmax.f32 %v1830_v29, 0.0 }
 0x2b6   : > { %v1833_v62 = vpop.f32.mrf.mxu0 }
 0x2b7   : > { %v1834_v37 = vadd.f32 %v1833_v62, %v8860_v15  ;;  %v1956_v28 = vmax.f32 %v1832_v44, 0.0 }
 0x2b8   : > { %v1837_v12 = vpop.f32.mrf.mxu0 }
 0x2b9   : > { %v1838_v59 = vadd.f32 %v1837_v12, %v8845_v40  ;;  %v1957_v14 = vmax.f32 %v1834_v37, 0.0  ;;  %v1974_v16 = vpack.c.bf16 %v1956_v28, %v1947_v21 }
 0x2ba   : > { %v1839_v43 = vpop.f32.mrf.mxu0 }
 0x2bb   : > { %v1965_v10 = vmax.f32 %v1838_v59, 0.0  ;;  %v1840_v54 = vadd.f32 %v1839_v43, %v8845_v40  ;;  %v1975_v48 = vpack.c.bf16 %v1957_v14, %v1948_v19  ;;  %v8915_v19 = vpop.permute.xlu1 %1999 }
 0x2bc   : > { %v1841_v17 = vpop.f32.mrf.mxu0 }
 0x2bd   : > { %v1983_v0 = vpack.c.bf16 %v1965_v10, %v1965_v10  ;;  %v1966_v18 = vmax.f32 %v1840_v54, 0.0 }
 0x2be   : > { %v1842_v2 = vpop.f32.mrf.mxu0 }
 0x2bf   : > { %v1984_v32 = vpack.c.bf16 %v1966_v18, %v1966_v18  ;;  %v2024_v50 = vsel %vm1031_vm3, %v1983_v0, 0 }
 0x2c1   : > { %6382 = vmatprep.subr.msk.bf16.mxu1 %vm1031_vm3, %v1984_v32 }
 0x2c2   : > { %2137 = vmatpush1.bf16.msra.mxu1 %v2024_v50 }
 0x2c3   : > { %2138 = vmatprep.subr.bf16.mxu1 %v1975_v48 }
 0x2c6   : > { %2139 = vmatpush1.bf16.msra.mxu1 %v1974_v16 }
 0x2c9   : > { %6383 = vmatmul.mubr.msk.bf16.vlgmr.msra.gmra.mxu1 %vm2007_vm13, %v8867_v24 }
 0x2ca   : > { %2199 = vmatprep.mubr.bf16.mxu1 %v7400_v57 }
 0x319   : > { %v1878_v26 = vpop.f32.mrf.mxu1 }
 0x31a   : > { %v1879_v53 = vadd.f32 %v1878_v26, %v8854_v3 }
 0x31b   : > { %v1880_v23 = vpop.f32.mrf.mxu1 }
 0x31c   : > { %v1881_v33 = vadd.f32 %v1880_v23, %v8854_v3  ;;  %v1949_v38 = vmax.f32 %v1879_v53, 0.0 }
 0x31d   : > { %v1882_v11 = vpop.f32.mrf.mxu1 }
 0x31e   : > { %v1883_v27 = vadd.f32 %v1882_v11, %v8860_v15  ;;  %v1950_v61 = vmax.f32 %v1881_v33, 0.0 }
 0x31f   : > { %v1884_v58 = vpop.f32.mrf.mxu1 }
 0x320   : > { %v1885_v20 = vadd.f32 %v1884_v58, %v8860_v15  ;;  %v1958_v1 = vmax.f32 %v1883_v27, 0.0 }
 0x321   : > { %v1888_v36 = vpop.f32.mrf.mxu1 }
 0x322   : > { %v1889_v49 = vadd.f32 %v1888_v36, %v8845_v40  ;;  %v1959_v30 = vmax.f32 %v1885_v20, 0.0  ;;  %v1976_v55 = vpack.c.bf16 %v1958_v1, %v1949_v38 }
 0x323   : > { %v1890_v41 = vpop.f32.mrf.mxu1 }
 0x324   : > { %v1967_v7 = vmax.f32 %v1889_v49, 0.0  ;;  %v1891_v34 = vadd.f32 %v1890_v41, %v8845_v40  ;;  %v1977_v51 = vpack.c.bf16 %v1959_v30, %v1950_v61 }
 0x325   : > { %v1892_v60 = vpop.f32.mrf.mxu1 }
 0x326   : > { %v1985_v5 = vpack.c.bf16 %v1967_v7, %v1967_v7  ;;  %v1968_v63 = vmax.f32 %v1891_v34, 0.0 }
 0x327   : > { %v1893_v47 = vpop.f32.mrf.mxu1 }
 0x328   : > { %v1986_v13 = vpack.c.bf16 %v1968_v63, %v1968_v63  ;;  %v1929_v9 = vpop.f32.mrf.mxu0  ;;  %v2030_v25 = vsel %vm1031_vm3, %v1985_v5, 0 }
 0x329   : > { %v1930_v8 = vadd.f32 %v1929_v9, %v8854_v3 }
 0x32a   : > { %v1931_v56 = vpop.f32.mrf.mxu0  ;;  %6384 = vmatprep.subr.msk.bf16.mxu1 %vm1031_vm3, %v1986_v13 }
 0x32b   : > { %2180 = vmatpush1.bf16.msra.mxu1 %v2030_v25  ;;  %v7404_v25 = vmov 1966171168  }
 0x32c   : > { %v1932_v4 = vpop.f32.mrf.mxu0  ;;  %2181 = vmatprep.subr.bf16.mxu1 %v1977_v51  ;;  %v2336_v38 = vunpack.c.l.s4 %v7404_v25  ;;  %v6931_v25 = vld [vmem:[%s10941_s13 + $0x1e0] ss:$16 sps:$4 sm:$0xff]  }
 0x32d   : > { %v1933_v46 = vadd.f32 %v1932_v4, %v8860_v15  ;;  %v2338_v4 = vlaneseq }
 0x32e   : > { %v1934_v42 = vpop.f32.mrf.mxu0 }
 0x32f   : > { %2182 = vmatpush1.bf16.msra.mxu1 %v1976_v55  ;;  %v1960_v29 = vmax.f32 %v1933_v46, 0.0  ;;  %v2337_v55 = vunpack.c.0.s8 %v2336_v38  ;;  %v2339_v42 = vshrl.u32 %v2338_v4, 7  ;;  %v6904_v46 = vld [vmem:[%s10941_s13 + $0xe0] ss:$16 sps:$4 sm:$0xff]   ;;  %v6933_v38 = vld [vmem:[%s10941_s13 + $0x1e4] ss:$16 sps:$4 sm:$0xff]  }
 0x330   : > { %v1937_v45 = vpop.f32.mrf.mxu0  ;;  %6801 = vmatprep.subr.bf16.mxu1 %v7401_v35 }
 0x331   : > { %v1938_v52 = vadd.f32 %v1937_v45, %v8845_v40  ;;  %v1951_v40 = vmax.f32 %v1930_v8, 0.0  ;;  %v8936_v45 = vsub.s32 %v2337_v55, %v2339_v42  ;;  %v6936_v55 = vld [vmem:[%s10941_s13 + $0x2c4] ss:$16 sps:$4 sm:$0xff]  }
 0x332   : > { %6385 = vmatmul.mubr.msk.bf16.vlgmr.msra.gmra.mxu1 %vm2007_vm13, %v8867_v24  ;;  %v1939_v39 = vpop.f32.mrf.mxu0 }
 0x333   : > { %v1969_v31 = vmax.f32 %v1938_v52, 0.0  ;;  %6805 = vmatprep.mubr.msk.bf16.mxu1 %vm7402_vm14, %v7401_v35  ;;  %v1978_v15 = vpack.c.bf16 %v1960_v29, %v1951_v40  ;;  %v8941_v52 = vld [vmem:[%s10943_s15] sm:$0xff] }
 0x334   : > { %v1940_v22 = vpop.f32.mrf.mxu0  ;;  %v6906_v39 = vld [vmem:[%s10941_s13 + $0xe4] ss:$16 sps:$4 sm:$0xff]   ;;  %v2341_v8 = vrot.slane %v8941_v52, %v8936_v45  ;;  %v6907_v29 = vld [vmem:[%s10941_s13 + $0xc0] ss:$16 sps:$4 sm:$0xff]  }
 0x335   : > { %v1987_v62 = vpack.c.bf16 %v1969_v31, %v1969_v31 }
 0x336   : > { %v1941_v37 = vpop.f32.mrf.mxu0  ;;  %v8959_v40 = vrot.slane %v2341_v8, %v8936_v45 }
 0x337   : > { %v2036_v12 = vsel %vm1031_vm3, %v1987_v62, 0  ;;  %v6909_v37 = vld [vmem:[%s10941_s13 + $0xc4] ss:$16 sps:$4 sm:$0xff]  }
 0x338   : > { %6802 = vmatpush3.bf16.msra.mxu1 %v2036_v12 }
 0x339   : > { %6803 = vmatprep.subr.bf16.mxu1 %v7401_v35 }
 0x33b   : > { %v2072_v59 = vpop.f32.mrf.mxu1 }
 0x33c   : > { %6804 = vmatpush3.bf16.msra.mxu1 %v1978_v15  ;;  %v2073_v43 = vadd.f32 %v2072_v59, %v8912_v6  ;;  %v6912_v59 = vld [vmem:[%s10941_s13 + $0xa4] ss:$16 sps:$4 sm:$0xff]  }
 0x33d   : > { %v2074_v44 = vpop.f32.mrf.mxu1  ;;  %4599 = vmatprep.subr.bf16.mxu1 %v6906_v39  ;;  %v6939_v39 = vld [vmem:[%s10941_s13 + $0x1c4] ss:$16 sps:$4 sm:$0xff]  }
 0x33e   : > { %v2075_v14 = vadd.f32 %v2074_v44, %v8912_v6  ;;  %v2251_v17 = vmax.f32 %v2073_v43, 0.0  ;;  %v6910_v43 = vld [vmem:[%s10941_s13 + $0xa0] ss:$16 sps:$4 sm:$0xff]  }
 0x33f   : > { %v2076_v3 = vpop.f32.mrf.mxu1  ;;  %6806 = vmatmul.mubr.msk.bf16.vlgmr.msra.gmra.mxu1 %vm2007_vm13, %v8867_v24 }
 0x340   : > { %v2077_v10 = vadd.f32 %v2076_v3, %v8915_v19  ;;  %v2252_v21 = vmax.f32 %v2075_v14, 0.0  ;;  %4600 = vmatpush1.bf16.msra.mxu1 %v6904_v46  ;;  %v6937_v46 = vld [vmem:[%s10941_s13 + $0x1c0] ss:$16 sps:$4 sm:$0xff]  }
 0x341   : > { %v2078_v54 = vpop.f32.mrf.mxu1  ;;  %4601 = vmatprep.subr.bf16.mxu1 %v6909_v37 }
 0x342   : > { %v2260_v0 = vmax.f32 %v2077_v10, 0.0  ;;  %v2079_v18 = vadd.f32 %v2078_v54, %v8915_v19 }
 0x344   : > { %v2269_v28 = vpack.c.bf16 %v2260_v0, %v2251_v17  ;;  %v2261_v2 = vmax.f32 %v2079_v18, 0.0  ;;  %4602 = vmatpush1.bf16.msra.mxu1 %v6907_v29  ;;  %v2406_v17 = vpack.i.b16 %v8959_v40, %v8959_v40  ;;  %v8972_v0 = vsub.s32 0, %v2339_v42  ;;  %v6934_v42 = vld [vmem:[%s10941_s13 + $0x2c0] ss:$16 sps:$4 sm:$0xff]   ;;  %v6945_v29 = vld [vmem:[%s10941_s13 + $0x1a4] ss:$16 sps:$4 sm:$0xff]  }
 0x345   : > { %4603 = vmatprep.subr.bf16.mxu1 %v6912_v59  ;;  %v6949_v59 = vld [vmem:[%s10941_s13 + $0x180] ss:$16 sps:$4 sm:$0xff]  }
 0x346   : > { %v2270_v48 = vpack.c.bf16 %v2261_v2, %v2252_v21  ;;  %2287 = vrot.lane.b32.xlu0 %v2269_v28, %s10994_s22 }
 0x348   : > { %2289 = vrot.lane.b32.xlu1 %v2270_v48, %s10994_s22  ;;  %4604 = vmatpush1.bf16.msra.mxu1 %v6910_v43  ;;  %v6913_v48 = vld [vmem:[%s10941_s13 + $0x80] ss:$16 sps:$4 sm:$0xff]  }
 0x371   : > { %v2115_v32 = vpop.f32.mrf.mxu1 }
 0x372   : > { %v2116_v50 = vadd.f32 %v2115_v32, %v8912_v6  ;;  %v6915_v32 = vld [vmem:[%s10941_s13 + $0x84] ss:$16 sps:$4 sm:$0xff]  }
 0x373   : > { %v2117_v24 = vpop.f32.mrf.mxu1  ;;  %4605 = vmatprep.subr.bf16.mxu1 %v6915_v32 }
 0x374   : > { %v2118_v26 = vadd.f32 %v2117_v24, %v8912_v6  ;;  %v2253_v58 = vmax.f32 %v2116_v50, 0.0  ;;  %v2411_v24 = vrot.slane %v2406_v17, %v8972_v0  ;;  %4606 = vmatpush1.bf16.msra.mxu1 %v6913_v48  ;;  %v6957_v17 = vld [vmem:[%s10941_s13 + $0x164] ss:$16 sps:$4 sm:$0xff]  }
 0x375   : > { %v2119_v16 = vpop.f32.mrf.mxu1  ;;  %v6963_v48 = vld [vmem:[%s10941_s13 + $0x144] ss:$16 sps:$4 sm:$0xff]  }
 0x376   : > { %v2120_v23 = vadd.f32 %v2119_v16, %v8915_v19  ;;  %v2254_v49 = vmax.f32 %v2118_v26, 0.0 }
 0x377   : > { %v2121_v11 = vpop.f32.mrf.mxu1 }
 0x378   : > { %v2262_v36 = vmax.f32 %v2120_v23, 0.0  ;;  %v2122_v20 = vadd.f32 %v2121_v11, %v8915_v19  ;;  %v6918_v23 = vld [vmem:[%s10941_s13 + $0x64] ss:$16 sps:$4 sm:$0xff]  }
 0x379   : > { %4607 = vmatprep.subr.bf16.mxu1 %v6918_v23 }
 0x37a   : > { %v2271_v41 = vpack.c.bf16 %v2262_v36, %v2253_v58  ;;  %v2263_v33 = vmax.f32 %v2122_v20, 0.0  ;;  %v6916_v58 = vld [vmem:[%s10941_s13 + $0x60] ss:$16 sps:$4 sm:$0xff]  }
 0x37b   : > { %4608 = vmatpush1.bf16.msra.mxu1 %v6916_v58  ;;  %v6972_v58 = vld [vmem:[%s10941_s13 + $0x204] ss:$16 sps:$4 sm:$0xff]  }
 0x37c   : > { %v2272_v7 = vpack.c.bf16 %v2263_v33, %v2254_v49  ;;  %2291 = vrot.lane.b32.xlu0 %v2271_v41, %s10994_s22  ;;  %v2349_v49 = vcombine.high %v2341_v8, %v2341_v8  ;;  %v6942_v8 = vld [vmem:[%s10941_s13 + $0x2a4] ss:$16 sps:$4 sm:$0xff]  }
 0x37e   : > { %2293 = vrot.lane.b32.xlu1 %v2272_v7, %s10994_s22  ;;  %v6921_v7 = vld [vmem:[%s10941_s13 + $0x44] ss:$16 sps:$4 sm:$0xff]  }
 0x37f   : > { %4609 = vmatprep.subr.bf16.mxu1 %v6921_v7 }
 0x389   : > { %v2158_v34 = vpop.f32.mrf.mxu1 }
 0x38a   : > { %v2159_v60 = vadd.f32 %v2158_v34, %v8912_v6 }
 0x38b   : > { %v2160_v27 = vpop.f32.mrf.mxu1 }
 0x38c   : > { %v2255_v53 = vmax.f32 %v2159_v60, 0.0  ;;  %v2161_v47 = vadd.f32 %v2160_v27, %v8912_v6 }
 0x38d   : > { %v2162_v30 = vpop.f32.mrf.mxu1 }
 0x38e   : > { %v2163_v5 = vadd.f32 %v2162_v30, %v8915_v19  ;;  %v2256_v51 = vmax.f32 %v2161_v47, 0.0  ;;  %v9003_v30 = vrot.slane %v2349_v49, %v8936_v45  ;;  %v6927_v47 = vld [vmem:[%s10941_s13 + $0x4] ss:$16 sps:$4 sm:$0xff]   ;;  %v6970_v49 = vld [vmem:[%s10941_s13 + $0x200] ss:$16 sps:$4 sm:$0xff]  }
 0x38f   : > { %v2164_v63 = vpop.f32.mrf.mxu1 }
 0x390   : > { %v2264_v61 = vmax.f32 %v2163_v5, 0.0  ;;  %v2165_v13 = vadd.f32 %v2164_v63, %v8915_v19  ;;  %v6922_v5 = vld [vmem:[%s10941_s13 + $0x20] ss:$16 sps:$4 sm:$0xff]   ;;  %v6924_v63 = vld [vmem:[%s10941_s13 + $0x24] ss:$16 sps:$4 sm:$0xff]   ;;  %v2381_v32 = vcombine.high %v9003_v30, %v9003_v30 }
 0x392   : > { %v2273_v9 = vpack.c.bf16 %v2264_v61, %v2255_v53  ;;  %v2265_v1 = vmax.f32 %v2165_v13, 0.0  ;;  %v2413_v53 = vpack.i.b16 %v9003_v30, %v9003_v30  ;;  %v6925_v13 = vld [vmem:[%s10941_s13] ss:$16 sps:$4 sm:$0xff]   ;;  %v2427_v23 = vpack.i.b16 %v2381_v32, %v2381_v32 }
 0x394   : > { %2295 = vrot.lane.b32.xlu0 %v2273_v9, %s10994_s22  ;;  %v2274_v56 = vpack.c.bf16 %v2265_v1, %v2256_v51  ;;  %v2418_v9 = vrot.slane %v2413_v53, %v8972_v0  ;;  %v6930_v51 = vld [vmem:[%s10941_s13 + $0x2e4] ss:$16 sps:$4 sm:$0xff]  }
 0x395   : > { %4642 = vmatprep.subr.bf16.mxu0 %v6930_v51  ;;  %v6984_v53 = vld [vmem:[%s10941_s13 + $0x3a4] ss:$16 sps:$4 sm:$0xff]   ;;  %v6985_v51 = vld [vmem:[%s10941_s13 + $0x380] ss:$16 sps:$4 sm:$0xff]  }
 0x398   : > { %2297 = vrot.lane.b32.xlu0 %v2274_v56, %s10994_s22  ;;  %s11064_s22 = smov 37   ;;  %v6928_v56 = vld [vmem:[%s10941_s13 + $0x2e0] ss:$16 sps:$4 sm:$0xff]  }
 0x399   : > { %4643 = vmatpush1.bf16.msra.mxu0 %v6928_v56 }
 0x39a   : > { %4644 = vmatprep.subr.bf16.mxu0 %v6936_v55 }
 0x39d   : > { %4645 = vmatpush1.bf16.msra.mxu0 %v6934_v42  ;;  %v6993_v42 = vld [vmem:[%s10941_s13 + $0x344] ss:$16 sps:$4 sm:$0xff]  }
 0x39e   : > { %4646 = vmatprep.subr.bf16.mxu0 %v6942_v8  ;;  %v6999_v8 = vld [vmem:[%s10941_s13 + $0x324] ss:$16 sps:$4 sm:$0xff]  }
 0x3b8   : > { %v2288_v28 = vpop.permute.xlu0 %2287 }
 0x3b9   : > { %v2325_v26 = vsel %vm2305_vm0, 0, %v2288_v28 }
 0x3ba   : > { %v8991_v20 = vmul.bf16 %v2411_v24, %v2325_v26  ;;  %v2290_v61 = vpop.permute.xlu1 %2289  ;;  %v6966_v24 = vld [vmem:[%s10941_s13 + $0x224] ss:$16 sps:$4 sm:$0xff]  }
 0x3bb   : > { %v2306_v1 = vsel %vm2305_vm0, %v2288_v28, %v2290_v61  ;;  %v6958_v28 = vld [vmem:[%s10941_s13 + $0x240] ss:$16 sps:$4 sm:$0xff]   ;;  %v6969_v26 = vld [vmem:[%s10941_s13 + $0x124] ss:$16 sps:$4 sm:$0xff]  }
 0x3bc   : > { %v9044_v4 = vmul.bf16 %v2418_v9, %v2306_v1  ;;  %v6987_v1 = vld [vmem:[%s10941_s13 + $0x384] ss:$16 sps:$4 sm:$0xff]  }
 0x3f2   : > { %v2201_v31 = vpop.f32.mrf.mxu1 }
 0x3f3   : > { %v2202_v62 = vadd.f32 %v2201_v31, %v8912_v6  ;;  %v2379_v31 = vcombine.high %v8959_v40, %v8959_v40  ;;  %v2292_v40 = vpop.permute.xlu0 %2291 }
 0x3f4   : > { %v2203_v22 = vpop.f32.mrf.mxu1 }
 0x3f5   : > { %v2257_v3 = vmax.f32 %v2202_v62, 0.0  ;;  %v2204_v14 = vadd.f32 %v2203_v22, %v8912_v6  ;;  %v6940_v22 = vld [vmem:[%s10941_s13 + $0x2a0] ss:$16 sps:$4 sm:$0xff]   ;;  %v2420_v37 = vpack.i.b16 %v2379_v31, %v2379_v31 }
 0x3f6   : > { %v2205_v12 = vpop.f32.mrf.mxu1  ;;  %v6943_v62 = vld [vmem:[%s10941_s13 + $0x1a0] ss:$16 sps:$4 sm:$0xff]   ;;  %4647 = vmatpush1.bf16.msra.mxu0 %v6940_v22 }
 0x3f7   : > { %v2206_v15 = vadd.f32 %v2205_v12, %v8915_v19  ;;  %v2258_v2 = vmax.f32 %v2204_v14, 0.0  ;;  %v6948_v12 = vld [vmem:[%s10941_s13 + $0x284] ss:$16 sps:$4 sm:$0xff]   ;;  %v2425_v43 = vrot.slane %v2420_v37, %v8972_v0  ;;  %v6997_v22 = vld [vmem:[%s10941_s13 + $0x320] ss:$16 sps:$4 sm:$0xff]  }
 0x3f8   : > { %v2207_v44 = vpop.f32.mrf.mxu1  ;;  %4648 = vmatprep.subr.bf16.mxu0 %v6948_v12  ;;  %v6954_v14 = vld [vmem:[%s10941_s13 + $0x264] ss:$16 sps:$4 sm:$0xff]   ;;  %v7003_v12 = vld [vmem:[%s10941_s13 + $0x300] ss:$16 sps:$4 sm:$0xff]  }
 0x3f9   : > { %v2266_v10 = vmax.f32 %v2206_v15, 0.0  ;;  %v2208_v54 = vadd.f32 %v2207_v44, %v8915_v19  ;;  %v6946_v15 = vld [vmem:[%s10941_s13 + $0x280] ss:$16 sps:$4 sm:$0xff]   ;;  %v6951_v44 = vld [vmem:[%s10941_s13 + $0x184] ss:$16 sps:$4 sm:$0xff]  }
 0x3fa   : > { %4649 = vmatpush1.bf16.msra.mxu0 %v6946_v15 }
 0x3fb   : > { %v2275_v18 = vpack.c.bf16 %v2266_v10, %v2257_v3  ;;  %v2267_v21 = vmax.f32 %v2208_v54, 0.0  ;;  %v2307_v3 = vsel %vm2305_vm0, %v2290_v61, %v2292_v40  ;;  %v6952_v10 = vld [vmem:[%s10941_s13 + $0x260] ss:$16 sps:$4 sm:$0xff]   ;;  %4650 = vmatprep.subr.bf16.mxu0 %v6954_v14 }
 0x3fc   : > { %v6955_v54 = vld [vmem:[%s10941_s13 + $0x160] ss:$16 sps:$4 sm:$0xff]  }
 0x3fd   : > { %2299 = vrot.lane.b32.xlu1 %v2275_v18, %s11064_s22  ;;  %v2276_v50 = vpack.c.bf16 %v2267_v21, %v2258_v2  ;;  %v9114_v18 = vmul.bf16 %v2425_v43, %v2307_v3  ;;  %v6960_v21 = vld [vmem:[%s10941_s13 + $0x244] ss:$16 sps:$4 sm:$0xff]   ;;  %v6961_v2 = vld [vmem:[%s10941_s13 + $0x140] ss:$16 sps:$4 sm:$0xff]  }
 0x3fe   : > { %4651 = vmatpush1.bf16.msra.mxu0 %v6952_v10  ;;  %v6982_v61 = vld [vmem:[%s10941_s13 + $0x3a0] ss:$16 sps:$4 sm:$0xff]  }
 0x3ff   : > { %v2244_v16 = vpop.f32.mrf.mxu1  ;;  %4652 = vmatprep.subr.bf16.mxu0 %v6960_v21 }
 0x400   : > { %v2245_v36 = vadd.f32 %v2244_v16, %v8912_v6  ;;  %v6919_v6 = vld [vmem:[%s10941_s13 + $0x40] ss:$16 sps:$4 sm:$0xff]  }
 0x401   : > { %v6807_v11 = vpop.f32.mrf.mxu1  ;;  %2301 = vrot.lane.b32.xlu1 %v2276_v50, %s11064_s22  ;;  %4610 = vmatpush1.bf16.msra.mxu1 %v6919_v6  ;;  %v6964_v50 = vld [vmem:[%s10941_s13 + $0x220] ss:$16 sps:$4 sm:$0xff]   ;;  %v6978_v6 = vld [vmem:[%s10941_s13 + $0x3e4] ss:$16 sps:$4 sm:$0xff]  }
 0x402   : > { %v2259_v27 = vmax.f32 %v2245_v36, 0.0  ;;  %4611 = vmatprep.subr.bf16.mxu1 %v6924_v63  ;;  %4653 = vmatpush1.bf16.msra.mxu0 %v6958_v28  ;;  %v6967_v16 = vld [vmem:[%s10941_s13 + $0x120] ss:$16 sps:$4 sm:$0xff]   ;;  %v2334_v11 = vcombine.high %v8941_v52, %v8941_v52  ;;  %v2294_v36 = vpop.permute.xlu1 %2293 }
 0x403   : > { %v2247_v41 = vpop.f32.mrf.mxu1  ;;  %4654 = vmatprep.subr.bf16.mxu0 %v6966_v24  ;;  %v6973_v52 = vld [vmem:[%s10941_s13 + $0x100] ss:$16 sps:$4 sm:$0xff]  }
 0x404   : > { %v2248_v33 = vadd.f32 %v2247_v41, %v8915_v19  ;;  %v6975_v41 = vld [vmem:[%s10941_s13 + $0x104] ss:$16 sps:$4 sm:$0xff]   ;;  %v2348_v7 = vrot.slane %v2334_v11, %v8936_v45 }
 0x405   : > { %2495 = vrot.lane.b32.xlu1 %v8991_v20, %s11023_s19  ;;  %v6808_v34 = vpop.f32.mrf.mxu1  ;;  %4612 = vmatpush1.bf16.msra.mxu1 %v6922_v5  ;;  %v6979_v5 = vld [vmem:[%s10941_s13 + $0x3c0] ss:$16 sps:$4 sm:$0xff]  }
 0x406   : > { %v2268_v60 = vmax.f32 %v2248_v33, 0.0  ;;  %4613 = vmatprep.subr.bf16.mxu1 %v6927_v47  ;;  %4655 = vmatpush1.bf16.msra.mxu0 %v6964_v50  ;;  %v2432_v33 = vrot.slane %v2427_v23, %v8972_v0  ;;  %v2308_v34 = vsel %vm2305_vm0, %v2292_v40, %v2294_v36  ;;  %v9184_v30 = vrot.slane %v2348_v7, %v8936_v45  ;;  %v2296_v47 = vpop.permute.xlu0 %2295 }
 0x407   : > { %4656 = vmatprep.subr.bf16.mxu0 %v6972_v58  ;;  %v2309_v9 = vsel %vm2305_vm0, %v2294_v36, %v2296_v47  ;;  %v2350_v55 = vcombine.high %v2348_v7, %v2348_v7  ;;  %v6387_v58 = vld.sshfl [vmem:[%s10943_s15 + $0x8] sm:$0x11 pattern:$0x75316420] }
 0x408   : > { %v2277_v19 = vpack.c.bf16 %v2268_v60, %v2259_v27  ;;  %v6976_v27 = vld [vmem:[%s10941_s13 + $0x3e0] ss:$16 sps:$4 sm:$0xff]   ;;  %v9181_v60 = vmul.bf16 %v2432_v33, %v2308_v34  ;;  %v2434_v63 = vpack.i.b16 %v9184_v30, %v9184_v30  ;;  %v2380_v43 = vcombine.high %v9184_v30, %v9184_v30 }
 0x409   : > { %2589 = vrot.lane.b32.xlu1 %v8991_v20, %s11018_s29  ;;  %4614 = vmatpush1.bf16.msra.mxu1 %v6925_v13  ;;  %v2378_v31 = vrot.slane %v2350_v55, %v8936_v45 }
 0x40a   : > { %2303 = vrot.lane.b32.xlu0 %v2277_v19, %s11064_s22  ;;  %4615 = vmatprep.subr.bf16.mxu1 %v6933_v38  ;;  %v6981_v19 = vld [vmem:[%s10941_s13 + $0x3c4] ss:$16 sps:$4 sm:$0xff]   ;;  %v2439_v13 = vrot.slane %v2434_v63, %v8972_v0  ;;  %v6988_v38 = vld [vmem:[%s10941_s13 + $0x360] ss:$16 sps:$4 sm:$0xff]   ;;  %v2298_v37 = vpop.permute.xlu0 %2297  ;;  %v2448_v3 = vpack.i.b16 %v2380_v43, %v2380_v43  ;;  %s7416_s22 = smov 104  }
 0x40b   : > { %4657 = vmatpush1.bf16.msra.mxu0 %v6970_v49  ;;  %v2310_v15 = vsel %vm2305_vm0, %v2296_v47, %v2298_v37  ;;  %v2382_v14 = vcombine.high %v2378_v31, %v2378_v31 }
 0x40c   : > { %4658 = vmatprep.subr.bf16.mxu0 %v6978_v6  ;;  %v9220_v56 = vmul.bf16 %v2439_v13, %v2309_v9  ;;  %v2453_v10 = vrot.slane %v2448_v3, %v8972_v0 }
 0x40d   : > { %2683 = vrot.lane.b32.xlu1 %v8991_v20, %s11014_s26  ;;  %4616 = vmatpush2.bf16.msra.mxu1 %v6931_v25  ;;  %v6990_v25 = vld [vmem:[%s10941_s13 + $0x364] ss:$16 sps:$4 sm:$0xff]  }
 0x40e   : > { %2542 = vrot.lane.b32.xlu0 %v8991_v20, %s11021_s28  ;;  %4617 = vmatprep.subr.bf16.mxu1 %v6939_v39  ;;  %v6996_v39 = vld [vmem:[%s10941_s13 + $0x4e4] ss:$16 sps:$4 sm:$0xff]  }
 0x40f   : > { %4659 = vmatpush2.bf16.msra.mxu0 %v6976_v27 }
 0x410   : > { %4660 = vmatprep.subr.bf16.mxu0 %v6981_v19 }
 0x411   : > { %2777 = vrot.lane.b32.xlu1 %v8991_v20, %s11010_s30  ;;  %4618 = vmatpush2.bf16.msra.mxu1 %v6937_v46  ;;  %v6991_v46 = vld [vmem:[%s10941_s13 + $0x340] ss:$16 sps:$4 sm:$0xff]  }
 0x412   : > { %2636 = vrot.lane.b32.xlu0 %v8991_v20, %s11013_s20  ;;  %4619 = vmatprep.subr.bf16.mxu1 %v6945_v29  ;;  %v7005_v29 = vld [vmem:[%s10941_s13 + $0x304] ss:$16 sps:$4 sm:$0xff]  }
 0x413   : > { %4661 = vmatpush2.bf16.msra.mxu0 %v6979_v5 }
 0x414   : > { %4662 = vmatprep.subr.bf16.mxu0 %v6984_v53 }
 0x415   : > { %2497 = vrot.lane.b32.xlu1 %v9044_v4, %s11023_s19  ;;  %4620 = vmatpush2.bf16.msra.mxu1 %v6943_v62  ;;  %v2441_v62 = vpack.i.b16 %v2378_v31, %v2378_v31 }
 0x416   : > { %2730 = vrot.lane.b32.xlu0 %v8991_v20, %s11030_s25  ;;  %4621 = vmatprep.subr.bf16.mxu1 %v6951_v44  ;;  %v7026_v44 = vld [vmem:[%s10941_s13 + $0x6e4] ss:$16 sps:$4 sm:$0xff]  }
 0x417   : > { %4663 = vmatpush2.bf16.msra.mxu0 %v6982_v61  ;;  %v2446_v40 = vrot.slane %v2441_v62, %v8972_v0 }
 0x418   : > { %4664 = vmatprep.subr.bf16.mxu0 %v6987_v1 }
 0x419   : > { %2591 = vrot.lane.b32.xlu1 %v9044_v4, %s11018_s29  ;;  %4622 = vmatpush2.bf16.msra.mxu1 %v6949_v59  ;;  %v9272_v59 = vmul.bf16 %v2446_v40, %v2310_v15 }
 0x41a   : > { %2824 = vrot.lane.b32.xlu0 %v8991_v20, %s11029_s24  ;;  %4623 = vmatprep.subr.bf16.mxu1 %v6957_v17 }
 0x41b   : > { %4665 = vmatpush2.bf16.msra.mxu0 %v6985_v51 }
 0x41c   : > { %4666 = vmatprep.subr.bf16.mxu0 %v6990_v25 }
 0x41d   : > { %2685 = vrot.lane.b32.xlu1 %v9044_v4, %s11014_s26  ;;  %4624 = vmatpush2.bf16.msra.mxu1 %v6955_v54  ;;  %v2455_v54 = vpack.i.b16 %v2382_v14, %v2382_v14 }
 0x41e   : > { %2544 = vrot.lane.b32.xlu0 %v9044_v4, %s11021_s28  ;;  %4625 = vmatprep.subr.bf16.mxu1 %v6963_v48 }
 0x41f   : > { %4667 = vmatpush2.bf16.msra.mxu0 %v6988_v38 }
 0x420   : > { %4668 = vmatprep.subr.bf16.mxu0 %v6993_v42 }
 0x421   : > { %2779 = vrot.lane.b32.xlu1 %v9044_v4, %s11010_s30  ;;  %4626 = vmatpush2.bf16.msra.mxu1 %v6961_v2  ;;  %v2460_v2 = vrot.slane %v2455_v54, %v8972_v0 }
 0x422   : > { %2638 = vrot.lane.b32.xlu0 %v9044_v4, %s11013_s20  ;;  %4627 = vmatprep.subr.bf16.mxu1 %v6969_v26 }
 0x423   : > { %4669 = vmatpush2.bf16.msra.mxu0 %v6991_v46 }
 0x424   : > { %4670 = vmatprep.subr.bf16.mxu0 %v6999_v8 }
 0x425   : > { %2546 = vrot.lane.b32.xlu1 %v9114_v18, %s11021_s28  ;;  %4628 = vmatpush2.bf16.msra.mxu1 %v6967_v16 }
 0x426   : > { %2732 = vrot.lane.b32.xlu0 %v9044_v4, %s11030_s25  ;;  %4629 = vmatprep.subr.bf16.mxu1 %v6975_v41  ;;  %v2397_v41 = vrot.slane %v6387_v58, %v8936_v45 }
 0x427   : > { %4671 = vmatpush2.bf16.msra.mxu0 %v6997_v22 }
 0x428   : > { %4672 = vmatprep.subr.bf16.mxu0 %v7005_v29  ;;  %v2462_v6 = vpack.i.b16 %v2397_v41, %v2397_v41 }
 0x429   : > { %2640 = vrot.lane.b32.xlu1 %v9114_v18, %s11013_s20  ;;  %4630 = vmatpush2.bf16.msra.mxu1 %v6973_v52  ;;  %v2390_v52 = vcombine.high %v6387_v58, %v6387_v58 }
 0x42a   : > { %2826 = vrot.lane.b32.xlu0 %v9044_v4, %s11029_s24  ;;  %4685 = vmatprep.subr.bf16.mxu1 %v6996_v39  ;;  %v2467_v19 = vrot.slane %v2462_v6, %v8972_v0 }
 0x42b   : > { %4673 = vmatpush2.bf16.msra.mxu0 %v7003_v12  ;;  %v2404_v34 = vrot.slane %v2390_v52, %v8936_v45 }
 0x42c   : > { %4728 = vmatprep.subr.bf16.mxu0 %v7026_v44 }
 0x42d   : > { %2734 = vrot.lane.b32.xlu1 %v9114_v18, %s11030_s25  ;;  %v2469_v5 = vpack.i.b16 %v2404_v34, %v2404_v34 }
 0x42e   : > { %2499 = vrot.lane.b32.xlu0 %v9114_v18, %s11023_s19 }
 0x42f   : > { %v2474_v47 = vrot.slane %v2469_v5, %v8972_v0  ;;  %v6994_v5 = vld [vmem:[%s10941_s13 + $0x4e0] ss:$16 sps:$4 sm:$0xff]  }
 0x431   : > { %2828 = vrot.lane.b32.xlu1 %v9114_v18, %s11029_s24 }
 0x432   : > { %2593 = vrot.lane.b32.xlu0 %v9114_v18, %s11018_s29 }
 0x435   : > { %2548 = vrot.lane.b32.xlu1 %v9181_v60, %s11021_s28 }
 0x436   : > { %2687 = vrot.lane.b32.xlu0 %v9114_v18, %s11014_s26 }
 0x439   : > { %2642 = vrot.lane.b32.xlu1 %v9181_v60, %s11013_s20 }
 0x43a   : > { %2781 = vrot.lane.b32.xlu0 %v9114_v18, %s11010_s30 }
 0x43d   : > { %2736 = vrot.lane.b32.xlu1 %v9181_v60, %s11030_s25 }
 0x43e   : > { %2501 = vrot.lane.b32.xlu0 %v9181_v60, %s11023_s19 }
 0x441   : > { %2503 = vrot.lane.b32.xlu1 %v9220_v56, %s11023_s19 }
 0x442   : > { %2595 = vrot.lane.b32.xlu0 %v9181_v60, %s11018_s29 }
 0x445   : > { %2597 = vrot.lane.b32.xlu1 %v9220_v56, %s11018_s29 }
 0x446   : > { %2689 = vrot.lane.b32.xlu0 %v9181_v60, %s11014_s26 }
 0x449   : > { %2691 = vrot.lane.b32.xlu1 %v9220_v56, %s11014_s26 }
 0x44a   : > { %2783 = vrot.lane.b32.xlu0 %v9181_v60, %s11010_s30 }
 0x44d   : > { %2785 = vrot.lane.b32.xlu1 %v9220_v56, %s11010_s30 }
 0x44e   : > { %2550 = vrot.lane.b32.xlu0 %v9220_v56, %s11021_s28 }
 0x451   : > { %2830 = vrot.lane.b32.xlu1 %v9181_v60, %s11029_s24 }
 0x452   : > { %2644 = vrot.lane.b32.xlu0 %v9220_v56, %s11013_s20 }
 0x455   : > { %2505 = vrot.lane.b32.xlu1 %v9272_v59, %s11023_s19 }
 0x456   : > { %2738 = vrot.lane.b32.xlu0 %v9220_v56, %s11030_s25 }
 0x459   : > { %2552 = vrot.lane.b32.xlu1 %v9272_v59, %s11021_s28 }
 0x45a   : > { %2832 = vrot.lane.b32.xlu0 %v9220_v56, %s11029_s24 }
 0x45d   : > { %2599 = vrot.lane.b32.xlu1 %v9272_v59, %s11018_s29 }
 0x461   : > { %2646 = vrot.lane.b32.xlu1 %v9272_v59, %s11013_s20 }
 0x465   : > { %2693 = vrot.lane.b32.xlu1 %v9272_v59, %s11014_s26 }
 0x469   : > { %2740 = vrot.lane.b32.xlu1 %v9272_v59, %s11030_s25 }
 0x46d   : > { %2787 = vrot.lane.b32.xlu1 %v9272_v59, %s11010_s30 }
 0x46f   : > { %v2300_v17 = vpop.permute.xlu1 %2299 }
 0x470   : > { %v2311_v21 = vsel %vm2305_vm0, %v2298_v37, %v2300_v17 }
 0x471   : > { %v9299_v28 = vmul.bf16 %v2453_v10, %v2311_v21  ;;  %2834 = vrot.lane.b32.xlu1 %v9272_v59, %s11029_s24 }
 0x473   : > { %v2302_v48 = vpop.permute.xlu1 %2301  ;;  %2507 = vrot.lane.b32.xlu0 %v9299_v28, %s11023_s19 }
 0x474   : > { %v2312_v32 = vsel %vm2305_vm0, %v2300_v17, %v2302_v48 }
 0x475   : > { %v9307_v24 = vmul.bf16 %v2460_v2, %v2312_v32 }
 0x477   : > { %v2496_v50 = vpop.permute.xlu1 %2495  ;;  %2554 = vrot.lane.b32.xlu0 %v9299_v28, %s11021_s28  ;;  %2509 = vrot.lane.b32.xlu1 %v9307_v24, %s11023_s19 }
 0x47b   : > { %v2590_v16 = vpop.permute.xlu1 %2589  ;;  %2601 = vrot.lane.b32.xlu0 %v9299_v28, %s11018_s29  ;;  %2556 = vrot.lane.b32.xlu1 %v9307_v24, %s11021_s28 }
 0x47c   : > { %v2304_v26 = vpop.permute.xlu0 %2303 }
 0x47d   : > { %v2313_v63 = vsel %vm2305_vm0, %v2302_v48, %v2304_v26  ;;  %v2328_v13 = vsel %vm2305_vm0, %v2304_v26, 0  ;;  %vm11072_vm0 = vmmov %vm11066_vm4 }
 0x47e   : > { %v9351_v61 = vmul.bf16 %v2467_v19, %v2313_v63  ;;  %v9359_v25 = vmul.bf16 %v2474_v47, %v2328_v13  ;;  %v7000_v13 = vld [vmem:[%s10941_s13 + $0x4c0] ss:$16 sps:$4 sm:$0xff]  }
 0x47f   : > { %v9317_v23 = vpop.permute.xlu1 %2683  ;;  %2648 = vrot.lane.b32.xlu0 %v9299_v28, %s11013_s20  ;;  %2603 = vrot.lane.b32.xlu1 %v9307_v24, %s11018_s29 }
 0x480   : > { %v2543_v11 = vpop.permute.xlu0 %2542 }
 0x483   : > { %v9326_v36 = vpop.permute.xlu1 %2777  ;;  %2695 = vrot.lane.b32.xlu0 %v9299_v28, %s11014_s26  ;;  %2650 = vrot.lane.b32.xlu1 %v9307_v24, %s11013_s20 }
 0x484   : > { %v2637_v49 = vpop.permute.xlu0 %2636 }
 0x487   : > { %v2498_v33 = vpop.permute.xlu1 %2497  ;;  %2742 = vrot.lane.b32.xlu0 %v9299_v28, %s11030_s25  ;;  %2697 = vrot.lane.b32.xlu1 %v9307_v24, %s11014_s26 }
 0x488   : > { %v2731_v7 = vpop.permute.xlu0 %2730  ;;  %v2515_v1 = vsel %vm601_vm15, %v2496_v50, %v2498_v33 }
 0x489   : > { %v2533_v0 = vmax.bf16 %v2515_v1, %v8991_v20  ;;  %v7008_v1 = vld [vmem:[%s10941_s13 + $0x4a4] ss:$16 sps:$4 sm:$0xff]  }
 0x48b   : > { %v2592_v27 = vpop.permute.xlu1 %2591  ;;  %2789 = vrot.lane.b32.xlu0 %v9299_v28, %s11010_s30  ;;  %2744 = vrot.lane.b32.xlu1 %v9307_v24, %s11030_s25 }
 0x48c   : > { %v9342_v30 = vpop.permute.xlu0 %2824  ;;  %v2609_v20 = vsel %vm721_vm7, %v2590_v16, %v2592_v27 }
 0x48f   : > { %v2686_v53 = vpop.permute.xlu1 %2685  ;;  %2836 = vrot.lane.b32.xlu0 %v9299_v28, %s11029_s24  ;;  %2791 = vrot.lane.b32.xlu1 %v9307_v24, %s11010_s30 }
 0x490   : > { %v2545_v45 = vpop.permute.xlu0 %2544  ;;  %v2703_v43 = vsel %vm781_vm1, %v9317_v23, %v2686_v53 }
 0x491   : > { %v2562_v38 = vsel %vm11065_vm6, %v2543_v11, %v2545_v45  ;;  %vm11073_vm6 = vmmov %vm11067_vm5 }
 0x492   : > { %v2580_v46 = vmax.bf16 %v2562_v38, %v2533_v0 }
 0x493   : > { %v2780_v9 = vpop.permute.xlu1 %2779  ;;  %2838 = vrot.lane.b32.xlu1 %v9307_v24, %s11029_s24  ;;  %2511 = vrot.lane.b32.xlu0 %v9351_v61, %s11023_s19 }
 0x494   : > { %v2639_v51 = vpop.permute.xlu0 %2638  ;;  %v2627_v8 = vmax.bf16 %v2609_v20, %v2580_v46  ;;  %v2797_v58 = vsel %vm11069_vm11, %v9326_v36, %v2780_v9  ;;  %v7011_v46 = vld [vmem:[%s10941_s13 + $0x484] ss:$16 sps:$4 sm:$0xff]   ;;  %vm11077_vm11 = vmmov %vm11072_vm0 }
 0x495   : > { %v2656_v22 = vsel %vm751_vm2, %v2637_v49, %v2639_v51 }
 0x496   : > { %v2674_v37 = vmax.bf16 %v2656_v22, %v2627_v8  ;;  %v7009_v8 = vld [vmem:[%s10941_s13 + $0x480] ss:$16 sps:$4 sm:$0xff]  }
 0x497   : > { %v9363_v55 = vpop.permute.xlu1 %2546  ;;  %2513 = vrot.lane.b32.xlu1 %v9359_v25, %s11023_s19  ;;  %2558 = vrot.lane.b32.xlu0 %v9351_v61, %s11021_s28 }
 0x498   : > { %v2733_v42 = vpop.permute.xlu0 %2732  ;;  %v2563_v15 = vsel %vm11066_vm4, %v2545_v45, %v9363_v55  ;;  %v2721_v10 = vmax.bf16 %v2703_v43, %v2674_v37  ;;  %v7014_v37 = vld [vmem:[%s10941_s13 + $0x464] ss:$16 sps:$4 sm:$0xff]   ;;  %vm11074_vm4 = vmmov %vm11067_vm5 }
 0x49b   : > { %v9369_v39 = vpop.permute.xlu1 %2640  ;;  %2607 = vrot.lane.b32.xlu1 %v9359_v25, %s11018_s29  ;;  %2605 = vrot.lane.b32.xlu0 %v9351_v61, %s11018_s29  ;;  %s7409_s29 = smov 68  }
 0x49c   : > { %v2827_v31 = vpop.permute.xlu0 %2826  ;;  %v2657_v21 = vsel %vm751_vm2, %v2639_v51, %v9369_v39 }
 0x49f   : > { %v9377_v62 = vpop.permute.xlu1 %2734  ;;  %2701 = vrot.lane.b32.xlu1 %v9359_v25, %s11014_s26  ;;  %2652 = vrot.lane.b32.xlu0 %v9351_v61, %s11013_s20 }
 0x4a0   : > { %v2500_v29 = vpop.permute.xlu0 %2499  ;;  %v2751_v23 = vsel %vm11068_vm9, %v2733_v42, %v9377_v62 }
 0x4a1   : > { %v2516_v12 = vsel %vm601_vm15, %v2498_v33, %v2500_v29 }
 0x4a2   : > { %v2534_v40 = vmax.bf16 %v2516_v12, %v9044_v4  ;;  %v2750_v4 = vsel %vm11067_vm5, %v2731_v7, %v2733_v42  ;;  %v2844_v7 = vsel %vm931_vm8, %v9342_v30, %v2827_v31  ;;  %v7002_v30 = vld [vmem:[%s10941_s13 + $0x4c4] ss:$16 sps:$4 sm:$0xff]   ;;  %vm11075_vm5 = vmmov %vm11070_vm10 }
 0x4a3   : > { %v9387_v44 = vpop.permute.xlu1 %2828  ;;  %2795 = vrot.lane.b32.xlu1 %v9359_v25, %s11010_s30  ;;  %2699 = vrot.lane.b32.xlu0 %v9351_v61, %s11014_s26  ;;  %v2768_v50 = vmax.bf16 %v2750_v4, %v2721_v10  ;;  %vm11076_vm9 = vmmov %vm11075_vm5  ;;  %s7408_s26 = smov 108  }
 0x4a4   : > { %v2581_v3 = vmax.bf16 %v2563_v15, %v2534_v40  ;;  %v2594_v14 = vpop.permute.xlu0 %2593  ;;  %v2845_v6 = vsel %vm931_vm8, %v2827_v31, %v9387_v44 }
 0x4a5   : > { %v2610_v54 = vsel %vm721_vm7, %v2592_v27, %v2594_v14  ;;  %v2815_v41 = vmax.bf16 %v2797_v58, %v2768_v50 }
 0x4a6   : > { %v2628_v17 = vmax.bf16 %v2610_v54, %v2581_v3  ;;  %v7012_v3 = vld [vmem:[%s10941_s13 + $0x460] ss:$16 sps:$4 sm:$0xff]  }
 0x4a7   : > { %v9399_v2 = vpop.permute.xlu1 %2548  ;;  %2746 = vrot.lane.b32.xlu0 %v9351_v61, %s11030_s25  ;;  %v9432_v63 = vmax.bf16 %v2844_v7, %v2815_v41 }
 0x4a8   : > { %v2675_v48 = vmax.bf16 %v2657_v21, %v2628_v17  ;;  %v9403_v32 = vpop.permute.xlu0 %2687  ;;  %v2564_v38 = vsel %vm11071_vm12, %v9363_v55, %v9399_v2  ;;  %vm11079_vm12 = vmmov %vm11074_vm4 }
 0x4a9   : > { %v2704_v16 = vsel %vm781_vm1, %v2686_v53, %v9403_v32 }
 0x4aa   : > { %v2722_v26 = vmax.bf16 %v2704_v16, %v2675_v48 }
 0x4ab   : > { %v9409_v11 = vpop.permute.xlu1 %2642  ;;  %2793 = vrot.lane.b32.xlu0 %v9351_v61, %s11010_s30  ;;  %s7406_s30 = smov 107  }
 0x4ac   : > { %v2769_v49 = vmax.bf16 %v2751_v23, %v2722_v26  ;;  %v9415_v52 = vpop.permute.xlu0 %2781  ;;  %v2658_v40 = vsel %vm751_vm2, %v9369_v39, %v9409_v11 }
 0x4ad   : > { %v2798_v33 = vsel %vm11070_vm10, %v2780_v9, %v9415_v52  ;;  %vm11078_vm10 = vmmov %vm11072_vm0 }
 0x4ae   : > { %v2816_v34 = vmax.bf16 %v2798_v33, %v2769_v49 }
 0x4af   : > { %v9423_v27 = vpop.permute.xlu1 %2736  ;;  %2840 = vrot.lane.b32.xlu0 %v9351_v61, %s11029_s24 }
 0x4b0   : > { %v2502_v36 = vpop.permute.xlu0 %2501  ;;  %v9427_v19 = vmax.bf16 %v2845_v6, %v2816_v34  ;;  %v2752_v58 = vsel %vm11073_vm6, %v9377_v62, %v9423_v27  ;;  %v7023_v34 = vld [vmem:[%s10941_s13 + $0x404] ss:$16 sps:$4 sm:$0xff]   ;;  %vm11081_vm6 = vmmov %vm11075_vm5 }
 0x4b1   : > { %v2517_v53 = vsel %vm601_vm15, %v2500_v29, %v2502_v36 }
 0x4b2   : > { %4631 = vmatprep.mubr.bf16.mxu1 %v9427_v19  ;;  %v2535_v9 = vmax.bf16 %v2517_v53, %v9114_v18  ;;  %v7006_v18 = vld [vmem:[%s10941_s13 + $0x4a0] ss:$16 sps:$4 sm:$0xff]  }
 0x4b3   : > { %v9439_v45 = vpop.permute.xlu1 %2503  ;;  %2560 = vrot.lane.b32.xlu0 %v9359_v25, %s11021_s28  ;;  %4632 = vmatmul.mubr.bf16.vlgmr.msra.gmra.mxu1 %v9432_v63 }
 0x4b4   : > { %v2596_v47 = vpop.permute.xlu0 %2595  ;;  %4686 = vmatpush1.bf16.msra.mxu1 %v6994_v5  ;;  %v2582_v42 = vmax.bf16 %v2564_v38, %v2535_v9  ;;  %v2518_v22 = vsel %vm601_vm15, %v2502_v36, %v9439_v45  ;;  %v7029_v9 = vld [vmem:[%s10941_s13 + $0x5e4] ss:$16 sps:$4 sm:$0xff]  }
 0x4b5   : > { %4687 = vmatprep.subr.bf16.mxu1 %v7002_v30  ;;  %v2611_v20 = vsel %vm721_vm7, %v2594_v14, %v2596_v47  ;;  %v2536_v15 = vmax.bf16 %v2518_v22, %v9181_v60  ;;  %v7033_v22 = vld [vmem:[%s10941_s13 + $0x5c0] ss:$16 sps:$4 sm:$0xff]  }
 0x4b6   : > { %v2629_v29 = vmax.bf16 %v2611_v20, %v2582_v42  ;;  %v7027_v42 = vld [vmem:[%s10941_s13 + $0x5e0] ss:$16 sps:$4 sm:$0xff]  }
 0x4b7   : > { %v9451_v51 = vpop.permute.xlu1 %2597  ;;  %2654 = vrot.lane.b32.xlu0 %v9359_v25, %s11013_s20  ;;  %v7030_v20 = vld [vmem:[%s10941_s13 + $0x6c0] ss:$16 sps:$4 sm:$0xff]   ;;  %s7407_s20 = smov 105  }
 0x4b8   : > { %v2690_v0 = vpop.permute.xlu0 %2689  ;;  %4688 = vmatpush1.bf16.msra.mxu1 %v7000_v13  ;;  %v2676_v14 = vmax.bf16 %v2658_v40, %v2629_v29  ;;  %v2612_v54 = vsel %vm721_vm7, %v2596_v47, %v9451_v51  ;;  %v7021_v47 = vld [vmem:[%s10941_s13 + $0x400] ss:$16 sps:$4 sm:$0xff]   ;;  %v7041_v29 = vld [vmem:[%s10941_s13 + $0x5a4] ss:$16 sps:$4 sm:$0xff]  }
 0x4b9   : > { %4689 = vmatprep.subr.bf16.mxu1 %v7008_v1  ;;  %v2705_v60 = vsel %vm781_vm1, %v9403_v32, %v2690_v0  ;;  %v7020_v32 = vld [vmem:[%s10941_s13 + $0x424] ss:$16 sps:$4 sm:$0xff]  }
 0x4ba   : > { %v2723_v48 = vmax.bf16 %v2705_v60, %v2676_v14  ;;  %v7047_v14 = vld [vmem:[%s10941_s13 + $0x584] ss:$16 sps:$4 sm:$0xff]   ;;  %v7045_v60 = vld [vmem:[%s10941_s13 + $0x580] ss:$16 sps:$4 sm:$0xff]  }
 0x4bb   : > { %v9465_v31 = vpop.permute.xlu1 %2691  ;;  %2748 = vrot.lane.b32.xlu0 %v9359_v25, %s11030_s25  ;;  %s7411_s25 = smov 84  }
 0x4bc   : > { %v2784_v55 = vpop.permute.xlu0 %2783  ;;  %4690 = vmatpush1.bf16.msra.mxu1 %v7006_v18  ;;  %v2706_v26 = vsel %vm781_vm1, %v2690_v0, %v9465_v31  ;;  %v2770_v33 = vmax.bf16 %v2752_v58, %v2723_v48  ;;  %v7032_v18 = vld [vmem:[%s10941_s13 + $0x6c4] ss:$16 sps:$4 sm:$0xff]  }
 0x4bd   : > { %4691 = vmatprep.subr.bf16.mxu1 %v7011_v46  ;;  %v2799_v62 = vsel %vm11075_vm5, %v9415_v52, %v2784_v55  ;;  %v7035_v46 = vld [vmem:[%s10941_s13 + $0x5c4] ss:$16 sps:$4 sm:$0xff]  }
 0x4be   : > { %v2817_v13 = vmax.bf16 %v2799_v62, %v2770_v33  ;;  %v7059_v48 = vld [vmem:[%s10941_s13 + $0x544] ss:$16 sps:$4 sm:$0xff]  }
 0x4bf   : > { %v9477_v12 = vpop.permute.xlu1 %2785  ;;  %2842 = vrot.lane.b32.xlu0 %v9359_v25, %s11029_s24  ;;  %v7017_v25 = vld [vmem:[%s10941_s13 + $0x444] ss:$16 sps:$4 sm:$0xff]   ;;  %s7415_s24 = smov 87  }
 0x4c0   : > { %v9485_v43 = vpop.permute.xlu0 %2550  ;;  %4692 = vmatpush1.bf16.msra.mxu1 %v7009_v8  ;;  %v2800_v36 = vsel %vm11076_vm9, %v2784_v55, %v9477_v12  ;;  %v7038_v8 = vld [vmem:[%s10941_s13 + $0x6a4] ss:$16 sps:$4 sm:$0xff]  }
 0x4c1   : > { %v2565_v10 = vsel %vm11072_vm0, %v9399_v2, %v9485_v43  ;;  %4693 = vmatprep.subr.bf16.mxu1 %v7014_v37  ;;  %v7015_v2 = vld [vmem:[%s10941_s13 + $0x440] ss:$16 sps:$4 sm:$0xff]   ;;  %v7068_v33 = vld [vmem:[%s10941_s13 + $0x604] ss:$16 sps:$4 sm:$0xff]   ;;  %vm11080_vm0 = vmmov %vm11074_vm4 }
 0x4c2   : > { %v2583_v39 = vmax.bf16 %v2565_v10, %v2536_v15  ;;  %v7036_v37 = vld [vmem:[%s10941_s13 + $0x6a0] ss:$16 sps:$4 sm:$0xff]   ;;  %v7044_v15 = vld [vmem:[%s10941_s13 + $0x684] ss:$16 sps:$4 sm:$0xff]  }
 0x4c3   : > { %v2831_v4 = vpop.permute.xlu1 %2830  ;;  %v7042_v10 = vld [vmem:[%s10941_s13 + $0x680] ss:$16 sps:$4 sm:$0xff]  }
 0x4c4   : > { %v2630_v17 = vmax.bf16 %v2612_v54, %v2583_v39  ;;  %v9500_v21 = vpop.permute.xlu0 %2644  ;;  %4694 = vmatpush1.bf16.msra.mxu1 %v7012_v3  ;;  %v2846_v30 = vsel %vm931_vm8, %v9387_v44, %v2831_v4  ;;  %v7024_v44 = vld [vmem:[%s10941_s13 + $0x6e0] ss:$16 sps:$4 sm:$0xff]   ;;  %v7053_v54 = vld [vmem:[%s10941_s13 + $0x564] ss:$16 sps:$4 sm:$0xff]  }
 0x4c5   : > { %v2659_v50 = vsel %vm751_vm2, %v9409_v11, %v9500_v21  ;;  %4695 = vmatprep.subr.bf16.mxu1 %v7017_v25  ;;  %v7018_v11 = vld [vmem:[%s10941_s13 + $0x420] ss:$16 sps:$4 sm:$0xff]   ;;  %v9552_v38 = vmax.bf16 %v2846_v30, %v2817_v13  ;;  %v7050_v25 = vld [vmem:[%s10941_s13 + $0x664] ss:$16 sps:$4 sm:$0xff]  }
 0x4c6   : > { %v2677_v16 = vmax.bf16 %v2659_v50, %v2630_v17  ;;  %v7039_v3 = vld [vmem:[%s10941_s13 + $0x5a0] ss:$16 sps:$4 sm:$0xff]   ;;  %v7056_v17 = vld [vmem:[%s10941_s13 + $0x644] ss:$16 sps:$4 sm:$0xff]  }
 0x4c7   : > { %v9513_v23 = vpop.permute.xlu1 %2505  ;;  %v7054_v50 = vld [vmem:[%s10941_s13 + $0x640] ss:$16 sps:$4 sm:$0xff]   ;;  %v7074_v30 = vld [vmem:[%s10941_s13 + $0x7e4] ss:$16 sps:$4 sm:$0xff]  }
 0x4c8   : > { %v2724_v49 = vmax.bf16 %v2706_v26, %v2677_v16  ;;  %v9518_v41 = vpop.permute.xlu0 %2738  ;;  %4696 = vmatpush1.bf16.msra.mxu1 %v7015_v2  ;;  %v7051_v2 = vld [vmem:[%s10941_s13 + $0x560] ss:$16 sps:$4 sm:$0xff]   ;;  %v7062_v16 = vld [vmem:[%s10941_s13 + $0x624] ss:$16 sps:$4 sm:$0xff]  }
 0x4c9   : > { %v2753_v7 = vsel %vm11074_vm4, %v9423_v27, %v9518_v41  ;;  %4697 = vmatprep.subr.bf16.mxu1 %v7020_v32  ;;  %v7057_v26 = vld [vmem:[%s10941_s13 + $0x540] ss:$16 sps:$4 sm:$0xff]   ;;  %vm11082_vm4 = vmmov %vm11075_vm5 }
 0x4ca   : > { %v2771_v6 = vmax.bf16 %v2753_v7, %v2724_v49  ;;  %v7065_v49 = vld [vmem:[%s10941_s13 + $0x524] ss:$16 sps:$4 sm:$0xff]   ;;  %v7063_v7 = vld [vmem:[%s10941_s13 + $0x520] ss:$16 sps:$4 sm:$0xff]   ;;  %vm11083_vm5 = vmmov %vm11078_vm10 }
 0x4cb   : > { %v9533_v5 = vpop.permute.xlu1 %2552  ;;  %vm11084_vm9 = vmmov %vm11083_vm5 }
 0x4cc   : > { %v9537_v53 = vpop.permute.xlu0 %2832  ;;  %v2818_v27 = vmax.bf16 %v2800_v36, %v2771_v6  ;;  %4698 = vmatpush1.bf16.msra.mxu1 %v7018_v11  ;;  %v7060_v11 = vld [vmem:[%s10941_s13 + $0x620] ss:$16 sps:$4 sm:$0xff]   ;;  %v7071_v6 = vld [vmem:[%s10941_s13 + $0x504] ss:$16 sps:$4 sm:$0xff]  }
 0x4cd   : > { %v2847_v52 = vsel %vm931_vm8, %v2831_v4, %v9537_v53  ;;  %4699 = vmatprep.subr.bf16.mxu1 %v7023_v34  ;;  %v7048_v4 = vld [vmem:[%s10941_s13 + $0x660] ss:$16 sps:$4 sm:$0xff]  }
 0x4ce   : > { %v9547_v1 = vmax.bf16 %v2847_v52, %v2818_v27  ;;  %v7066_v36 = vld [vmem:[%s10941_s13 + $0x600] ss:$16 sps:$4 sm:$0xff]   ;;  %v7086_v52 = vld [vmem:[%s10941_s13 + $0x8e4] ss:$16 sps:$4 sm:$0xff]  }
 0x4cf   : > { %v9554_v0 = vpop.permute.xlu1 %2599  ;;  %v7069_v27 = vld [vmem:[%s10941_s13 + $0x500] ss:$16 sps:$4 sm:$0xff]  }
 0x4d0   : > { %4674 = vmatprep.mubr.bf16.mxu0 %v9547_v1  ;;  %4700 = vmatpush1.bf16.msra.mxu1 %v7021_v47 }
 0x4d1   : > { %4675 = vmatmul.mubr.bf16.vlgmr.msra.gmra.mxu0 %v9552_v38  ;;  %4701 = vmatprep.subr.bf16.mxu1 %v7029_v9  ;;  %v7072_v9 = vld [vmem:[%s10941_s13 + $0x7e0] ss:$16 sps:$4 sm:$0xff]  }
 0x4d2   : > { %4729 = vmatpush1.bf16.msra.mxu0 %v7024_v44  ;;  %v7077_v44 = vld [vmem:[%s10941_s13 + $0x7c4] ss:$16 sps:$4 sm:$0xff]  }
 0x4d3   : > { %v9570_v55 = vpop.permute.xlu1 %2646  ;;  %4730 = vmatprep.subr.bf16.mxu0 %v7032_v18 }
 0x4d4   : > { %4702 = vmatpush2.bf16.msra.mxu1 %v7027_v42 }
 0x4d5   : > { %4703 = vmatprep.subr.bf16.mxu1 %v7035_v46  ;;  %v7075_v46 = vld [vmem:[%s10941_s13 + $0x7c0] ss:$16 sps:$4 sm:$0xff]  }
 0x4d6   : > { %4731 = vmatpush1.bf16.msra.mxu0 %v7030_v20  ;;  %v2519_v20 = vsel %vm601_vm15, %v9439_v45, %v9513_v23 }
 0x4d7   : > { %v9584_v40 = vpop.permute.xlu1 %2693  ;;  %4732 = vmatprep.subr.bf16.mxu0 %v7038_v8  ;;  %v2537_v45 = vmax.bf16 %v2519_v20, %v9220_v56 }
 0x4d8   : > { %4704 = vmatpush2.bf16.msra.mxu1 %v7033_v22  ;;  %v7080_v22 = vld [vmem:[%s10941_s13 + $0x7a4] ss:$16 sps:$4 sm:$0xff]  }
 0x4d9   : > { %4705 = vmatprep.subr.bf16.mxu1 %v7041_v29 }
 0x4da   : > { %4733 = vmatpush1.bf16.msra.mxu0 %v7036_v37  ;;  %v2566_v37 = vsel %vm11078_vm10, %v9485_v43, %v9533_v5  ;;  %vm11086_vm10 = vmmov %vm11080_vm0 }
 0x4db   : > { %4734 = vmatprep.subr.bf16.mxu0 %v7044_v15  ;;  %v9604_v39 = vpop.permute.xlu1 %2740  ;;  %v2584_v56 = vmax.bf16 %v2566_v37, %v2537_v45  ;;  %v7107_v37 = vld [vmem:[%s10941_s13 + $0x704] ss:$16 sps:$4 sm:$0xff]  }
 0x4dc   : > { %4706 = vmatpush2.bf16.msra.mxu1 %v7039_v3 }
 0x4dd   : > { %4707 = vmatprep.subr.bf16.mxu1 %v7047_v14  ;;  %v7078_v14 = vld [vmem:[%s10941_s13 + $0x7a0] ss:$16 sps:$4 sm:$0xff]  }
 0x4de   : > { %4735 = vmatpush1.bf16.msra.mxu0 %v7042_v10  ;;  %v2613_v10 = vsel %vm721_vm7, %v9451_v51, %v9554_v0 }
 0x4df   : > { %4736 = vmatprep.subr.bf16.mxu0 %v7050_v25  ;;  %v9624_v32 = vpop.permute.xlu1 %2787  ;;  %v2660_v25 = vsel %vm751_vm2, %v9500_v21, %v9570_v55  ;;  %v2631_v51 = vmax.bf16 %v2613_v10, %v2584_v56  ;;  %v7096_v10 = vld [vmem:[%s10941_s13 + $0x8a0] ss:$16 sps:$4 sm:$0xff]  }
 0x4e0   : > { %4708 = vmatpush2.bf16.msra.mxu1 %v7045_v60 }
 0x4e1   : > { %4709 = vmatprep.subr.bf16.mxu1 %v7053_v54 }
 0x4e2   : > { %4737 = vmatpush1.bf16.msra.mxu0 %v7048_v4 }
 0x4e3   : > { %4738 = vmatprep.subr.bf16.mxu0 %v7056_v17  ;;  %v9646_v34 = vpop.permute.xlu1 %2834  ;;  %v7081_v17 = vld [vmem:[%s10941_s13 + $0x780] ss:$16 sps:$4 sm:$0xff]  }
 0x4e4   : > { %4710 = vmatpush2.bf16.msra.mxu1 %v7051_v2  ;;  %v2707_v2 = vsel %vm781_vm1, %v9465_v31, %v9584_v40 }
 0x4e5   : > { %v9632_v58 = vpop.permute.xlu0 %2507  ;;  %4711 = vmatprep.subr.bf16.mxu1 %v7059_v48  ;;  %v2678_v48 = vmax.bf16 %v2660_v25, %v2631_v51  ;;  %v7110_v25 = vld [vmem:[%s10941_s13 + $0x864] ss:$16 sps:$4 sm:$0xff]  }
 0x4e6   : > { %4739 = vmatpush1.bf16.msra.mxu0 %v7054_v50  ;;  %v2520_v42 = vsel %vm601_vm15, %v9513_v23, %v9632_v58 }
 0x4e7   : > { %4740 = vmatprep.subr.bf16.mxu0 %v7062_v16  ;;  %v2538_v15 = vmax.bf16 %v2520_v42, %v9272_v59  ;;  %v7083_v59 = vld [vmem:[%s10941_s13 + $0x784] ss:$16 sps:$4 sm:$0xff]   ;;  %v2754_v16 = vsel %vm11080_vm0, %v9518_v41, %v9604_v39 }
 0x4e8   : > { %4712 = vmatpush2.bf16.msra.mxu1 %v7057_v26 }
 0x4e9   : > { %v9648_v62 = vpop.permute.xlu0 %2554  ;;  %4713 = vmatprep.subr.bf16.mxu1 %v7065_v49  ;;  %v9662_v47 = vpop.permute.xlu1 %2509 }
 0x4ea   : > { %4741 = vmatpush1.bf16.msra.mxu0 %v7060_v11  ;;  %v2567_v29 = vsel %vm11077_vm11, %v9533_v5, %v9648_v62  ;;  %v2725_v11 = vmax.bf16 %v2707_v2, %v2678_v48  ;;  %v7108_v2 = vld [vmem:[%s10941_s13 + $0x860] ss:$16 sps:$4 sm:$0xff]   ;;  %vm11085_vm11 = vmmov %vm11080_vm0 }
 0x4eb   : > { %4742 = vmatprep.subr.bf16.mxu0 %v7068_v33  ;;  %v2585_v43 = vmax.bf16 %v2567_v29, %v2538_v15  ;;  %v2801_v33 = vsel %vm11082_vm4, %v9477_v12, %v9624_v32  ;;  %v7090_v29 = vld [vmem:[%s10941_s13 + $0x8c0] ss:$16 sps:$4 sm:$0xff]   ;;  %v7098_v15 = vld [vmem:[%s10941_s13 + $0x8a4] ss:$16 sps:$4 sm:$0xff]   ;;  %vm11088_vm0 = vmmov %vm11082_vm4 }
 0x4ec   : > { %4714 = vmatpush2.bf16.msra.mxu1 %v7063_v7 }
 0x4ed   : > { %v9664_v13 = vpop.permute.xlu0 %2601  ;;  %4715 = vmatprep.subr.bf16.mxu1 %v7071_v6  ;;  %v9686_v8 = vpop.permute.xlu1 %2556  ;;  %v2772_v6 = vmax.bf16 %v2754_v16, %v2725_v11 }
 0x4ee   : > { %4743 = vmatpush1.bf16.msra.mxu0 %v7066_v36  ;;  %v2614_v23 = vsel %vm721_vm7, %v9554_v0, %v9664_v13  ;;  %v2848_v36 = vsel %vm931_vm8, %v9537_v53, %v9646_v34  ;;  %v7101_v53 = vld [vmem:[%s10941_s13 + $0x724] ss:$16 sps:$4 sm:$0xff]   ;;  %v2568_v48 = vsel %vm11084_vm9, %v9648_v62, %v9686_v8  ;;  %v7114_v62 = vld [vmem:[%s10941_s13 + $0x840] ss:$16 sps:$4 sm:$0xff]   ;;  %vm11092_vm9 = vcmask 1022976  }
 0x4ef   : > { %4744 = vmatprep.subr.bf16.mxu0 %v7074_v30  ;;  %v2632_v60 = vmax.bf16 %v2614_v23, %v2585_v43  ;;  %v7105_v23 = vld [vmem:[%s10941_s13 + $0x700] ss:$16 sps:$4 sm:$0xff]   ;;  %v7113_v43 = vld [vmem:[%s10941_s13 + $0xec] ss:$16 sps:$4 sm:$0xff]  }
 0x4f0   : > { %4716 = vmatpush2.bf16.msra.mxu1 %v7069_v27 }
 0x4f1   : > { %v9675_v18 = vpop.permute.xlu0 %2648  ;;  %4771 = vmatprep.subr.bf16.mxu1 %v7086_v52  ;;  %v9719_v54 = vpop.permute.xlu1 %2603  ;;  %v2819_v52 = vmax.bf16 %v2801_v33, %v2772_v6 }
 0x4f2   : > { %4745 = vmatpush2.bf16.msra.mxu0 %v7072_v9  ;;  %v2661_v5 = vsel %vm751_vm2, %v9570_v55, %v9675_v18  ;;  %v7089_v55 = vld [vmem:[%s10941_s13 + $0x764] ss:$16 sps:$4 sm:$0xff]  }
 0x4f3   : > { %4746 = vmatprep.subr.bf16.mxu0 %v7077_v44  ;;  %v2679_v21 = vmax.bf16 %v2661_v5, %v2632_v60  ;;  %v7084_v44 = vld [vmem:[%s10941_s13 + $0x8e0] ss:$16 sps:$4 sm:$0xff]   ;;  %v9776_v42 = vmax.bf16 %v2848_v36, %v2819_v52 }
 0x4f4   : > { %v7102_v5 = vld [vmem:[%s10941_s13 + $0x880] ss:$16 sps:$4 sm:$0xff]  }
 0x4f5   : > { %v9698_v3 = vpop.permute.xlu0 %2695  ;;  %v9752_v7 = vpop.permute.xlu1 %2650  ;;  %v7120_v36 = vld [vmem:[%s10941_s13 + $0x820] ss:$16 sps:$4 sm:$0xff]  }
 0x4f6   : > { %4747 = vmatpush2.bf16.msra.mxu0 %v7075_v46  ;;  %v2708_v0 = vsel %vm781_vm1, %v9584_v40, %v9698_v3  ;;  %v7087_v40 = vld [vmem:[%s10941_s13 + $0x760] ss:$16 sps:$4 sm:$0xff]  }
 0x4f7   : > { %4748 = vmatprep.subr.bf16.mxu0 %v7080_v22  ;;  %v2726_v26 = vmax.bf16 %v2708_v0, %v2679_v21  ;;  %v7099_v22 = vld [vmem:[%s10941_s13 + $0x720] ss:$16 sps:$4 sm:$0xff]  }
 0x4f9   : > { %v9721_v4 = vpop.permute.xlu0 %2742  ;;  %v2698_v46 = vpop.permute.xlu1 %2697 }
 0x4fa   : > { %4749 = vmatpush2.bf16.msra.mxu0 %v7078_v14  ;;  %v2755_v50 = vsel %vm11079_vm12, %v9604_v39, %v9721_v4  ;;  %v7095_v39 = vld [vmem:[%s10941_s13 + $0x744] ss:$16 sps:$4 sm:$0xff]   ;;  %vm11087_vm12 = vmmov %vm11082_vm4  ;;  %vm5086_vm4 = vcmask 883712  }
 0x4fb   : > { %4750 = vmatprep.subr.bf16.mxu0 %v7083_v59  ;;  %v2773_v41 = vmax.bf16 %v2755_v50, %v2726_v26  ;;  %v7104_v59 = vld [vmem:[%s10941_s13 + $0x884] ss:$16 sps:$4 sm:$0xff]   ;;  %v2615_v26 = vsel %vm721_vm7, %v9664_v13, %v9719_v54  ;;  %v2662_v13 = vsel %vm751_vm2, %v9675_v18, %v9752_v7 }
 0x4fc   : > { %v7128_v18 = vld [vmem:[%s10941_s13 + $0x804] ss:$16 sps:$4 sm:$0xff]  }
 0x4fd   : > { %v9741_v49 = vpop.permute.xlu0 %2789  ;;  %v2745_v14 = vpop.permute.xlu1 %2744 }
 0x4fe   : > { %v2802_v31 = vsel %vm11081_vm6, %v9624_v32, %v9741_v49  ;;  %4751 = vmatpush2.bf16.msra.mxu0 %v7081_v17  ;;  %v7093_v32 = vld [vmem:[%s10941_s13 + $0x740] ss:$16 sps:$4 sm:$0xff]   ;;  %v2521_v17 = vsel %vm601_vm15, %v9632_v58, %v9662_v47  ;;  %vm11089_vm6 = vmmov %vm11083_vm5 }
 0x4ff   : > { %4752 = vmatprep.subr.bf16.mxu0 %v7089_v55  ;;  %v2820_v30 = vmax.bf16 %v2802_v31, %v2773_v41  ;;  %v7116_v55 = vld [vmem:[%s10941_s13 + $0x844] ss:$16 sps:$4 sm:$0xff]   ;;  %v2539_v50 = vmax.bf16 %v2521_v17, %v9299_v28 }
 0x501   : > { %v9760_v27 = vpop.permute.xlu0 %2836  ;;  %v2792_v60 = vpop.permute.xlu1 %2791 }
 0x502   : > { %v2849_v12 = vsel %vm931_vm8, %v9646_v34, %v9760_v27  ;;  %4753 = vmatpush2.bf16.msra.mxu0 %v7087_v40  ;;  %v7092_v34 = vld [vmem:[%s10941_s13 + $0x8c4] ss:$16 sps:$4 sm:$0xff]  }
 0x503   : > { %v9768_v9 = vmax.bf16 %v2849_v12, %v2820_v30  ;;  %4754 = vmatprep.subr.bf16.mxu0 %v7095_v39  ;;  %v2709_v39 = vsel %vm781_vm1, %v9698_v3, %v2698_v46 }
 0x505   : > { %4717 = vmatprep.mubr.bf16.mxu1 %v9768_v9  ;;  %v9782_v20 = vpop.permute.xlu0 %2511  ;;  %v2839_v11 = vpop.permute.xlu1 %2838 }
 0x506   : > { %4718 = vmatmul.mubr.bf16.vlgmr.msra.gmra.mxu1 %v9776_v42  ;;  %4755 = vmatpush2.bf16.msra.mxu0 %v7093_v32  ;;  %v2522_v0 = vsel %vm601_vm15, %v9662_v47, %v9782_v20 }
 0x507   : > { %4772 = vmatpush1.bf16.msra.mxu1 %v7084_v44  ;;  %4756 = vmatprep.subr.bf16.mxu0 %v7101_v53  ;;  %v2540_v58 = vmax.bf16 %v2522_v0, %v9307_v24  ;;  %v2586_v24 = vmax.bf16 %v2568_v48, %v2539_v50 }
 0x508   : > { %4773 = vmatprep.subr.bf16.mxu1 %v7092_v34  ;;  %4803 = vmatprep.mubr.bf16.mxu1 %v7400_v57  ;;  %v2803_v34 = vsel %vm11088_vm0, %v9741_v49, %v2792_v60 }
 0x509   : > { %v9798_v45 = vpop.permute.xlu0 %2558  ;;  %v2633_v33 = vmax.bf16 %v2615_v26, %v2586_v24  ;;  %v2514_v12 = vpop.permute.xlu1 %2513  ;;  %v7129_v24 = vld [vmem:[%s10941_s13 + $0x88] ss:$16 sps:$4 sm:$0xff]  }
 0x50a   : > { %4757 = vmatpush2.bf16.msra.mxu0 %v7099_v22  ;;  %v2569_v21 = vsel %vm11083_vm5, %v9686_v8, %v9798_v45  ;;  %v7122_v8 = vld [vmem:[%s10941_s13 + $0x824] ss:$16 sps:$4 sm:$0xff]   ;;  %v7126_v22 = vld [vmem:[%s10941_s13 + $0x800] ss:$16 sps:$4 sm:$0xff]   ;;  %v2523_v49 = vsel %vm601_vm15, %v9782_v20, %v2514_v12  ;;  %v7152_v12 = vld [vmem:[%s10941_s13 + $0x28c] ss:$16 sps:$4 sm:$0xff]  }
 0x50b   : > { %4774 = vmatpush1.bf16.msra.mxu1 %v7090_v29  ;;  %4758 = vmatprep.subr.bf16.mxu0 %v7107_v37  ;;  %v2587_v31 = vmax.bf16 %v2569_v21, %v2540_v58  ;;  %v2680_v30 = vmax.bf16 %v2662_v13, %v2633_v33  ;;  %v2850_v37 = vsel %vm931_vm8, %v9760_v27, %v2839_v11  ;;  %v7119_v27 = vld [vmem:[%s10941_s13 + $0xcc] ss:$16 sps:$4 sm:$0xff]   ;;  %vm5220_vm5 = vcmask 891904  }
 0x50c   : > { %4775 = vmatprep.subr.bf16.mxu1 %v7098_v15 }
 0x50d   : > { %v9812_v56 = vpop.permute.xlu0 %2605  ;;  %v2727_v44 = vmax.bf16 %v2709_v39, %v2680_v30  ;;  %v7140_v39 = vld [vmem:[%s10941_s13 + $0x2cc] ss:$16 sps:$4 sm:$0xff]   ;;  %v7141_v30 = vld [vmem:[%s10941_s13 + $0x48] ss:$16 sps:$4 sm:$0xff]  }
 0x50e   : > { %4759 = vmatpush2.bf16.msra.mxu0 %v7105_v23  ;;  %v2616_v16 = vsel %vm721_vm7, %v9719_v54, %v9812_v56 }
 0x50f   : > { %4776 = vmatpush1.bf16.msra.mxu1 %v7096_v10  ;;  %4814 = vmatprep.subr.bf16.mxu0 %v7113_v43  ;;  %v2634_v54 = vmax.bf16 %v2616_v16, %v2587_v31  ;;  %v2608_v43 = vpop.permute.xlu1 %2607  ;;  %v7131_v16 = vld [vmem:[%s10941_s13 + $0x8c] ss:$16 sps:$4 sm:$0xff]  }
 0x510   : > { %4777 = vmatprep.subr.bf16.mxu1 %v7104_v59  ;;  %v2617_v21 = vsel %vm721_vm7, %v9812_v56, %v2608_v43  ;;  %vm11090_vm7 = vmmov %vm11086_vm10  ;;  %v7176_v43 = vld [vmem:[%s10941_s13 + $0x20c] ss:$16 sps:$4 sm:$0xff]  }
 0x511   : > { %v9820_v51 = vpop.permute.xlu0 %2652 }
 0x512   : > { %v2663_v28 = vsel %vm751_vm2, %v9752_v7, %v9820_v51  ;;  %v2756_v7 = vsel %vm11086_vm10, %v9721_v4, %v2745_v14  ;;  %v7134_v4 = vld [vmem:[%s10941_s13 + $0x2ec] ss:$16 sps:$4 sm:$0xff]   ;;  %vm11094_vm10 = vcmask 1014784  }
 0x513   : > { %4778 = vmatpush1.bf16.msra.mxu1 %v7102_v5  ;;  %v2681_v6 = vmax.bf16 %v2663_v28, %v2634_v54  ;;  %v2774_v29 = vmax.bf16 %v2756_v7, %v2727_v44  ;;  %v7111_v5 = vld [vmem:[%s10941_s13 + $0xe8] ss:$16 sps:$4 sm:$0xff]  }
 0x514   : > { %4779 = vmatprep.subr.bf16.mxu1 %v7110_v25  ;;  %v7147_v7 = vld [vmem:[%s10941_s13 + $0x28] ss:$16 sps:$4 sm:$0xff]  }
 0x515   : > { %v9841_v47 = vpop.permute.xlu0 %2699  ;;  %v7153_v44 = vld [vmem:[%s10941_s13 + $0x8] ss:$16 sps:$4 sm:$0xff]  }
 0x516   : > { %v2710_v41 = vsel %vm781_vm1, %v2698_v46, %v9841_v47 }
 0x517   : > { %4780 = vmatpush1.bf16.msra.mxu1 %v7108_v2  ;;  %v2728_v32 = vmax.bf16 %v2710_v41, %v2681_v6  ;;  %v7117_v2 = vld [vmem:[%s10941_s13 + $0xc8] ss:$16 sps:$4 sm:$0xff]   ;;  %v7143_v6 = vld [vmem:[%s10941_s13 + $0x4c] ss:$16 sps:$4 sm:$0xff]  }
 0x518   : > { %4781 = vmatprep.subr.bf16.mxu1 %v7116_v55  ;;  %v2702_v55 = vpop.permute.xlu1 %2701  ;;  %v7135_v41 = vld [vmem:[%s10941_s13 + $0x68] ss:$16 sps:$4 sm:$0xff]  }
 0x519   : > { %v2747_v40 = vpop.permute.xlu0 %2746  ;;  %v2711_v56 = vsel %vm781_vm1, %v9841_v47, %v2702_v55  ;;  %v7137_v47 = vld [vmem:[%s10941_s13 + $0x6c] ss:$16 sps:$4 sm:$0xff]   ;;  %v7186_v55 = vld [vmem:[%s10941_s13 + $0x3c8] ss:$16 sps:$4 sm:$0xff]   ;;  %vm5110_vm1 = vcmask 867328  }
 0x51a   : > { %v2757_v52 = vsel %vm11085_vm11, %v2745_v14, %v2747_v40  ;;  %v2821_v14 = vmax.bf16 %v2803_v34, %v2774_v29  ;;  %v7161_v34 = vld [vmem:[%s10941_s13 + $0x1ec] ss:$16 sps:$4 sm:$0xff]   ;;  %vm11093_vm11 = vmmov %vm11089_vm6 }
 0x51b   : > { %4782 = vmatpush1.bf16.msra.mxu1 %v7114_v62  ;;  %v2775_v46 = vmax.bf16 %v2757_v52, %v2728_v32  ;;  %v7146_v52 = vld [vmem:[%s10941_s13 + $0x2ac] ss:$16 sps:$4 sm:$0xff]  }
 0x51c   : > { %4783 = vmatprep.subr.bf16.mxu1 %v7122_v8  ;;  %v9894_v25 = vmax.bf16 %v2850_v37, %v2821_v14  ;;  %v2796_v62 = vpop.permute.xlu1 %2795  ;;  %v7155_v32 = vld [vmem:[%s10941_s13 + $0xc] ss:$16 sps:$4 sm:$0xff]   ;;  %v7162_v37 = vld [vmem:[%s10941_s13 + $0x248] ss:$16 sps:$4 sm:$0xff]  }
 0x51d   : > { %v2794_v3 = vpop.permute.xlu0 %2793  ;;  %v7164_v29 = vld [vmem:[%s10941_s13 + $0x24c] ss:$16 sps:$4 sm:$0xff]  }
 0x51e   : > { %v2804_v53 = vsel %vm11087_vm12, %v2792_v60, %v2794_v3  ;;  %v2541_v60 = vmax.bf16 %v2523_v49, %v9351_v61  ;;  %v7125_v61 = vld [vmem:[%s10941_s13 + $0xac] ss:$16 sps:$4 sm:$0xff]   ;;  %v7168_v49 = vld [vmem:[%s10941_s13 + $0x228] ss:$16 sps:$4 sm:$0xff]   ;;  %vm11095_vm12 = vmmov %vm11094_vm10 }
 0x51f   : > { %4784 = vmatpush1.bf16.msra.mxu1 %v7120_v36  ;;  %v2822_v15 = vmax.bf16 %v2804_v53, %v2775_v46  ;;  %v7138_v36 = vld [vmem:[%s10941_s13 + $0x2c8] ss:$16 sps:$4 sm:$0xff]   ;;  %v7158_v53 = vld [vmem:[%s10941_s13 + $0x26c] ss:$16 sps:$4 sm:$0xff]  }
 0x520   : > { %4785 = vmatprep.subr.bf16.mxu1 %v7128_v18  ;;  %v7149_v18 = vld [vmem:[%s10941_s13 + $0x2c] ss:$16 sps:$4 sm:$0xff]   ;;  %v7156_v46 = vld [vmem:[%s10941_s13 + $0x268] ss:$16 sps:$4 sm:$0xff]  }
 0x521   : > { %v2841_v23 = vpop.permute.xlu0 %2840  ;;  %v7173_v14 = vld [vmem:[%s10941_s13 + $0x1ac] ss:$16 sps:$4 sm:$0xff]  }
 0x522   : > { %v2851_v10 = vsel %vm931_vm8, %v2839_v11, %v2841_v23 }
 0x523   : > { %v9889_v59 = vmax.bf16 %v2851_v10, %v2822_v15  ;;  %4786 = vmatpush1.bf16.msra.mxu1 %v7126_v22  ;;  %v7159_v22 = vld [vmem:[%s10941_s13 + $0x1e8] ss:$16 sps:$4 sm:$0xff]  }
 0x524   : > { %4857 = vmatprep.subr.bf16.mxu1 %v7134_v4  ;;  %v7167_v4 = vld [vmem:[%s10941_s13 + $0x1cc] ss:$16 sps:$4 sm:$0xff]   ;;  %v7165_v15 = vld [vmem:[%s10941_s13 + $0x1c8] ss:$16 sps:$4 sm:$0xff]  }
 0x525   : > { %4760 = vmatprep.mubr.bf16.mxu0 %v9889_v59  ;;  %v2561_v20 = vpop.permute.xlu0 %2560  ;;  %v7171_v10 = vld [vmem:[%s10941_s13 + $0x1a8] ss:$16 sps:$4 sm:$0xff]  }
 0x526   : > { %v2570_v0 = vsel %vm11089_vm6, %v9798_v45, %v2561_v20  ;;  %4761 = vmatmul.mubr.bf16.vlgmr.msra.gmra.mxu0 %v9894_v25  ;;  %v7182_v20 = vld [vmem:[%s10941_s13 + $0x3ec] ss:$16 sps:$4 sm:$0xff]  }
 0x527   : > { %v2588_v17 = vmax.bf16 %v2570_v0, %v2541_v60  ;;  %4815 = vmatpush1.bf16.msra.mxu0 %v7111_v5  ;;  %4846 = vmatprep.mubr.bf16.mxu0 %v9427_v19  ;;  %v7123_v19 = vld [vmem:[%s10941_s13 + $0xa8] ss:$16 sps:$4 sm:$0xff]   ;;  %v7179_v5 = vld [vmem:[%s10941_s13 + $0x18c] ss:$16 sps:$4 sm:$0xff]  }
 0x528   : > { %4816 = vmatprep.subr.bf16.mxu0 %v7119_v27  ;;  %v7174_v27 = vld [vmem:[%s10941_s13 + $0x208] ss:$16 sps:$4 sm:$0xff]   ;;  %v7185_v0 = vld [vmem:[%s10941_s13 + $0x16c] ss:$16 sps:$4 sm:$0xff]  }
 0x529   : > { %v2635_v45 = vmax.bf16 %v2617_v21, %v2588_v17  ;;  %v2655_v48 = vpop.permute.xlu0 %2654  ;;  %v7177_v60 = vld [vmem:[%s10941_s13 + $0x188] ss:$16 sps:$4 sm:$0xff]   ;;  %v7188_v21 = vld [vmem:[%s10941_s13 + $0x3cc] ss:$16 sps:$4 sm:$0xff]  }
 0x52a   : > { %v2664_v58 = vsel %vm751_vm2, %v9820_v51, %v2655_v48  ;;  %vm11091_vm2 = vmmov %vm11088_vm0  ;;  %v7180_v17 = vld [vmem:[%s10941_s13 + $0x3e8] ss:$16 sps:$4 sm:$0xff]   ;;  %v7194_v48 = vld [vmem:[%s10941_s13 + $0x3ac] ss:$16 sps:$4 sm:$0xff]  }
 0x52b   : > { %v2682_v50 = vmax.bf16 %v2664_v58, %v2635_v45  ;;  %4817 = vmatpush1.bf16.msra.mxu0 %v7117_v2  ;;  %v2805_v28 = vsel %vm11091_vm2, %v2794_v3, %v2796_v62  ;;  %v7150_v3 = vld [vmem:[%s10941_s13 + $0x288] ss:$16 sps:$4 sm:$0xff]   ;;  %v7197_v58 = vld [vmem:[%s10941_s13 + $0x12c] ss:$16 sps:$4 sm:$0xff]   ;;  %vm11096_vm0 = vmmov %vm11092_vm9  ;;  %vm5181_vm2 = vcmask 695296  }
 0x52c   : > { %4818 = vmatprep.subr.bf16.mxu0 %v7125_v61  ;;  %v7183_v2 = vld [vmem:[%s10941_s13 + $0x168] ss:$16 sps:$4 sm:$0xff]   ;;  %v7191_v61 = vld [vmem:[%s10941_s13 + $0x14c] ss:$16 sps:$4 sm:$0xff]  }
 0x52d   : > { %v2729_v26 = vmax.bf16 %v2711_v56, %v2682_v50  ;;  %v2749_v11 = vpop.permute.xlu0 %2748  ;;  %v7189_v45 = vld [vmem:[%s10941_s13 + $0x148] ss:$16 sps:$4 sm:$0xff]   ;;  %v7200_v56 = vld [vmem:[%s10941_s13 + $0x38c] ss:$16 sps:$4 sm:$0xff]  }
 0x52e   : > { %v2758_v31 = vsel %vm11090_vm7, %v2747_v40, %v2749_v11  ;;  %v7132_v40 = vld [vmem:[%s10941_s13 + $0x2e8] ss:$16 sps:$4 sm:$0xff]   ;;  %v7209_v62 = vld [vmem:[%s10941_s13 + $0x4ec] ss:$16 sps:$4 sm:$0xff]   ;;  %vm5205_vm7 = vcmask 556032  }
 0x52f   : > { %v2776_v51 = vmax.bf16 %v2758_v31, %v2729_v26  ;;  %4819 = vmatpush1.bf16.msra.mxu0 %v7123_v19  ;;  %v7192_v50 = vld [vmem:[%s10941_s13 + $0x3a8] ss:$16 sps:$4 sm:$0xff]   ;;  %v7206_v31 = vld [vmem:[%s10941_s13 + $0x36c] ss:$16 sps:$4 sm:$0xff]  }
 0x530   : > { %4820 = vmatprep.subr.bf16.mxu0 %v7131_v16  ;;  %v7195_v19 = vld [vmem:[%s10941_s13 + $0x128] ss:$16 sps:$4 sm:$0xff]   ;;  %v7203_v16 = vld [vmem:[%s10941_s13 + $0x10c] ss:$16 sps:$4 sm:$0xff]  }
 0x531   : > { %v2823_v8 = vmax.bf16 %v2805_v28, %v2776_v51  ;;  %v2843_v13 = vpop.permute.xlu0 %2842  ;;  %v7198_v26 = vld [vmem:[%s10941_s13 + $0x388] ss:$16 sps:$4 sm:$0xff]   ;;  %v7212_v28 = vld [vmem:[%s10941_s13 + $0x34c] ss:$16 sps:$4 sm:$0xff]  }
 0x532   : > { %v2852_v54 = vsel %vm931_vm8, %v2841_v23, %v2843_v13  ;;  %v7170_v23 = vld [vmem:[%s10941_s13 + $0x22c] ss:$16 sps:$4 sm:$0xff]   ;;  %v7201_v11 = vld [vmem:[%s10941_s13 + $0x108] ss:$16 sps:$4 sm:$0xff]   ;;  %vm5098_vm8 = vcmask 875520  }
 0x533   : > { %v9935_v33 = vmax.bf16 %v2852_v54, %v2823_v8  ;;  %4821 = vmatpush1.bf16.msra.mxu0 %v7129_v24  ;;  %v7204_v51 = vld [vmem:[%s10941_s13 + $0x368] ss:$16 sps:$4 sm:$0xff]   ;;  %v7218_v54 = vld [vmem:[%s10941_s13 + $0x32c] ss:$16 sps:$4 sm:$0xff]  }
 0x534   : > { %4822 = vmatprep.subr.bf16.mxu0 %v7137_v47  ;;  %v7207_v24 = vld [vmem:[%s10941_s13 + $0x4e8] ss:$16 sps:$4 sm:$0xff]   ;;  %v7215_v47 = vld [vmem:[%s10941_s13 + $0x4cc] ss:$16 sps:$4 sm:$0xff]  }
 0x535   : > { %4804 = vmatmul.mubr.bf16.vlgmr.msra.gmra.mxu1 %v9935_v33  ;;  %v7210_v8 = vld [vmem:[%s10941_s13 + $0x348] ss:$16 sps:$4 sm:$0xff]  }
 0x536   : > { %4858 = vmatpush1.bf16.msra.mxu1 %v7132_v40  ;;  %4889 = vmatprep.mubr.bf16.mxu1 %v9547_v1  ;;  %v7144_v1 = vld [vmem:[%s10941_s13 + $0x2a8] ss:$16 sps:$4 sm:$0xff]  }
 0x537   : > { %4823 = vmatpush1.bf16.msra.mxu0 %v7135_v41  ;;  %4859 = vmatprep.subr.bf16.mxu1 %v7140_v39  ;;  %v7213_v13 = vld [vmem:[%s10941_s13 + $0x4c8] ss:$16 sps:$4 sm:$0xff]   ;;  %v7224_v41 = vld [vmem:[%s10941_s13 + $0x30c] ss:$16 sps:$4 sm:$0xff]  }
 0x538   : > { %4824 = vmatprep.subr.bf16.mxu0 %v7143_v6  ;;  %v7216_v40 = vld [vmem:[%s10941_s13 + $0x328] ss:$16 sps:$4 sm:$0xff]   ;;  %v7227_v39 = vld [vmem:[%s10941_s13 + $0x48c] ss:$16 sps:$4 sm:$0xff]  }
 0x539   : > { %v7222_v6 = vld [vmem:[%s10941_s13 + $0x308] ss:$16 sps:$4 sm:$0xff]  }
 0x53a   : > { %4860 = vmatpush1.bf16.msra.mxu1 %v7138_v36  ;;  %v7225_v36 = vld [vmem:[%s10941_s13 + $0x488] ss:$16 sps:$4 sm:$0xff]  }
 0x53b   : > { %4825 = vmatpush1.bf16.msra.mxu0 %v7141_v30  ;;  %4861 = vmatprep.subr.bf16.mxu1 %v7146_v52  ;;  %v7230_v30 = vld [vmem:[%s10941_s13 + $0x6ec] ss:$16 sps:$4 sm:$0xff]  }
 0x53c   : > { %4826 = vmatprep.subr.bf16.mxu0 %v7149_v18  ;;  %v7233_v52 = vld [vmem:[%s10941_s13 + $0x46c] ss:$16 sps:$4 sm:$0xff]   ;;  %v7228_v18 = vld [vmem:[%s10941_s13 + $0x6e8] ss:$16 sps:$4 sm:$0xff]  }
 0x53e   : > { %4862 = vmatpush1.bf16.msra.mxu1 %v7144_v1  ;;  %v7231_v1 = vld [vmem:[%s10941_s13 + $0x468] ss:$16 sps:$4 sm:$0xff]  }
 0x53f   : > { %4827 = vmatpush1.bf16.msra.mxu0 %v7147_v7  ;;  %4863 = vmatprep.subr.bf16.mxu1 %v7152_v12  ;;  %v7236_v7 = vld [vmem:[%s10941_s13 + $0x6cc] ss:$16 sps:$4 sm:$0xff]  }
 0x540   : > { %4828 = vmatprep.subr.bf16.mxu0 %v7155_v32  ;;  %v7239_v12 = vld [vmem:[%s10941_s13 + $0x44c] ss:$16 sps:$4 sm:$0xff]   ;;  %v7234_v32 = vld [vmem:[%s10941_s13 + $0x6c8] ss:$16 sps:$4 sm:$0xff]  }
 0x542   : > { %4864 = vmatpush1.bf16.msra.mxu1 %v7150_v3  ;;  %v7237_v3 = vld [vmem:[%s10941_s13 + $0x448] ss:$16 sps:$4 sm:$0xff]  }
 0x543   : > { %4829 = vmatpush1.bf16.msra.mxu0 %v7153_v44  ;;  %4865 = vmatprep.subr.bf16.mxu1 %v7158_v53  ;;  %v7242_v44 = vld [vmem:[%s10941_s13 + $0x6ac] ss:$16 sps:$4 sm:$0xff]   ;;  %v7243_v53 = vld [vmem:[%s10941_s13 + $0x428] ss:$16 sps:$4 sm:$0xff]  }
 0x544   : > { %4830 = vmatprep.subr.bf16.mxu0 %v7161_v34  ;;  %v7248_v34 = vld [vmem:[%s10941_s13 + $0x68c] ss:$16 sps:$4 sm:$0xff]  }
 0x546   : > { %4866 = vmatpush1.bf16.msra.mxu1 %v7156_v46  ;;  %v7251_v46 = vld [vmem:[%s10941_s13 + $0x40c] ss:$16 sps:$4 sm:$0xff]  }
 0x547   : > { %4831 = vmatpush2.bf16.msra.mxu0 %v7159_v22  ;;  %4867 = vmatprep.subr.bf16.mxu1 %v7164_v29  ;;  %v7246_v22 = vld [vmem:[%s10941_s13 + $0x688] ss:$16 sps:$4 sm:$0xff]  }
 0x548   : > { %4832 = vmatprep.subr.bf16.mxu0 %v7167_v4  ;;  %v7249_v29 = vld [vmem:[%s10941_s13 + $0x408] ss:$16 sps:$4 sm:$0xff]   ;;  %v7254_v4 = vld [vmem:[%s10941_s13 + $0x66c] ss:$16 sps:$4 sm:$0xff]  }
 0x54a   : > { %4868 = vmatpush1.bf16.msra.mxu1 %v7162_v37  ;;  %v7257_v37 = vld [vmem:[%s10941_s13 + $0x5ec] ss:$16 sps:$4 sm:$0xff]  }
 0x54b   : > { %4833 = vmatpush2.bf16.msra.mxu0 %v7165_v15  ;;  %4869 = vmatprep.subr.bf16.mxu1 %v7170_v23  ;;  %v7252_v15 = vld [vmem:[%s10941_s13 + $0x668] ss:$16 sps:$4 sm:$0xff]  }
 0x54c   : > { %4834 = vmatprep.subr.bf16.mxu0 %v7173_v14  ;;  %v7255_v23 = vld [vmem:[%s10941_s13 + $0x5e8] ss:$16 sps:$4 sm:$0xff]   ;;  %v7260_v14 = vld [vmem:[%s10941_s13 + $0x64c] ss:$16 sps:$4 sm:$0xff]  }
 0x54e   : > { %4870 = vmatpush1.bf16.msra.mxu1 %v7168_v49  ;;  %v7263_v49 = vld [vmem:[%s10941_s13 + $0x5cc] ss:$16 sps:$4 sm:$0xff]  }
 0x54f   : > { %4835 = vmatpush2.bf16.msra.mxu0 %v7171_v10  ;;  %4871 = vmatprep.subr.bf16.mxu1 %v7176_v43  ;;  %v7258_v10 = vld [vmem:[%s10941_s13 + $0x648] ss:$16 sps:$4 sm:$0xff]  }
 0x550   : > { %4836 = vmatprep.subr.bf16.mxu0 %v7179_v5  ;;  %v7261_v43 = vld [vmem:[%s10941_s13 + $0x5c8] ss:$16 sps:$4 sm:$0xff]   ;;  %v7266_v5 = vld [vmem:[%s10941_s13 + $0x62c] ss:$16 sps:$4 sm:$0xff]  }
 0x552   : > { %4872 = vmatpush1.bf16.msra.mxu1 %v7174_v27  ;;  %v7269_v27 = vld [vmem:[%s10941_s13 + $0x5ac] ss:$16 sps:$4 sm:$0xff]  }
 0x553   : > { %4837 = vmatpush2.bf16.msra.mxu0 %v7177_v60  ;;  %4873 = vmatprep.subr.bf16.mxu1 %v7182_v20  ;;  %v7264_v60 = vld [vmem:[%s10941_s13 + $0x628] ss:$16 sps:$4 sm:$0xff]  }
 0x554   : > { %4838 = vmatprep.subr.bf16.mxu0 %v7185_v0  ;;  %v7267_v20 = vld [vmem:[%s10941_s13 + $0x5a8] ss:$16 sps:$4 sm:$0xff]   ;;  %v7272_v0 = vld [vmem:[%s10941_s13 + $0x60c] ss:$16 sps:$4 sm:$0xff]  }
 0x556   : > { %4874 = vmatpush2.bf16.msra.mxu1 %v7180_v17  ;;  %v7275_v17 = vld [vmem:[%s10941_s13 + $0x58c] ss:$16 sps:$4 sm:$0xff]  }
 0x557   : > { %4839 = vmatpush2.bf16.msra.mxu0 %v7183_v2  ;;  %4875 = vmatprep.subr.bf16.mxu1 %v7188_v21  ;;  %v7270_v2 = vld [vmem:[%s10941_s13 + $0x608] ss:$16 sps:$4 sm:$0xff]  }
 0x558   : > { %4840 = vmatprep.subr.bf16.mxu0 %v7191_v61  ;;  %v7273_v21 = vld [vmem:[%s10941_s13 + $0x588] ss:$16 sps:$4 sm:$0xff]   ;;  %v7278_v61 = vld [vmem:[%s10941_s13 + $0x7ec] ss:$16 sps:$4 sm:$0xff]  }
 0x55a   : > { %4876 = vmatpush2.bf16.msra.mxu1 %v7186_v55  ;;  %v7281_v55 = vld [vmem:[%s10941_s13 + $0x56c] ss:$16 sps:$4 sm:$0xff]  }
 0x55b   : > { %4841 = vmatpush2.bf16.msra.mxu0 %v7189_v45  ;;  %4877 = vmatprep.subr.bf16.mxu1 %v7194_v48  ;;  %v7276_v45 = vld [vmem:[%s10941_s13 + $0x7e8] ss:$16 sps:$4 sm:$0xff]  }
 0x55c   : > { %4842 = vmatprep.subr.bf16.mxu0 %v7197_v58  ;;  %v7279_v48 = vld [vmem:[%s10941_s13 + $0x568] ss:$16 sps:$4 sm:$0xff]   ;;  %v7284_v58 = vld [vmem:[%s10941_s13 + $0x7cc] ss:$16 sps:$4 sm:$0xff]  }
 0x55e   : > { %4878 = vmatpush2.bf16.msra.mxu1 %v7192_v50  ;;  %v7287_v50 = vld [vmem:[%s10941_s13 + $0x54c] ss:$16 sps:$4 sm:$0xff]  }
 0x55f   : > { %4843 = vmatpush2.bf16.msra.mxu0 %v7195_v19  ;;  %4879 = vmatprep.subr.bf16.mxu1 %v7200_v56  ;;  %v7282_v19 = vld [vmem:[%s10941_s13 + $0x7c8] ss:$16 sps:$4 sm:$0xff]  }
 0x560   : > { %4844 = vmatprep.subr.bf16.mxu0 %v7203_v16  ;;  %v7285_v56 = vld [vmem:[%s10941_s13 + $0x548] ss:$16 sps:$4 sm:$0xff]   ;;  %v7290_v16 = vld [vmem:[%s10941_s13 + $0x7ac] ss:$16 sps:$4 sm:$0xff]  }
 0x562   : > { %4880 = vmatpush2.bf16.msra.mxu1 %v7198_v26  ;;  %v7293_v26 = vld [vmem:[%s10941_s13 + $0x52c] ss:$16 sps:$4 sm:$0xff]  }
 0x563   : > { %4845 = vmatpush2.bf16.msra.mxu0 %v7201_v11  ;;  %4881 = vmatprep.subr.bf16.mxu1 %v7206_v31  ;;  %v7288_v11 = vld [vmem:[%s10941_s13 + $0x7a8] ss:$16 sps:$4 sm:$0xff]  }
 0x564   : > { %4900 = vmatprep.subr.bf16.mxu0 %v7209_v62  ;;  %v7291_v31 = vld [vmem:[%s10941_s13 + $0x528] ss:$16 sps:$4 sm:$0xff]   ;;  %v7296_v62 = vld [vmem:[%s10941_s13 + $0x78c] ss:$16 sps:$4 sm:$0xff]  }
 0x566   : > { %4847 = vmatmul.mubr.bf16.vlgmr.msra.gmra.mxu0 %v9432_v63  ;;  %4882 = vmatpush2.bf16.msra.mxu1 %v7204_v51  ;;  %v7221_v63 = vld [vmem:[%s10941_s13 + $0x4ac] ss:$16 sps:$4 sm:$0xff]  }
 0x567   : > { %4901 = vmatpush1.bf16.msra.mxu0 %v7207_v24  ;;  %4932 = vmatprep.mubr.bf16.mxu0 %v9768_v9  ;;  %v7219_v9 = vld [vmem:[%s10941_s13 + $0x4a8] ss:$16 sps:$4 sm:$0xff]   ;;  %v7299_v51 = vld [vmem:[%s10941_s13 + $0x50c] ss:$16 sps:$4 sm:$0xff]  }
 0x568   : > { %4883 = vmatprep.subr.bf16.mxu1 %v7212_v28  ;;  %4902 = vmatprep.subr.bf16.mxu0 %v7215_v47  ;;  %v7294_v24 = vld [vmem:[%s10941_s13 + $0x788] ss:$16 sps:$4 sm:$0xff]   ;;  %v7302_v47 = vld [vmem:[%s10941_s13 + $0x76c] ss:$16 sps:$4 sm:$0xff]  }
 0x569   : > { %v7297_v28 = vld [vmem:[%s10941_s13 + $0x508] ss:$16 sps:$4 sm:$0xff]  }
 0x56a   : > { %4884 = vmatpush2.bf16.msra.mxu1 %v7210_v8  ;;  %v7305_v8 = vld [vmem:[%s10941_s13 + $0x8ec] ss:$16 sps:$4 sm:$0xff]  }
 0x56b   : > { %4903 = vmatpush1.bf16.msra.mxu0 %v7213_v13  ;;  %4885 = vmatprep.subr.bf16.mxu1 %v7218_v54  ;;  %v7300_v13 = vld [vmem:[%s10941_s13 + $0x768] ss:$16 sps:$4 sm:$0xff]  }
 0x56c   : > { %4904 = vmatprep.subr.bf16.mxu0 %v7221_v63  ;;  %v7303_v54 = vld [vmem:[%s10941_s13 + $0x8e8] ss:$16 sps:$4 sm:$0xff]   ;;  %v7308_v63 = vld [vmem:[%s10941_s13 + $0x74c] ss:$16 sps:$4 sm:$0xff]  }
 0x56e   : > { %4886 = vmatpush2.bf16.msra.mxu1 %v7216_v40  ;;  %v7311_v40 = vld [vmem:[%s10941_s13 + $0x8cc] ss:$16 sps:$4 sm:$0xff]  }
 0x56f   : > { %4905 = vmatpush1.bf16.msra.mxu0 %v7219_v9  ;;  %4887 = vmatprep.subr.bf16.mxu1 %v7224_v41  ;;  %v7306_v9 = vld [vmem:[%s10941_s13 + $0x748] ss:$16 sps:$4 sm:$0xff]  }
 0x570   : > { %4906 = vmatprep.subr.bf16.mxu0 %v7227_v39  ;;  %v7309_v41 = vld [vmem:[%s10941_s13 + $0x8c8] ss:$16 sps:$4 sm:$0xff]   ;;  %v7314_v39 = vld [vmem:[%s10941_s13 + $0x72c] ss:$16 sps:$4 sm:$0xff]  }
 0x572   : > { %4888 = vmatpush2.bf16.msra.mxu1 %v7222_v6  ;;  %v7312_v6 = vld [vmem:[%s10941_s13 + $0x728] ss:$16 sps:$4 sm:$0xff]  }
 0x573   : > { %4907 = vmatpush1.bf16.msra.mxu0 %v7225_v36  ;;  %4943 = vmatprep.subr.bf16.mxu1 %v7230_v30  ;;  %v7315_v36 = vld [vmem:[%s10941_s13 + $0x8a8] ss:$16 sps:$4 sm:$0xff]   ;;  %v7320_v30 = vld [vmem:[%s10941_s13 + $0x70c] ss:$16 sps:$4 sm:$0xff]  }
 0x574   : > { %4908 = vmatprep.subr.bf16.mxu0 %v7233_v52  ;;  %v7323_v52 = vld [vmem:[%s10941_s13 + $0x88c] ss:$16 sps:$4 sm:$0xff]  }
 0x575   : > { %4890 = vmatmul.mubr.bf16.vlgmr.msra.gmra.mxu1 %v9552_v38  ;;  %v7245_v38 = vld [vmem:[%s10941_s13 + $0x42c] ss:$16 sps:$4 sm:$0xff]  }
 0x576   : > { %4944 = vmatpush1.bf16.msra.mxu1 %v7228_v18  ;;  %4975 = vmatprep.mubr.bf16.mxu1 %v9889_v59  ;;  %v7240_v59 = vld [vmem:[%s10941_s13 + $0x6a8] ss:$16 sps:$4 sm:$0xff]  }
 0x577   : > { %4909 = vmatpush1.bf16.msra.mxu0 %v7231_v1  ;;  %4945 = vmatprep.subr.bf16.mxu1 %v7236_v7  ;;  %v7318_v18 = vld [vmem:[%s10941_s13 + $0x708] ss:$16 sps:$4 sm:$0xff]   ;;  %v7326_v7 = vld [vmem:[%s10941_s13 + $0x86c] ss:$16 sps:$4 sm:$0xff]  }
 0x578   : > { %4910 = vmatprep.subr.bf16.mxu0 %v7239_v12  ;;  %v7321_v1 = vld [vmem:[%s10941_s13 + $0x888] ss:$16 sps:$4 sm:$0xff]  }
 0x579   : > { %v7324_v12 = vld [vmem:[%s10941_s13 + $0x868] ss:$16 sps:$4 sm:$0xff]  }
 0x57a   : > { %4946 = vmatpush1.bf16.msra.mxu1 %v7234_v32  ;;  %v7329_v32 = vld [vmem:[%s10941_s13 + $0x84c] ss:$16 sps:$4 sm:$0xff]  }
 0x57b   : > { %4911 = vmatpush1.bf16.msra.mxu0 %v7237_v3  ;;  %4947 = vmatprep.subr.bf16.mxu1 %v7242_v44  ;;  %v7327_v3 = vld [vmem:[%s10941_s13 + $0x848] ss:$16 sps:$4 sm:$0xff]   ;;  %v7332_v44 = vld [vmem:[%s10941_s13 + $0x82c] ss:$16 sps:$4 sm:$0xff]  }
 0x57c   : > { %4912 = vmatprep.subr.bf16.mxu0 %v7245_v38  ;;  %v7330_v38 = vld [vmem:[%s10941_s13 + $0x828] ss:$16 sps:$4 sm:$0xff]  }
 0x57e   : > { %4948 = vmatpush1.bf16.msra.mxu1 %v7240_v59  ;;  %v7333_v59 = vld [vmem:[%s10941_s13 + $0x808] ss:$16 sps:$4 sm:$0xff]  }
 0x57f   : > { %4913 = vmatpush1.bf16.msra.mxu0 %v7243_v53  ;;  %4949 = vmatprep.subr.bf16.mxu1 %v7248_v34  ;;  %v4633_v53 = vpop.f32.mrf.mxu1 }
 0x580   : > { %4914 = vmatprep.subr.bf16.mxu0 %v7251_v46 }
 0x581   : > { %v4635_v34 = vpop.f32.mrf.mxu1 }
 0x582   : > { %4950 = vmatpush1.bf16.msra.mxu1 %v7246_v22 }
 0x583   : > { %4915 = vmatpush1.bf16.msra.mxu0 %v7249_v29  ;;  %4951 = vmatprep.subr.bf16.mxu1 %v7254_v4  ;;  %v4637_v22 = vpop.f32.mrf.mxu1 }
 0x584   : > { %4916 = vmatprep.subr.bf16.mxu0 %v7257_v37 }
 0x585   : > { %v4639_v4 = vpop.f32.mrf.mxu1 }
 0x586   : > { %4952 = vmatpush1.bf16.msra.mxu1 %v7252_v15 }
 0x587   : > { %4917 = vmatpush2.bf16.msra.mxu0 %v7255_v23  ;;  %4953 = vmatprep.subr.bf16.mxu1 %v7260_v14 }
 0x588   : > { %4918 = vmatprep.subr.bf16.mxu0 %v7263_v49 }
 0x58a   : > { %4954 = vmatpush1.bf16.msra.mxu1 %v7258_v10 }
 0x58b   : > { %4919 = vmatpush2.bf16.msra.mxu0 %v7261_v43  ;;  %4955 = vmatprep.subr.bf16.mxu1 %v7266_v5 }
 0x58c   : > { %4920 = vmatprep.subr.bf16.mxu0 %v7269_v27 }
 0x58e   : > { %4956 = vmatpush1.bf16.msra.mxu1 %v7264_v60 }
 0x58f   : > { %4921 = vmatpush2.bf16.msra.mxu0 %v7267_v20  ;;  %4957 = vmatprep.subr.bf16.mxu1 %v7272_v0 }
 0x590   : > { %4922 = vmatprep.subr.bf16.mxu0 %v7275_v17 }
 0x591   : > { %v4676_v46 = vpop.f32.mrf.mxu0 }
 0x592   : > { %4958 = vmatpush1.bf16.msra.mxu1 %v7270_v2  ;;  %v4677_v27 = vadd.f32 %v4676_v46, %v4633_v53 }
 0x593   : > { %4923 = vmatpush2.bf16.msra.mxu0 %v7273_v21  ;;  %4959 = vmatprep.subr.bf16.mxu1 %v7278_v61  ;;  %v4678_v29 = vpop.f32.mrf.mxu0 }
 0x594   : > { %4924 = vmatprep.subr.bf16.mxu0 %v7281_v55 }
 0x595   : > { %v4680_v37 = vpop.f32.mrf.mxu0 }
 0x596   : > { %4960 = vmatpush2.bf16.msra.mxu1 %v7276_v45  ;;  %v4681_v60 = vadd.f32 %v4680_v37, %v4637_v22 }
 0x597   : > { %4925 = vmatpush2.bf16.msra.mxu0 %v7279_v48  ;;  %4961 = vmatprep.subr.bf16.mxu1 %v7284_v58  ;;  %v4682_v23 = vpop.f32.mrf.mxu0 }
 0x598   : > { %4926 = vmatprep.subr.bf16.mxu0 %v7287_v50  ;;  %v4683_v50 = vadd.f32 %v4682_v23, %v4639_v4 }
 0x59a   : > { %4962 = vmatpush2.bf16.msra.mxu1 %v7282_v19 }
 0x59b   : > { %4927 = vmatpush2.bf16.msra.mxu0 %v7285_v56  ;;  %4963 = vmatprep.subr.bf16.mxu1 %v7290_v16  ;;  %v4679_v56 = vadd.f32 %v4678_v29, %v4635_v34 }
 0x59c   : > { %4928 = vmatprep.subr.bf16.mxu0 %v7293_v26 }
 0x59e   : > { %4964 = vmatpush2.bf16.msra.mxu1 %v7288_v11 }
 0x59f   : > { %4929 = vmatpush2.bf16.msra.mxu0 %v7291_v31  ;;  %4965 = vmatprep.subr.bf16.mxu1 %v7296_v62 }
 0x5a0   : > { %4930 = vmatprep.subr.bf16.mxu0 %v7299_v51 }
 0x5a2   : > { %4966 = vmatpush2.bf16.msra.mxu1 %v7294_v24 }
 0x5a3   : > { %4931 = vmatpush2.bf16.msra.mxu0 %v7297_v28  ;;  %4967 = vmatprep.subr.bf16.mxu1 %v7302_v47 }
 0x5a4   : > { %4986 = vmatprep.subr.bf16.mxu0 %v7305_v8 }
 0x5a6   : > { %4933 = vmatmul.mubr.bf16.vlgmr.msra.gmra.mxu0 %v9776_v42  ;;  %4968 = vmatpush2.bf16.msra.mxu1 %v7300_v13  ;;  %v7317_v42 = vld [vmem:[%s10941_s13 + $0x8ac] ss:$16 sps:$4 sm:$0xff]  }
 0x5a7   : > { %4987 = vmatpush1.bf16.msra.mxu0 %v7303_v54  ;;  %4969 = vmatprep.subr.bf16.mxu1 %v7308_v63 }
 0x5a8   : > { %4988 = vmatprep.subr.bf16.mxu0 %v7311_v40  ;;  %5018 = vmatprep.mubr.bf16.mxu0 %v7400_v57 }
 0x5aa   : > { %4970 = vmatpush2.bf16.msra.mxu1 %v7306_v9 }
 0x5ab   : > { %4989 = vmatpush1.bf16.msra.mxu0 %v7309_v41  ;;  %4971 = vmatprep.subr.bf16.mxu1 %v7314_v39 }
 0x5ac   : > { %4990 = vmatprep.subr.bf16.mxu0 %v7317_v42 }
 0x5ae   : > { %4972 = vmatpush2.bf16.msra.mxu1 %v7312_v6 }
 0x5af   : > { %4991 = vmatpush1.bf16.msra.mxu0 %v7315_v36  ;;  %4973 = vmatprep.subr.bf16.mxu1 %v7320_v30 }
 0x5b0   : > { %4992 = vmatprep.subr.bf16.mxu0 %v7323_v52 }
 0x5b2   : > { %4974 = vmatpush2.bf16.msra.mxu1 %v7318_v18 }
 0x5b3   : > { %4993 = vmatpush1.bf16.msra.mxu0 %v7321_v1 }
 0x5b4   : > { %4994 = vmatprep.subr.bf16.mxu0 %v7326_v7 }
 0x5b5   : > { %4976 = vmatmul.mubr.bf16.vlgmr.msra.gmra.mxu1 %v9894_v25  ;;  %v7335_v25 = vld [vmem:[%s10941_s13 + $0x80c] ss:$16 sps:$4 sm:$0xff]  }
 0x5b7   : > { %4995 = vmatpush1.bf16.msra.mxu0 %v7324_v12 }
 0x5b8   : > { %4996 = vmatprep.subr.bf16.mxu0 %v7329_v32 }
 0x5bb   : > { %4997 = vmatpush1.bf16.msra.mxu0 %v7327_v3 }
 0x5bc   : > { %4998 = vmatprep.subr.bf16.mxu0 %v7332_v44 }
 0x5bf   : > { %4999 = vmatpush1.bf16.msra.mxu0 %v7330_v38 }
 0x5c0   : > { %5000 = vmatprep.subr.bf16.mxu0 %v7335_v25 }
 0x5c3   : > { %5001 = vmatpush1.bf16.msra.mxu0 %v7333_v59 }
 0x5c6   : > { %5019 = vmatmul.mubr.bf16.vlgmr.msra.gmra.mxu0 %v9935_v33  ;;  %v4719_v15 = vpop.f32.mrf.mxu1 }
 0x5c7   : > { %v4720_v17 = vadd.f32 %v4719_v15, %v4677_v27 }
 0x5c8   : > { %v4721_v14 = vpop.f32.mrf.mxu1 }
 0x5c9   : > { %v4722_v11 = vadd.f32 %v4721_v14, %v4679_v56 }
 0x5ca   : > { %v4723_v10 = vpop.f32.mrf.mxu1 }
 0x5cb   : > { %v4724_v33 = vadd.f32 %v4723_v10, %v4681_v60 }
 0x5cc   : > { %v4725_v5 = vpop.f32.mrf.mxu1 }
 0x5cd   : > { %v4726_v16 = vadd.f32 %v4725_v5, %v4683_v50 }
 0x5e6   : > { %v4762_v49 = vpop.f32.mrf.mxu0 }
 0x5e7   : > { %v4763_v21 = vadd.f32 %v4762_v49, %v4720_v17 }
 0x5e8   : > { %v4764_v43 = vpop.f32.mrf.mxu0 }
 0x5e9   : > { %v4765_v62 = vadd.f32 %v4764_v43, %v4722_v11 }
 0x5ea   : > { %v4766_v20 = vpop.f32.mrf.mxu0 }
 0x5eb   : > { %v4767_v61 = vadd.f32 %v4766_v20, %v4724_v33 }
 0x5ec   : > { %v4768_v19 = vpop.f32.mrf.mxu0 }
 0x5ed   : > { %v4769_v31 = vadd.f32 %v4768_v19, %v4726_v16 }
 0x5f5   : > { %v4805_v0 = vpop.f32.mrf.mxu1 }
 0x5f6   : > { %v4806_v45 = vadd.f32 %v4805_v0, %v4763_v21 }
 0x5f7   : > { %v4807_v2 = vpop.f32.mrf.mxu1 }
 0x5f8   : > { %v4808_v24 = vadd.f32 %v4807_v2, %v4765_v62 }
 0x5f9   : > { %v4809_v55 = vpop.f32.mrf.mxu1 }
 0x5fa   : > { %v4810_v48 = vadd.f32 %v4809_v55, %v4767_v61 }
 0x5fb   : > { %v4811_v26 = vpop.f32.mrf.mxu1 }
 0x5fc   : > { %v10346_v58 = vpack.c.bf16 %v4810_v48, %v4806_v45  ;;  %v4812_v51 = vadd.f32 %v4811_v26, %v4769_v31 }
 0x5fe   : > { %5058 = vrot.lane.b32.xlu1 %v10346_v58, %s11022_s0  ;;  %5104 = vrot.lane.b32.xlu0 %v10346_v58, %s7405_s27  ;;  %v10364_v28 = vpack.c.bf16 %v4812_v51, %v4808_v24 }
 0x602   : > { %5036 = vrot.lane.b32.xlu1 %v10346_v58, %s11023_s19  ;;  %5092 = vrot.lane.b32.xlu0 %v10346_v58, %s7406_s30 }
 0x606   : > { %5116 = vrot.lane.b32.xlu1 %v10346_v58, %s7407_s20  ;;  %5080 = vrot.lane.b32.xlu0 %v10346_v58, %s7408_s26 }
 0x60a   : > { %5199 = vrot.lane.b32.xlu1 %v10346_v58, %s7409_s29  ;;  %5212 = vrot.lane.b32.xlu0 %v10346_v58, %s7410_s17 }
 0x60e   : > { %5106 = vrot.lane.b32.xlu1 %v10364_v28, %s7405_s27  ;;  %5047 = vrot.lane.b32.xlu0 %v10346_v58, %s11021_s28 }
 0x612   : > { %5094 = vrot.lane.b32.xlu1 %v10364_v28, %s7406_s30  ;;  %5069 = vrot.lane.b32.xlu0 %v10346_v58, %s11040_s21 }
 0x616   : > { %5082 = vrot.lane.b32.xlu1 %v10364_v28, %s7408_s26  ;;  %5049 = vrot.lane.b32.xlu0 %v10364_v28, %s11021_s28 }
 0x61a   : > { %5214 = vrot.lane.b32.xlu1 %v10364_v28, %s7410_s17  ;;  %5118 = vrot.lane.b32.xlu0 %v10364_v28, %s7407_s20 }
 0x61e   : > { %5060 = vrot.lane.b32.xlu1 %v10364_v28, %s11022_s0  ;;  %5071 = vrot.lane.b32.xlu0 %v10364_v28, %s11040_s21 }
 0x622   : > { %5038 = vrot.lane.b32.xlu1 %v10364_v28, %s11023_s19 }
 0x626   : > { %5201 = vrot.lane.b32.xlu1 %v10364_v28, %s7409_s29  ;;  %v4848_v47 = vpop.f32.mrf.mxu0 }
 0x628   : > { %v4850_v8 = vpop.f32.mrf.mxu0 }
 0x62a   : > { %5189 = vrot.lane.b32.xlu1 %v10364_v28, %s7411_s25  ;;  %v4852_v63 = vpop.f32.mrf.mxu0 }
 0x62c   : > { %v4854_v41 = vpop.f32.mrf.mxu0 }
 0x635   : > { %v4891_v13 = vpop.f32.mrf.mxu1 }
 0x636   : > { %v4892_v59 = vadd.f32 %v4891_v13, %v4848_v47 }
 0x637   : > { %v4893_v40 = vpop.f32.mrf.mxu1 }
 0x638   : > { %v4894_v17 = vadd.f32 %v4893_v40, %v4850_v8 }
 0x639   : > { %v4895_v39 = vpop.f32.mrf.mxu1 }
 0x63a   : > { %v4896_v53 = vadd.f32 %v4895_v39, %v4852_v63 }
 0x63b   : > { %v4897_v36 = vpop.f32.mrf.mxu1 }
 0x63c   : > { %v4898_v20 = vadd.f32 %v4897_v36, %v4854_v41 }
 0x666   : > { %v4934_v42 = vpop.f32.mrf.mxu0 }
 0x667   : > { %v4935_v29 = vadd.f32 %v4934_v42, %v4892_v59 }
 0x668   : > { %v4936_v52 = vpop.f32.mrf.mxu0 }
 0x669   : > { %v4937_v21 = vadd.f32 %v4936_v52, %v4894_v17 }
 0x66a   : > { %v4938_v7 = vpop.f32.mrf.mxu0 }
 0x66b   : > { %v4939_v4 = vadd.f32 %v4938_v7, %v4896_v53 }
 0x66c   : > { %v4940_v38 = vpop.f32.mrf.mxu0 }
 0x66d   : > { %v4941_v33 = vadd.f32 %v4940_v38, %v4898_v20 }
 0x670   : > { %v10392_v54 = vpop.permute.xlu1 %5058  ;;  %v5105_v30 = vpop.permute.xlu0 %5104 }
 0x674   : > { %v10394_v9 = vpop.permute.xlu1 %5036  ;;  %v5093_v32 = vpop.permute.xlu0 %5092 }
 0x675   : > { %v4977_v1 = vpop.f32.mrf.mxu1 }
 0x676   : > { %v4978_v14 = vadd.f32 %v4977_v1, %v4935_v29 }
 0x677   : > { %v4979_v44 = vpop.f32.mrf.mxu1 }
 0x678   : > { %v10396_v6 = vpop.permute.xlu1 %5116  ;;  %v5081_v37 = vpop.permute.xlu0 %5080  ;;  %v4980_v55 = vadd.f32 %v4979_v44, %v4937_v21 }
 0x679   : > { %v4981_v46 = vpop.f32.mrf.mxu1 }
 0x67a   : > { %v4982_v49 = vadd.f32 %v4981_v46, %v4939_v4 }
 0x67b   : > { %v4983_v0 = vpop.f32.mrf.mxu1 }
 0x67c   : > { %v10398_v18 = vpop.permute.xlu1 %5199  ;;  %v4984_v61 = vadd.f32 %v4983_v0, %v4941_v33  ;;  %v5213_v19 = vpop.permute.xlu0 %5212 }
 0x680   : > { %v10400_v12 = vpop.permute.xlu1 %5106  ;;  %v5048_v26 = vpop.permute.xlu0 %5047 }
 0x681   : > { %v10404_v3 = vsel %vm5110_vm1, %v5105_v30, %v10400_v12 }
 0x682   : > { %5278 = vrot.lane.b32.xlu1 %v10404_v3, %s7412_s1 }
 0x684   : > { %v10408_v25 = vpop.permute.xlu1 %5094  ;;  %v5070_v31 = vpop.permute.xlu0 %5069 }
 0x685   : > { %v10412_v34 = vsel %vm5098_vm8, %v5093_v32, %v10408_v25 }
 0x686   : > { %v5020_v22 = vpop.f32.mrf.mxu0  ;;  %5272 = vrot.lane.b32.xlu0 %v10412_v34, %s7412_s1 }
 0x687   : > { %v5021_v5 = vadd.f32 %v5020_v22, %v4978_v14 }
 0x688   : > { %v5022_v15 = vpop.f32.mrf.mxu0  ;;  %v10416_v23 = vpop.permute.xlu1 %5082 }
 0x689   : > { %v10420_v10 = vsel %vm5086_vm4, %v5081_v37, %v10416_v23  ;;  %v5023_v48 = vadd.f32 %v5022_v15, %v4980_v55  ;;  %v5050_v51 = vpop.permute.xlu0 %5049 }
 0x68a   : > { %v5024_v43 = vpop.f32.mrf.mxu0  ;;  %5266 = vrot.lane.b32.xlu0 %v10420_v10, %s7412_s1  ;;  %v5053_v24 = vsel %vm11093_vm11, %v5048_v26, %v5050_v51  ;;  %vm11097_vm11 = vcmask 719872  }
 0x68b   : > { %v5025_v27 = vadd.f32 %v5024_v43, %v4982_v49 }
 0x68c   : > { %v5026_v2 = vpop.f32.mrf.mxu0  ;;  %v5215_v56 = vpop.permute.xlu1 %5214 }
 0x68d   : > { %v10424_v60 = vpack.c.bf16 %v5025_v27, %v5021_v5  ;;  %v5027_v45 = vadd.f32 %v5026_v2, %v4984_v61  ;;  %v5221_v16 = vsel %vm5220_vm5, %v5213_v19, %v5215_v56  ;;  %v10470_v8 = vpop.permute.xlu0 %5118 }
 0x68f   : > { %5051 = vrot.lane.b32.xlu1 %v10424_v60, %s11021_s28  ;;  %5108 = vrot.lane.b32.xlu0 %v10424_v60, %s7405_s27  ;;  %v5032_v50 = vpack.c.bf16 %v5027_v45, %v5023_v48 }
 0x690   : > { %v5061_v11 = vpop.permute.xlu1 %5060 }
 0x691   : > { %v5064_v62 = vsel %vm11092_vm9, %v10392_v54, %v5061_v11  ;;  %v5072_v54 = vpop.permute.xlu0 %5071  ;;  %vm5157_vm9 = vcmask 711680  }
 0x692   : > { %v5075_v53 = vsel %vm11095_vm12, %v5070_v31, %v5072_v54  ;;  %vm5134_vm12 = vcmask 850944  }
 0x693   : > { %5120 = vrot.lane.b32.xlu1 %v10424_v60, %s7407_s20  ;;  %5096 = vrot.lane.b32.xlu0 %v10424_v60, %s7406_s30 }
 0x694   : > { %v5039_v47 = vpop.permute.xlu1 %5038 }
 0x697   : > { %5073 = vrot.lane.b32.xlu1 %v10424_v60, %s11040_s21  ;;  %5084 = vrot.lane.b32.xlu0 %v10424_v60, %s7408_s26  ;;  %s7414_s21 = smov 86  }
 0x698   : > { %v10472_v13 = vpop.permute.xlu1 %5201 }
 0x699   : > { %v5206_v0 = vsel %vm5205_vm7, %v10398_v18, %v10472_v13 }
 0x69b   : > { %5230 = vrot.lane.b32.xlu1 %v5032_v50, %s7405_s27  ;;  %5216 = vrot.lane.b32.xlu0 %v10424_v60, %s7410_s17 }
 0x69c   : > { %v10476_v40 = vpop.permute.xlu1 %5189 }
 0x69f   : > { %5227 = vrot.lane.b32.xlu1 %v5032_v50, %s7406_s30  ;;  %5062 = vrot.lane.b32.xlu0 %v10424_v60, %s11022_s0  ;;  %s7413_s0 = smov 85  }
 0x6a3   : > { %5224 = vrot.lane.b32.xlu1 %v5032_v50, %s7408_s26  ;;  %5040 = vrot.lane.b32.xlu0 %v10424_v60, %s11023_s19 }
 0x6a7   : > { %5218 = vrot.lane.b32.xlu1 %v5032_v50, %s7410_s17  ;;  %5203 = vrot.lane.b32.xlu0 %v10424_v60, %s7409_s29 }
 0x6ab   : > { %5187 = vrot.lane.b32.xlu1 %v10346_v58, %s7411_s25  ;;  %5191 = vrot.lane.b32.xlu0 %v10424_v60, %s7411_s25 }
 0x6af   : > { %5177 = vrot.lane.b32.xlu1 %v10364_v28, %s7413_s0  ;;  %5260 = vrot.lane.b32.xlu0 %v5221_v16, %s7412_s1 }
 0x6b3   : > { %5175 = vrot.lane.b32.xlu1 %v10346_v58, %s7413_s0  ;;  %5179 = vrot.lane.b32.xlu0 %v10424_v60, %s7413_s0 }
 0x6b7   : > { %5165 = vrot.lane.b32.xlu1 %v10364_v28, %s7414_s21  ;;  %5254 = vrot.lane.b32.xlu0 %v5064_v62, %s7412_s1 }
 0x6bb   : > { %5163 = vrot.lane.b32.xlu1 %v10346_v58, %s7414_s21  ;;  %5167 = vrot.lane.b32.xlu0 %v10424_v60, %s7414_s21 }
 0x6bf   : > { %5153 = vrot.lane.b32.xlu1 %v10364_v28, %s7415_s24  ;;  %5248 = vrot.lane.b32.xlu0 %v5053_v24, %s7412_s1 }
 0x6c3   : > { %5233 = vrot.lane.b32.xlu0 %v5032_v50, %s7407_s20 }
 0x6f4   : > { %v10480_v39 = vpop.permute.xlu1 %5278 }
 0x6f8   : > { %v10474_v63 = vpop.permute.xlu0 %5272 }
 0x6fc   : > { %v10478_v41 = vpop.permute.xlu0 %5266 }
 0x701   : > { %v10482_v42 = vpop.permute.xlu1 %5051  ;;  %v10484_v36 = vpop.permute.xlu0 %5108 }
 0x702   : > { %v5112_v30 = vsel %vm5110_vm1, %v10400_v12, %v10484_v36  ;;  %v5054_v29 = vsel %vm11089_vm6, %v5050_v51, %v10482_v42  ;;  %v10606_v51 = vld [vmem:[%s10933_s5 + $0xc] ss:$16 sps:$4 sm:$0xff]  }
 0x703   : > { %5399 = vmatprep.subr.bf16.mxu1 %v5112_v30 }
 0x704   : > { %5400 = vmatpush1.bf16.msra.mxu1 %v10404_v3 }
 0x705   : > { %v10490_v52 = vpop.permute.xlu1 %5120  ;;  %v10492_v1 = vpop.permute.xlu0 %5096 }
 0x706   : > { %v5100_v7 = vsel %vm5098_vm8, %v10408_v25, %v10492_v1 }
 0x707   : > { %5274 = vrot.lane.b32.xlu0 %v5100_v7, %s7412_s1  ;;  %5401 = vmatprep.subr.bf16.mxu1 %v5100_v7 }
 0x708   : > { %5402 = vmatpush1.bf16.msra.mxu1 %v10412_v34 }
 0x709   : > { %v10499_v32 = vpop.permute.xlu1 %5073  ;;  %v10501_v44 = vpop.permute.xlu0 %5084 }
 0x70a   : > { %v5088_v12 = vsel %vm5086_vm4, %v10416_v23, %v10501_v44  ;;  %v5076_v3 = vsel %vm11094_vm10, %v5072_v54, %v10499_v32  ;;  %vm11098_vm10 = vmmov %vm11097_vm11 }
 0x70b   : > { %5268 = vrot.lane.b32.xlu0 %v5088_v12, %s7412_s1  ;;  %5403 = vmatprep.subr.bf16.mxu1 %v5088_v12  ;;  %vm11100_vm6 = vmmov %vm11098_vm10 }
 0x70c   : > { %5404 = vmatpush1.bf16.msra.mxu1 %v10420_v10  ;;  %v5042_v10 = vsel %vm601_vm15, %v10394_v9, %v5039_v47 }
 0x70d   : > { %v5231_v38 = vpop.permute.xlu1 %5230  ;;  %5405 = vmatprep.subr.bf16.mxu1 %v5076_v3  ;;  %v10510_v25 = vpop.permute.xlu0 %5216 }
 0x70e   : > { %v5222_v59 = vsel %vm5220_vm5, %v5215_v56, %v10510_v25  ;;  %v5232_v49 = vsel %vm5110_vm1, %v10484_v36, %v5231_v38  ;;  %vm5169_vm1 = vcmask 703488  }
 0x70f   : > { %5262 = vrot.lane.b32.xlu0 %v5222_v59, %s7412_s1 }
 0x710   : > { %5406 = vmatpush1.bf16.msra.mxu1 %v5075_v53 }
 0x711   : > { %v5228_v34 = vpop.permute.xlu1 %5227  ;;  %v10516_v46 = vpop.permute.xlu0 %5062 }
 0x712   : > { %5258 = vrot.lane.b32.xlu1 %v10516_v46, %s7412_s1  ;;  %v5065_v22 = vsel %vm11096_vm0, %v5061_v11, %v10516_v46  ;;  %v5229_v61 = vsel %vm5098_vm8, %v10492_v1, %v5228_v34  ;;  %vm5122_vm8 = vcmask 859136   ;;  %vm5930_vm0 = vcmask 523264  }
 0x713   : > { %5256 = vrot.lane.b32.xlu0 %v5065_v22, %s7412_s1  ;;  %5407 = vmatprep.subr.bf16.mxu1 %v5065_v22  ;;  %v10594_v31 = vsel %vm5122_vm8, %v10470_v8, %v10490_v52 }
 0x714   : > { %5408 = vmatpush1.bf16.msra.mxu1 %v5064_v62  ;;  %v10599_v62 = vld [vmem:[%s10933_s5 + $0x4] ss:$16 sps:$4 sm:$0xff]  }
 0x715   : > { %v5225_v4 = vpop.permute.xlu1 %5224  ;;  %5409 = vmatprep.subr.bf16.mxu1 %v5054_v29  ;;  %v10525_v37 = vpop.permute.xlu0 %5040  ;;  %5431 = vmatprep.mubr.bf16.mxu1 %v10599_v62 }
 0x716   : > { %5252 = vrot.lane.b32.xlu1 %v10482_v42, %s7412_s1  ;;  %v5043_v15 = vsel %vm601_vm15, %v5039_v47, %v10525_v37  ;;  %vm5193_vm15 = vcmask 687104   ;;  %v5226_v50 = vsel %vm5086_vm4, %v10501_v44, %v5225_v4  ;;  %vm5392_vm4 = vcmask 130048  }
 0x717   : > { %5250 = vrot.lane.b32.xlu0 %v5054_v29, %s7412_s1  ;;  %6684 = vmatprep.mubr.msk.bf16.mxu0 %vm5392_vm4, %v10606_v51  ;;  %v10616_v47 = vsel %vm5122_vm8, %v10396_v6, %v10470_v8  ;;  %v5617_v8 = vld [vmem:[%s10936_s8 + $0x10] sm:$0xff] }
 0x718   : > { %5410 = vmatpush1.bf16.msra.mxu1 %v5053_v24 }
 0x719   : > { %v5219_v23 = vpop.permute.xlu1 %5218  ;;  %5411 = vmatprep.subr.bf16.mxu1 %v5043_v15  ;;  %v10532_v14 = vpop.permute.xlu0 %5203 }
 0x71a   : > { %5280 = vrot.lane.b32.xlu1 %v5112_v30, %s7412_s1  ;;  %v5207_v9 = vsel %vm5205_vm7, %v10472_v13, %v10532_v14  ;;  %v5223_v11 = vsel %vm5220_vm5, %v10510_v25, %v5219_v23  ;;  %v5342_v13 = vld [vmem:[%s10934_s6] sm:$0xff]  ;;  %v5616_v30 = vld [vmem:[%s10936_s8 + $0x8] sm:$0xff]  ;;  %vm5290_vm5 = vcmask 547840   ;;  %vm6281_vm7 = vcmask 7168  }
 0x71b   : > { %5282 = vrot.lane.b32.xlu0 %v5232_v49, %s7412_s1 }
 0x71c   : > { %5412 = vmatpush1.bf16.msra.mxu1 %v5042_v10 }
 0x71d   : > { %v5188_v43 = vpop.permute.xlu1 %5187  ;;  %5413 = vmatprep.subr.bf16.mxu1 %v10364_v28  ;;  %v10541_v5 = vpop.permute.xlu0 %5191 }
 0x71e   : > { %5151 = vrot.lane.b32.xlu1 %v10346_v58, %s7415_s24  ;;  %v5195_v17 = vsel %vm5193_vm15, %v10476_v40, %v10541_v5  ;;  %v5194_v21 = vsel %vm5193_vm15, %v5188_v43, %v10476_v40  ;;  %v5615_v40 = vld [vmem:[%s10936_s8] sm:$0xff]  ;;  %vm6283_vm15 = vcmask 1024  }
 0x71f   : > { %5155 = vrot.lane.b32.xlu0 %v10424_v60, %s7415_s24 }
 0x720   : > { %5414 = vmatpush1.bf16.msra.mxu1 %v10346_v58 }
 0x721   : > { %v5178_v27 = vpop.permute.xlu1 %5177  ;;  %5415 = vmatprep.subr.bf16.mxu1 %v5207_v9  ;;  %v10550_v20 = vpop.permute.xlu0 %5260 }
 0x722   : > { %5246 = vrot.lane.b32.xlu1 %v10525_v37, %s7412_s1 }
 0x723   : > { %5244 = vrot.lane.b32.xlu0 %v5043_v15, %s7412_s1 }
 0x724   : > { %5416 = vmatpush2.bf16.msra.mxu1 %v5206_v0 }
 0x725   : > { %v5176_v33 = vpop.permute.xlu1 %5175  ;;  %5417 = vmatprep.subr.bf16.mxu1 %v5195_v17  ;;  %v10559_v2 = vpop.permute.xlu0 %5179 }
 0x726   : > { %5142 = vrot.lane.b32.xlu1 %v10364_v28, %s11037_s23  ;;  %v5183_v18 = vsel %vm5181_vm2, %v5178_v27, %v10559_v2  ;;  %v5182_v48 = vsel %vm5181_vm2, %v5176_v33, %v5178_v27 }
 0x727   : > { %5242 = vrot.lane.b32.xlu0 %v5042_v10, %s7412_s1 }
 0x728   : > { %5418 = vmatpush2.bf16.msra.mxu1 %v5194_v21 }
 0x729   : > { %v5166_v55 = vpop.permute.xlu1 %5165  ;;  %5419 = vmatprep.subr.bf16.mxu1 %v5183_v18  ;;  %v10568_v45 = vpop.permute.xlu0 %5254 }
 0x72a   : > { %5276 = vrot.lane.b32.xlu1 %v5229_v61, %s7412_s1 }
 0x72b   : > { %5144 = vrot.lane.b32.xlu0 %v10424_v60, %s11037_s23 }
 0x72c   : > { %5420 = vmatpush2.bf16.msra.mxu1 %v5182_v48 }
 0x72d   : > { %v5164_v19 = vpop.permute.xlu1 %5163  ;;  %v10575_v56 = vpop.permute.xlu0 %5167 }
 0x72e   : > { %v5170_v16 = vsel %vm5169_vm1, %v5164_v19, %v5166_v55  ;;  %5270 = vrot.lane.b32.xlu1 %v5226_v50, %s7412_s1  ;;  %v5171_v26 = vsel %vm5169_vm1, %v5166_v55, %v10575_v56 }
 0x72f   : > { %5238 = vrot.lane.b32.xlu0 %v10364_v28, %s7412_s1  ;;  %5421 = vmatprep.subr.bf16.mxu1 %v5171_v26 }
 0x730   : > { %5422 = vmatpush2.bf16.msra.mxu1 %v5170_v16 }
 0x731   : > { %v10608_v24 = vpop.permute.xlu0 %5248  ;;  %v5154_v3 = vpop.permute.xlu1 %5153 }
 0x732   : > { %5264 = vrot.lane.b32.xlu1 %v5223_v11, %s7412_s1 }
 0x733   : > { %5236 = vrot.lane.b32.xlu0 %v10346_v58, %s7412_s1 }
 0x735   : > { %v5234_v54 = vpop.permute.xlu0 %5233 }
 0x736   : > { %5140 = vrot.lane.b32.xlu1 %v10346_v58, %s11037_s23  ;;  %v5235_v6 = vsel %vm5122_vm8, %v10490_v52, %v5234_v54 }
 0x737   : > { %5132 = vrot.lane.b32.xlu0 %v10424_v60, %s7416_s22 }
 0x73a   : > { %5240 = vrot.lane.b32.xlu1 %v10424_v60, %s7412_s1 }
 0x73b   : > { %5286 = vrot.lane.b32.xlu0 %v10594_v31, %s7412_s1 }
 0x73e   : > { %5130 = vrot.lane.b32.xlu1 %v10364_v28, %s7416_s22  ;;  %v5344_v28 = vld [vmem:[%s10934_s6 + $0x10] sm:$0xff] }
 0x73f   : > { %5284 = vrot.lane.b32.xlu0 %v10616_v47, %s7412_s1 }
 0x742   : > { %5128 = vrot.lane.b32.xlu1 %v10346_v58, %s7416_s22  ;;  %v5343_v58 = vld [vmem:[%s10934_s6 + $0x8] sm:$0xff]  ;;  %s7417_s22 = smov 117  }
 0x743   : > { %5347 = vperm.xlu0 %6884, %v5342_v13  }
 0x746   : > { %5288 = vrot.lane.b32.xlu1 %v5235_v6, %s7412_s1  ;;  %s11101_s1 = sld [smem:[#allocation14_spill]] }
 0x747   : > { %5620 = vperm.xlu0 %6884, %v5615_v40  }
 0x74a   : > { %5357 = vperm.xlu1 %6885, %v5344_v28  }
 0x74b   : > { %5630 = vperm.xlu0 %6884, %v5617_v8  }
 0x74e   : > { %5352 = vperm.xlu1 %6885, %v5343_v58  }
 0x752   : > { %5625 = vperm.xlu1 %6885, %v5616_v30  }
 0x779   : > { %v5275_v7 = vpop.permute.xlu0 %5274 }
 0x77a   : > { %v5303_v18 = vsel %vm5290_vm5, %v10474_v63, %v5275_v7 }
 0x77d   : > { %v5269_v12 = vpop.permute.xlu0 %5268 }
 0x77e   : > { %v5301_v19 = vsel %vm5290_vm5, %v10478_v41, %v5269_v12 }
 0x781   : > { %v5263_v38 = vpop.permute.xlu0 %5262 }
 0x782   : > { %v5299_v11 = vsel %vm5290_vm5, %v10550_v20, %v5263_v38 }
 0x784   : > { %v10643_v25 = vpop.permute.xlu1 %5258 }
 0x785   : > { %v5257_v59 = vpop.permute.xlu0 %5256 }
 0x786   : > { %v5298_v13 = vsel %vm5290_vm5, %v5257_v59, %v10643_v25  ;;  %v5297_v40 = vsel %vm5290_vm5, %v10568_v45, %v5257_v59 }
 0x788   : > { %v10645_v53 = vpop.permute.xlu1 %5252 }
 0x789   : > { %v5251_v34 = vpop.permute.xlu0 %5250 }
 0x78a   : > { %v5296_v28 = vsel %vm5290_vm5, %v5251_v34, %v10645_v53  ;;  %v5295_v8 = vsel %vm5290_vm5, %v10608_v24, %v5251_v34 }
 0x78c   : > { %v5281_v22 = vpop.permute.xlu1 %5280 }
 0x78d   : > { %v10647_v29 = vpop.permute.xlu0 %5282  ;;  %v5305_v15 = vsel %vm5290_vm5, %v10480_v39, %v5281_v22 }
 0x78e   : > { %v5306_v4 = vsel %vm5290_vm5, %v5281_v22, %v10647_v29 }
 0x78f   : > { %5450 = vmatprep.subr.bf16.mxu0 %v5306_v4 }
 0x790   : > { %v5152_v23 = vpop.permute.xlu1 %5151  ;;  %5451 = vmatpush1.bf16.msra.mxu0 %v5305_v15  ;;  %v7336_v15 = vld [vmem:[%s10933_s5] ss:$16 sps:$4 sm:$0xff]  }
 0x791   : > { %v10653_v49 = vpop.permute.xlu0 %5155  ;;  %v5158_v43 = vsel %vm5157_vm9, %v5152_v23, %v5154_v3  ;;  %v5340_v23 = vld [vmem:[%s10933_s5 + $0x20] sm:$0xff] }
 0x792   : > { %v5159_v10 = vsel %vm5157_vm9, %v5154_v3, %v10653_v49 }
 0x793   : > { %5423 = vmatprep.subr.bf16.mxu1 %v5159_v10 }
 0x794   : > { %v10656_v9 = vpop.permute.xlu1 %5246  ;;  %5424 = vmatpush2.bf16.msra.mxu1 %v5158_v43  ;;  %v5341_v43 = vld [vmem:[%s10933_s5 + $0x28] sm:$0xff] }
 0x795   : > { %v5245_v27 = vpop.permute.xlu0 %5244 }
 0x796   : > { %v5294_v58 = vsel %vm5290_vm5, %v5245_v27, %v10656_v9 }
 0x798   : > { %v5143_v0 = vpop.permute.xlu1 %5142 }
 0x799   : > { %v5243_v17 = vpop.permute.xlu0 %5242 }
 0x79c   : > { %v10658_v33 = vpop.permute.xlu1 %5276 }
 0x79d   : > { %v10660_v21 = vpop.permute.xlu0 %5144  ;;  %v5304_v39 = vsel %vm5290_vm5, %v5275_v7, %v10658_v33 }
 0x79e   : > { %5452 = vmatprep.subr.bf16.mxu0 %v5304_v39  ;;  %v5147_v61 = vsel %vm11097_vm11, %v5143_v0, %v10660_v21 }
 0x79f   : > { %5425 = vmatprep.subr.bf16.mxu1 %v5147_v61  ;;  %5453 = vmatpush1.bf16.msra.mxu0 %v5303_v18 }
 0x7a0   : > { %v10668_v55 = vpop.permute.xlu1 %5270 }
 0x7a1   : > { %v5239_v48 = vpop.permute.xlu0 %5238  ;;  %v5302_v50 = vsel %vm5290_vm5, %v5269_v12, %v10668_v55  ;;  %v5293_v12 = vsel %vm5290_vm5, %v5243_v17, %v5245_v27  ;;  %v6681_v27 = vcombine.high %v5340_v23, %v5340_v23  ;;  %v6682_v17 = vcombine.low %v5341_v43, %v5341_v43 }
 0x7a2   : > { %5454 = vmatprep.subr.bf16.mxu0 %v5302_v50 }
 0x7a3   : > { %5455 = vmatpush1.bf16.msra.mxu0 %v5301_v19 }
 0x7a4   : > { %v10674_v16 = vpop.permute.xlu1 %5264 }
 0x7a5   : > { %v5237_v63 = vpop.permute.xlu0 %5236  ;;  %v5300_v26 = vsel %vm5290_vm5, %v5263_v38, %v10674_v16 }
 0x7a6   : > { %5456 = vmatprep.subr.bf16.mxu0 %v5300_v26  ;;  %v5291_v59 = vsel %vm5290_vm5, %v5237_v63, %v5239_v48 }
 0x7a7   : > { %5457 = vmatpush1.bf16.msra.mxu0 %v5299_v11 }
 0x7a8   : > { %v5141_v54 = vpop.permute.xlu1 %5140  ;;  %5458 = vmatprep.subr.bf16.mxu0 %v5298_v13 }
 0x7a9   : > { %v5146_v41 = vsel %vm11098_vm10, %v5141_v54, %v5143_v0  ;;  %v10685_v6 = vpop.permute.xlu0 %5132  ;;  %v6683_v0 = vcombine.high %v5341_v43, %v5341_v43 }
 0x7aa   : > { %5426 = vmatpush2.bf16.msra.mxu1 %v5146_v41 }
 0x7ab   : > { %5459 = vmatpush1.bf16.msra.mxu0 %v5297_v40 }
 0x7ac   : > { %v10689_v20 = vpop.permute.xlu1 %5240  ;;  %5460 = vmatprep.subr.bf16.mxu0 %v5296_v28 }
 0x7ad   : > { %v5287_v45 = vpop.permute.xlu0 %5286  ;;  %v5292_v3 = vsel %vm5290_vm5, %v5239_v48, %v10689_v20 }
 0x7af   : > { %5461 = vmatpush1.bf16.msra.mxu0 %v5295_v8 }
 0x7b0   : > { %v5131_v30 = vpop.permute.xlu1 %5130  ;;  %5462 = vmatprep.subr.bf16.mxu0 %v5294_v58 }
 0x7b1   : > { %v5136_v7 = vsel %vm5134_vm12, %v5131_v30, %v10685_v6  ;;  %v5285_v34 = vpop.permute.xlu0 %5284 }
 0x7b2   : > { %5427 = vmatprep.subr.bf16.mxu1 %v5136_v7  ;;  %v5307_v10 = vsel %vm5290_vm5, %v5285_v34, %v5287_v45  ;;  %v7349_v7 = vld [vmem:[%s10942_s14 + $0x38] sm:$0xff]  }
 0x7b3   : > { %5463 = vmatpush1.bf16.msra.mxu0 %v5293_v12  ;;  %v7350_v12 = vld [vmem:[%s10942_s14 + $0x70] sm:$0xff]  }
 0x7b4   : > { %v5129_v38 = vpop.permute.xlu1 %5128  ;;  %5464 = vmatprep.subr.bf16.mxu0 %v5292_v3  ;;  %v7351_v3 = vld [vmem:[%s10942_s14 + $0x30] sm:$0xff]  }
 0x7b5   : > { %v5135_v24 = vsel %vm5134_vm12, %v5129_v38, %v5131_v30  ;;  %v7348_v30 = vld [vmem:[%s10942_s14 + $0x78] sm:$0xff]   ;;  %v7352_v38 = vld [vmem:[%s10942_s14 + $0x68] sm:$0xff]  }
 0x7b6   : > { %5428 = vmatpush2.bf16.msra.mxu1 %v5135_v24  ;;  %v7347_v24 = vld [vmem:[%s10935_s7 + $0x8] ss:$0 sps:$4 sm:$0xff]  }
 0x7b7   : > { %5429 = vmatprep.subr.bf16.mxu1 %v10594_v31  ;;  %5465 = vmatpush1.bf16.msra.mxu0 %v5291_v59  ;;  %v7341_v31 = vld [vmem:[%s10933_s5 + $0x8] ss:$16 sps:$4 sm:$0xff]  }
 0x7b8   : > { %v5289_v22 = vpop.permute.xlu1 %5288  ;;  %v7353_v59 = vld [vmem:[%s10942_s14 + $0x28] sm:$0xff]  }
 0x7b9   : > { %v5308_v4 = vsel %vm5290_vm5, %v5287_v45, %v5289_v22 }
 0x7ba   : > { %5430 = vmatpush2.bf16.msra.mxu1 %v10616_v47  ;;  %5480 = vmatprep.subr.bf16.mxu0 %v5308_v4  ;;  %v6680_v47 = vcombine.low %v5340_v23, %v5340_v23  ;;  %v7355_v23 = vld [vmem:[%s10942_s14 + $0x20] sm:$0xff]  }
 0x7bb   : > { %5481 = vmatpush2.bf16.msra.mxu0 %v5307_v10  ;;  %5549 = vmatprep.subr.bf16.mxu1 %v7400_v57 }
 0x7bc   : > { %6732 = vmatprep.subr.bf16.mxu0 %v10532_v14 }
 0x7bd   : > { %5432 = vmatmul.mubr.bf16.vlgmr.msra.gmra.mxu1 %v7336_v15 }
 0x7be   : > { %5483 = vmatmul.mubr.bf16.vlgmr.msra.gmra.mxu0 %v7341_v31  ;;  %5550 = vmatpush1.bf16.msra.mxu1 %v10647_v29 }
 0x7bf   : > { %6733 = vmatpush3.bf16.msra.mxu0 %v10484_v36  ;;  %5551 = vmatprep.subr.bf16.mxu1 %v7400_v57 }
 0x7c0   : > { %6734 = vmatprep.subr.bf16.mxu0 %v10541_v5  ;;  %5441 = vmatprep.mubr.bf16.mxu1 %v6681_v27 }
 0x7c1   : > { %6685 = vmatprep.mubr.msk.bf16.mxu0 %vm5392_vm4, %v6683_v0 }
 0x7c2   : > { %5552 = vmatpush1.bf16.msra.mxu1 %v10658_v33 }
 0x7c3   : > { %6735 = vmatpush3.bf16.msra.mxu0 %v10492_v1  ;;  %5553 = vmatprep.subr.bf16.mxu1 %v7400_v57 }
 0x7c4   : > { %6736 = vmatprep.subr.bf16.mxu0 %v10559_v2 }
 0x7c5   : > { %5442 = vmatmul.mubr.bf16.gmra.mxu1 %v6680_v47  ;;  %v10759_v36 = vpop.permute.xlu1 %5357 }
 0x7c6   : > { %5554 = vmatpush1.bf16.msra.mxu1 %v10668_v55  ;;  %5493 = vmatmul.mubr.bf16.gmra.mxu0 %v6682_v17 }
 0x7c7   : > { %6737 = vmatpush3.bf16.msra.mxu0 %v10501_v44  ;;  %5555 = vmatprep.subr.bf16.mxu1 %v7400_v57 }
 0x7c8   : > { %6738 = vmatprep.subr.bf16.mxu0 %v10575_v56  ;;  %5533 = vmatprep.mubr.bf16.mxu0 %v10599_v62  ;;  %v10764_v56 = vpop.permute.xlu0 %5347 }
 0x7c9   : > { %6686 = vmatprep.mubr.msk.bf16.mxu1 %vm5392_vm4, %v10606_v51 }
 0x7ca   : > { %5556 = vmatpush1.bf16.msra.mxu1 %v10674_v16 }
 0x7cb   : > { %6739 = vmatpush3.bf16.msra.mxu0 %v10499_v32  ;;  %5557 = vmatprep.subr.bf16.mxu1 %v7400_v57 }
 0x7cc   : > { %6740 = vmatprep.subr.bf16.mxu0 %v10653_v49 }
 0x7ce   : > { %5558 = vmatpush1.bf16.msra.mxu1 %v10643_v25 }
 0x7cf   : > { %6741 = vmatpush3.bf16.msra.mxu0 %v10516_v46  ;;  %5559 = vmatprep.subr.bf16.mxu1 %v7400_v57 }
 0x7d0   : > { %6742 = vmatprep.subr.bf16.mxu0 %v10660_v21 }
 0x7d2   : > { %5560 = vmatpush1.bf16.msra.mxu1 %v10645_v53 }
 0x7d3   : > { %6743 = vmatpush3.bf16.msra.mxu0 %v10482_v42  ;;  %5561 = vmatprep.subr.bf16.mxu1 %v7400_v57  ;;  %v7346_v42 = vld [vmem:[%s10935_s7] sm:$0xff]  }
 0x7d4   : > { %6744 = vmatprep.subr.bf16.mxu0 %v10685_v6 }
 0x7d6   : > { %5562 = vmatpush1.bf16.msra.mxu1 %v10656_v9 }
 0x7d7   : > { %6745 = vmatpush3.bf16.msra.mxu0 %v10525_v37  ;;  %5563 = vmatprep.subr.bf16.mxu1 %v7400_v57  ;;  %v10761_v37 = vpop.permute.xlu1 %5352 }
 0x7d8   : > { %6746 = vmatprep.subr.bf16.mxu0 %v10490_v52 }
 0x7da   : > { %5564 = vmatpush1.bf16.msra.mxu1 %v10689_v20 }
 0x7db   : > { %6747 = vmatpush3.bf16.msra.mxu0 %v10424_v60  ;;  %5579 = vmatprep.subr.bf16.mxu1 %v7400_v57 }
 0x7de   : > { %5534 = vmatmul.mubr.bf16.vlgmr.msra.gmra.mxu0 %v7336_v15  ;;  %5580 = vmatpush2.bf16.msra.mxu1 %v5289_v22  ;;  %v7354_v22 = vld [vmem:[%s10942_s14 + $0x60] sm:$0xff]  }
 0x7df   : > { %5541 = vmatprep.mubr.bf16.mxu0 %v6681_v27 }
 0x7e1   : > { %5582 = vmatmul.mubr.bf16.vlgmr.msra.gmra.mxu1 %v7341_v31  ;;  %v7356_v31 = vld [vmem:[%s10942_s14 + $0x58] sm:$0xff]  }
 0x7e2   : > { %6687 = vmatprep.mubr.msk.bf16.mxu1 %vm5392_vm4, %v6683_v0 }
 0x7e6   : > { %5542 = vmatmul.mubr.bf16.gmra.mxu0 %v6680_v47 }
 0x7e7   : > { %6813 = vmatprep.mubr.msk.bf16.mxu0 %vm2007_vm13, %v7346_v42 }
 0x7e9   : > { %5590 = vmatmul.mubr.bf16.gmra.mxu1 %v6682_v17 }
 0x7ea   : > { %5688 = vmatprep.mubr.bf16.mxu1 %v7400_v57 }
 0x87d   : > { %v5433_v60 = vpop.f32.mrf.mxu1 }
 0x87e   : > { %v5484_v52 = vpop.f32.mrf.mxu0  ;;  %v5434_v18 = vadd.f32 %v5433_v60, %v10764_v56 }
 0x87f   : > { %v5435_v1 = vpop.f32.mrf.mxu1 }
 0x880   : > { %v5486_v32 = vpop.f32.mrf.mxu0  ;;  %v5436_v51 = vadd.f32 %v5435_v1, %v10764_v56  ;;  %v5485_v41 = vadd.f32 %v5484_v52, %v5434_v18 }
 0x881   : > { %v5437_v44 = vpop.f32.mrf.mxu1 }
 0x882   : > { %v5488_v46 = vpop.f32.mrf.mxu0  ;;  %v5438_v29 = vadd.f32 %v5437_v44, %v10761_v37  ;;  %v5487_v55 = vadd.f32 %v5486_v32, %v5436_v51  ;;  %v5597_v58 = vmax.f32 %v5485_v41, 0.0  ;;  %v5621_v41 = vpop.permute.xlu0 %5620 }
 0x883   : > { %v5439_v14 = vpop.f32.mrf.mxu1 }
 0x884   : > { %v5440_v5 = vadd.f32 %v5439_v14, %v10761_v37  ;;  %v5490_v2 = vpop.f32.mrf.mxu0  ;;  %v5489_v16 = vadd.f32 %v5488_v46, %v5438_v29  ;;  %v5598_v40 = vmax.f32 %v5487_v55, 0.0  ;;  %v7360_v55 = vld [vmem:[%s10942_s14 + $0x48] sm:$0xff]  }
 0x885   : > { %v5443_v62 = vpop.f32.mrf.mxu1 }
 0x886   : > { %v5444_v25 = vadd.f32 %v5443_v62, %v10759_v36  ;;  %v5494_v53 = vpop.f32.mrf.mxu0  ;;  %v5491_v9 = vadd.f32 %v5490_v2, %v5440_v5  ;;  %v5600_v28 = vmax.f32 %v5489_v16, 0.0  ;;  %v7364_v16 = vld [vmem:[%s10942_s14 + $0x98] sm:$0xff]  }
 0x887   : > { %v5445_v49 = vpop.f32.mrf.mxu1 }
 0x888   : > { %v5446_v33 = vadd.f32 %v5445_v49, %v10759_v36  ;;  %v5495_v21 = vadd.f32 %v5494_v53, %v5444_v25  ;;  %v5496_v39 = vpop.f32.mrf.mxu0  ;;  %v5601_v26 = vmax.f32 %v5491_v9, 0.0  ;;  %v5606_v45 = vpack.c.bf16 %v5600_v28, %v5597_v58 }
 0x889   : > { %v5447_v61 = vpop.f32.mrf.mxu1 }
 0x88a   : > { %v5603_v48 = vmax.f32 %v5495_v21, 0.0  ;;  %v5497_v50 = vadd.f32 %v5496_v39, %v5446_v33  ;;  %v5498_v19 = vpop.f32.mrf.mxu0  ;;  %v5607_v20 = vpack.c.bf16 %v5601_v26, %v5598_v40  ;;  %v7359_v61 = vld [vmem:[%s10942_s14 + $0x10] sm:$0xff]   ;;  %v7366_v26 = vld [vmem:[%s10942_s14 + $0x88] sm:$0xff]   ;;  %v5626_v40 = vpop.permute.xlu1 %5625 }
 0x88b   : > { %v5448_v63 = vpop.f32.mrf.mxu1  ;;  %v7363_v19 = vld [vmem:[%s10942_s14] sm:$0xff]  }
 0x88c   : > { %v5609_v11 = vpack.c.bf16 %v5603_v48, %v5603_v48  ;;  %v5604_v13 = vmax.f32 %v5497_v50, 0.0  ;;  %v5499_v54 = vpop.f32.mrf.mxu0  ;;  %v7361_v48 = vld [vmem:[%s10942_s14 + $0x8] sm:$0xff]   ;;  %v7362_v50 = vld [vmem:[%s10942_s14 + $0x40] sm:$0xff]   ;;  %v7365_v63 = vld [vmem:[%s10942_s14 + $0x90] sm:$0xff]  }
 0x88e   : > { %v5610_v6 = vpack.c.bf16 %v5604_v13, %v5604_v13  ;;  %v5648_v8 = vsel %vm1031_vm3, %v5609_v11, 0  ;;  %v7367_v11 = vld [vmem:[%s10942_s14 + $0x80] sm:$0xff]  }
 0x890   : > { %6690 = vmatprep.subr.msk.bf16.mxu1 %vm1031_vm3, %v5610_v6 }
 0x891   : > { %5669 = vmatpush1.bf16.msra.mxu1 %v5648_v8 }
 0x892   : > { %5670 = vmatprep.subr.bf16.mxu1 %v5607_v20 }
 0x895   : > { %5671 = vmatpush1.bf16.msra.mxu1 %v5606_v45 }
 0x896   : > { %6764 = vmatprep.subr.bf16.mxu1 %v7348_v30 }
 0x898   : > { %6691 = vmatmul.mubr.msk.bf16.vlgmr.msra.gmra.mxu1 %vm2007_vm13, %v7346_v42  ;;  %v7357_v42 = vld [vmem:[%s10942_s14 + $0x18] sm:$0xff]  }
 0x899   : > { %5698 = vmatprep.mubr.bf16.mxu1 %v7400_v57  ;;  %6765 = vmatpush3.bf16.msra.mxu1 %v7349_v7 }
 0x89a   : > { %6766 = vmatprep.subr.bf16.mxu1 %v7350_v12 }
 0x89d   : > { %6767 = vmatpush3.bf16.msra.mxu1 %v7351_v3 }
 0x89e   : > { %v6748_v34 = vpop.f32.mrf.mxu0  ;;  %6768 = vmatprep.subr.bf16.mxu1 %v7352_v38  ;;  %v5631_v38 = vpop.permute.xlu0 %5630 }
 0x8a0   : > { %v6749_v4 = vpop.f32.mrf.mxu0  ;;  %6692 = vmatmul.mubr.msk.bf16.gmra.mxu1 %vm2007_vm13, %v7347_v24 }
 0x8a1   : > { %v5583_v15 = vpop.f32.mrf.mxu1  ;;  %6769 = vmatpush3.bf16.msra.mxu1 %v7353_v59  ;;  %v6750_v0 = vadd.f32 %v6749_v4, %v6748_v34 }
 0x8a2   : > { %v6751_v10 = vpop.f32.mrf.mxu0  ;;  %6770 = vmatprep.subr.bf16.mxu1 %v7354_v22 }
 0x8a3   : > { %v5585_v43 = vpop.f32.mrf.mxu1  ;;  %v5536_v44 = vadd.f32 %v6750_v0, %v10764_v56 }
 0x8a4   : > { %v6752_v27 = vpop.f32.mrf.mxu0 }
 0x8a5   : > { %v6753_v47 = vadd.f32 %v6752_v27, %v6751_v10  ;;  %v5586_v17 = vpop.f32.mrf.mxu1  ;;  %6771 = vmatpush3.bf16.msra.mxu1 %v7355_v23  ;;  %v5584_v53 = vadd.f32 %v5583_v15, %v5536_v44 }
 0x8a6   : > { %v6754_v60 = vpop.f32.mrf.mxu0  ;;  %6772 = vmatprep.subr.bf16.mxu1 %v7356_v31 }
 0x8a7   : > { %v5539_v52 = vadd.f32 %v6753_v47, %v10761_v37  ;;  %v5588_v1 = vpop.f32.mrf.mxu1  ;;  %v5599_v37 = vmax.f32 %v5584_v53, 0.0 }
 0x8a8   : > { %v6755_v32 = vpop.f32.mrf.mxu0 }
 0x8a9   : > { %v6756_v46 = vadd.f32 %v6755_v32, %v6754_v60  ;;  %v5591_v14 = vpop.f32.mrf.mxu1  ;;  %6773 = vmatpush3.bf16.msra.mxu1 %v7357_v42  ;;  %v5587_v2 = vadd.f32 %v5586_v17, %v5539_v52 }
 0x8aa   : > { %v6757_v5 = vpop.f32.mrf.mxu0 }
 0x8ab   : > { %v5544_v62 = vadd.f32 %v6756_v46, %v10759_v36  ;;  %v5593_v51 = vpop.f32.mrf.mxu1  ;;  %v5602_v9 = vmax.f32 %v5587_v2, 0.0  ;;  %v7358_v36 = vld [vmem:[%s10942_s14 + $0x50] sm:$0xff]  }
 0x8ac   : > { %v6758_v25 = vpop.f32.mrf.mxu0  ;;  %6774 = vmatprep.subr.bf16.mxu1 %v7358_v36 }
 0x8ad   : > { %v5592_v29 = vadd.f32 %v5591_v14, %v5544_v62  ;;  %v5594_v49 = vpop.f32.mrf.mxu1  ;;  %v5608_v18 = vpack.c.bf16 %v5602_v9, %v5599_v37  ;;  %6775 = vmatpush3.bf16.msra.mxu1 %v7359_v61 }
 0x8ae   : > { %6776 = vmatprep.subr.bf16.mxu1 %v7360_v55 }
 0x8af   : > { %v5605_v33 = vmax.f32 %v5592_v29, 0.0  ;;  %v5595_v21 = vpop.f32.mrf.mxu1 }
 0x8b1   : > { %v5611_v39 = vpack.c.bf16 %v5605_v33, %v5605_v33  ;;  %6777 = vmatpush3.bf16.msra.mxu1 %v7361_v48 }
 0x8b2   : > { %6778 = vmatprep.subr.bf16.mxu1 %v7362_v50 }
 0x8b3   : > { %6837 = vmatprep.subr.msk.bf16.mxu0 %vm1031_vm3, %v5611_v39  ;;  %v5654_v56 = vsel %vm1031_vm3, %v5611_v39, 0 }
 0x8b4   : > { %6810 = vmatpush3.bf16.msra.mxu0 %v5654_v56 }
 0x8b5   : > { %6811 = vmatprep.subr.bf16.mxu0 %v5608_v18  ;;  %6779 = vmatpush3.bf16.msra.mxu1 %v7363_v19 }
 0x8b6   : > { %6829 = vmatprep.subr.bf16.mxu1 %v7401_v35 }
 0x8b8   : > { %6812 = vmatpush3.bf16.msra.mxu0 %v5608_v18 }
 0x8b9   : > { %6817 = vmatprep.subr.bf16.mxu0 %v7364_v16 }
 0x8bb   : > { %6814 = vmatmul.mubr.msk.bf16.vlgmr.msra.gmra.mxu0 %vm2007_vm13, %v7347_v24 }
 0x8bc   : > { %6818 = vmatpush3.bf16.msra.mxu0 %v7364_v16 }
 0x8bd   : > { %6819 = vmatprep.subr.bf16.mxu0 %v7365_v63 }
 0x8c0   : > { %6820 = vmatpush3.bf16.msra.mxu0 %v7365_v63 }
 0x8c1   : > { %6821 = vmatprep.subr.bf16.mxu0 %v7366_v26 }
 0x8c4   : > { %6822 = vmatpush3.bf16.msra.mxu0 %v7366_v26 }
 0x8c5   : > { %6823 = vmatprep.subr.bf16.mxu0 %v7367_v11 }
 0x8c8   : > { %6824 = vmatpush3.bf16.msra.mxu0 %v7367_v11 }
 0x8c9   : > { %6143 = vmatprep.subr.bf16.mxu0 %v7400_v57 }
 0x958   : > { %v5690_v13 = vpop.f32.mrf.mxu1 }
 0x959   : > { %v5691_v8 = vadd.f32 %v5690_v13, %v5621_v41  ;;  %v6102_v13 = vld [vmem:[%s10938_s10 + $0x10] sm:$0xff] }
 0x95a   : > { %v5692_v54 = vpop.f32.mrf.mxu1 }
 0x95b   : > { %v5693_v28 = vadd.f32 %v5692_v54, %v5621_v41  ;;  %v5755_v24 = vmax.f32 %v5691_v8, 0.0  ;;  %v6101_v54 = vld [vmem:[%s10938_s10 + $0x8] sm:$0xff] }
 0x95c   : > { %v5694_v6 = vpop.f32.mrf.mxu1 }
 0x95d   : > { %v5695_v20 = vadd.f32 %v5694_v6, %v5626_v40  ;;  %v5756_v12 = vmax.f32 %v5693_v28, 0.0  ;;  %v6198_v6 = vld [vmem:[%s10940_s12] sm:$0xff] }
 0x95e   : > { %v5696_v58 = vpop.f32.mrf.mxu1  ;;  %v7368_v28 = vld [vmem:[%s10937_s9 + $0x4] ss:$8 sps:$4 sm:$0xff]  }
 0x95f   : > { %v5697_v30 = vadd.f32 %v5696_v58, %v5626_v40  ;;  %v5758_v45 = vmax.f32 %v5695_v20, 0.0 }
 0x960   : > { %v5700_v7 = vpop.f32.mrf.mxu1 }
 0x961   : > { %v5759_v3 = vmax.f32 %v5697_v30, 0.0  ;;  %v5764_v4 = vpack.c.bf16 %v5758_v45, %v5755_v24  ;;  %v5701_v15 = vadd.f32 %v5700_v7, %v5631_v38 }
 0x962   : > { %v5702_v59 = vpop.f32.mrf.mxu1 }
 0x963   : > { %v5765_v34 = vpack.c.bf16 %v5759_v3, %v5756_v12  ;;  %v5703_v22 = vadd.f32 %v5702_v59, %v5631_v38  ;;  %v5761_v27 = vmax.f32 %v5701_v15, 0.0 }
 0x964   : > { %v5704_v23 = vpop.f32.mrf.mxu1 }
 0x965   : > { %v5762_v10 = vmax.f32 %v5703_v22, 0.0  ;;  %5969 = vmatprep.mubr.bf16.mxu1 %v5765_v34  ;;  %v5767_v0 = vpack.c.bf16 %v5761_v27, %v5761_v27 }
 0x966   : > { %5970 = vmatmul.mubr.bf16.vlgmr.msra.gmra.mxu1 %v5764_v4  ;;  %v5705_v31 = vpop.f32.mrf.mxu1 }
 0x967   : > { %v5768_v43 = vpack.c.bf16 %v5762_v10, %v5762_v10 }
 0x969   : > { %5977 = vmatprep.mubr.bf16.mxu1 %v5768_v43 }
 0x96e   : > { %5978 = vmatmul.mubr.bf16.gmra.mxu1 %v5767_v0  ;;  %v6099_v0 = vld [vmem:[%s10937_s9 + $0x10] sm:$0xff] }
 0x96f   : > { %6833 = vmatprep.mubr.msk.bf16.mxu1 %vm7402_vm14, %v7401_v35  ;;  %vm11099_vm14 = vmmov %vm11098_vm10 }
 0x97b   : > { %v6815_v47 = vpop.f32.mrf.mxu0 }
 0x97c   : > { %v5750_v42 = vadd.f32 %v6815_v47, %v5631_v38 }
 0x97d   : > { %v5741_v17 = vpop.f32.mrf.mxu0 }
 0x97e   : > { %v5742_v52 = vadd.f32 %v5741_v17, %v5621_v41  ;;  %v5763_v44 = vmax.f32 %v5750_v42, 0.0  ;;  %v6100_v41 = vld [vmem:[%s10938_s10] sm:$0xff]  ;;  %v6720_v42 = vcombine.high %v6099_v0, %v6099_v0 }
 0x97f   : > { %v6816_v60 = vpop.f32.mrf.mxu0  ;;  %v7370_v17 = vld [vmem:[%s10937_s9] ss:$8 sps:$4 sm:$0xff]  }
 0x980   : > { %v5757_v46 = vmax.f32 %v5742_v52, 0.0  ;;  %v5769_v2 = vpack.c.bf16 %v5763_v44, %v5763_v44  ;;  %v6719_v60 = vcombine.low %v6099_v0, %v6099_v0 }
 0x981   : > { %v5744_v1 = vpop.f32.mrf.mxu0 }
 0x982   : > { %v5745_v32 = vadd.f32 %v5744_v1, %v5626_v40  ;;  %v6199_v40 = vld [vmem:[%s10940_s12 + $0x8] sm:$0x3] }
 0x984   : > { %v5760_v14 = vmax.f32 %v5745_v32, 0.0 }
 0x986   : > { %v5766_v5 = vpack.c.bf16 %v5760_v14, %v5757_v46 }
 0x988   : > { %6825 = vmatprep.mubr.msk.bf16.mxu0 %vm5930_vm0, %v5766_v5 }
 0x989   : > { %6826 = vmatmul.mubr.msk.bf16.vlgmr.msra.gmra.mxu0 %vm5930_vm0, %v5769_v2 }
 0x98a   : > { %6721 = vmatprep.mubr.msk.bf16.mxu0 %vm11099_vm14, %v7368_v28 }
 0xa26   : > { %v6780_v62 = vpop.f32.mrf.mxu1 }
 0xa28   : > { %v6781_v51 = vpop.f32.mrf.mxu1 }
 0xa29   : > { %v6782_v61 = vadd.f32 %v6781_v51, %v6780_v62 }
 0xa2a   : > { %v6783_v25 = vpop.f32.mrf.mxu1 }
 0xa2c   : > { %v6784_v53 = vpop.f32.mrf.mxu1 }
 0xa2d   : > { %v6785_v55 = vadd.f32 %v6784_v53, %v6783_v25 }
 0xa2e   : > { %v6786_v29 = vpop.f32.mrf.mxu1 }
 0xa30   : > { %v6787_v49 = vpop.f32.mrf.mxu1 }
 0xa31   : > { %v6788_v21 = vadd.f32 %v6787_v49, %v6786_v29 }
 0xa32   : > { %v6789_v9 = vpop.f32.mrf.mxu1 }
 0xa34   : > { %v6790_v33 = vpop.f32.mrf.mxu1 }
 0xa49   : > { %v6827_v37 = vpop.f32.mrf.mxu0 }
 0xa4a   : > { %v6028_v39 = vadd.f32 %v6827_v37, %v6788_v21 }
 0xa4b   : > { %v6019_v18 = vpop.f32.mrf.mxu0 }
 0xa4c   : > { %v10849_v56 = vpack.c.bf16 %v6028_v39, %v6028_v39  ;;  %v6020_v50 = vadd.f32 %v6782_v61, %v6019_v18  ;;  %v7373_v18 = vld [vmem:[%s10939_s11] sm:$0x1f]  }
 0xa4d   : > { %v6828_v36 = vpop.f32.mrf.mxu0 }
 0xa4e   : > { %6058 = vrot.lane.b32.xlu1 %v10849_v56, %s7417_s22  ;;  %v6039_v26 = vrot.slane %v10849_v56, 4 }
 0xa4f   : > { %v6022_v48 = vpop.f32.mrf.mxu0 }
 0xa50   : > { %v6023_v19 = vadd.f32 %v6785_v55, %v6022_v48  ;;  %v6725_v55 = vld [vmem:[%s11101_s1] ss:$0 sm:$0xff] }
 0xa52   : > { %v6033_v16 = vpack.c.bf16 %v6023_v19, %v6020_v50 }
 0xa54   : > { %6056 = vrot.lane.b32.xlu1 %v6033_v16, %s7417_s22  ;;  %v6038_v63 = vrot.slane %v6033_v16, 4 }
 0xa56   : > { %6061 = vrot.lane.b32.xlu0 %v6038_v63, %s7418_s2  ;;  %v6040_v11 = vsel %vm1031_vm3, %v6038_v63, %v6039_v26 }
 0xa58   : > { %6048 = vrot.lane.b32.xlu1 %v10849_v56, %s11021_s28 }
 0xa5a   : > { %6053 = vrot.lane.b32.xlu0 %v6040_v11, %s7419_s3 }
 0xa5c   : > { %6046 = vrot.lane.b32.xlu1 %v6033_v16, %s11021_s28 }
 0xa5e   : > { %6051 = vrot.lane.b32.xlu0 %v6038_v63, %s7419_s3 }
 0xa60   : > { %6041 = vrot.lane.b32.xlu1 %v6038_v63, %s11023_s19 }
 0xa62   : > { %6043 = vrot.lane.b32.xlu0 %v6040_v11, %s11023_s19  ;;  %s11102_s19 = sld [smem:[#allocation3_spill]] }
 0xa64   : > { %6076 = vrot.lane.b32.xlu1 %v6033_v16, %s7405_s27 }
 0xa66   : > { %6078 = vrot.lane.b32.xlu0 %v10849_v56, %s7405_s27 }
 0xa68   : > { %6068 = vrot.lane.b32.xlu1 %v10849_v56, %s7408_s26  ;;  %s6728_s28 = sshll.u32 %s11102_s19, 4 }
 0xa69   : > { %s548_s20 = scalar_lea.vmem %s11103_s4, %s6728_s28 }
 0xa6a   : > { %6073 = vrot.lane.b32.xlu0 %v6040_v11, %s7406_s30 }
 0xa6c   : > { %6066 = vrot.lane.b32.xlu1 %v6033_v16, %s7408_s26 }
 0xa6e   : > { %6071 = vrot.lane.b32.xlu0 %v6038_v63, %s7406_s30 }
 0xa70   : > { %6115 = vperm.xlu1 %6885, %v6102_v13  }
 0xa72   : > { %6063 = vrot.lane.b32.xlu0 %v6040_v11, %s7418_s2 }
 0xa74   : > { %6110 = vperm.xlu1 %6885, %v6101_v54  }
 0xa76   : > { %6105 = vperm.xlu0 %6884, %v6100_v41  }
 0xa78   : > { %6207 = vperm.xlu1 %6885, %v6199_v40  }
 0xa7a   : > { %6202 = vperm.xlu0 %6884, %v6198_v6  }
 0xac0   : > { %v6059_v20 = vpop.permute.xlu1 %6058 }
 0xac6   : > { %v6057_v30 = vpop.permute.xlu1 %6056 }
 0xac8   : > { %v6062_v8 = vpop.permute.xlu0 %6061 }
 0xac9   : > { %v6091_v58 = vsel %vm1031_vm3, %v6059_v20, %v6062_v8 }
 0xaca   : > { %6144 = vmatpush1.bf16.msra.mxu0 %v6091_v58  ;;  %v6049_v7 = vpop.permute.xlu1 %6048 }
 0xacb   : > { %6145 = vmatprep.subr.bf16.mxu0 %v7400_v57 }
 0xacc   : > { %v6054_v45 = vpop.permute.xlu0 %6053 }
 0xace   : > { %6146 = vmatpush1.bf16.msra.mxu0 %v6057_v30  ;;  %v6047_v38 = vpop.permute.xlu1 %6046 }
 0xacf   : > { %6147 = vmatprep.subr.bf16.mxu0 %v7400_v57 }
 0xad0   : > { %v6052_v12 = vpop.permute.xlu0 %6051 }
 0xad1   : > { %v6087_v3 = vsel %vm1031_vm3, %v6049_v7, %v6052_v12 }
 0xad2   : > { %6148 = vmatpush1.bf16.msra.mxu0 %v6054_v45  ;;  %v6042_v59 = vpop.permute.xlu1 %6041 }
 0xad3   : > { %6149 = vmatprep.subr.bf16.mxu0 %v7400_v57  ;;  %v6083_v34 = vsel %vm1031_vm3, %v10849_v56, %v6042_v59 }
 0xad4   : > { %v6044_v24 = vpop.permute.xlu0 %6043 }
 0xad6   : > { %6150 = vmatpush1.bf16.msra.mxu0 %v6087_v3  ;;  %v6077_v23 = vpop.permute.xlu1 %6076 }
 0xad7   : > { %6151 = vmatprep.subr.bf16.mxu0 %v7400_v57 }
 0xad8   : > { %v6079_v22 = vpop.permute.xlu0 %6078 }
 0xad9   : > { %v6141_v4 = vsel %vm1031_vm3, %v6079_v22, 0 }
 0xada   : > { %6152 = vmatpush1.bf16.msra.mxu0 %v6047_v38  ;;  %v6069_v31 = vpop.permute.xlu1 %6068 }
 0xadb   : > { %6153 = vmatprep.subr.bf16.mxu0 %v7400_v57 }
 0xadc   : > { %v6074_v15 = vpop.permute.xlu0 %6073 }
 0xade   : > { %6154 = vmatpush1.bf16.msra.mxu0 %v6044_v24  ;;  %v6067_v27 = vpop.permute.xlu1 %6066 }
 0xadf   : > { %6155 = vmatprep.subr.bf16.mxu0 %v7400_v57 }
 0xae0   : > { %v6072_v10 = vpop.permute.xlu0 %6071 }
 0xae1   : > { %v6095_v43 = vsel %vm1031_vm3, %v6069_v31, %v6072_v10 }
 0xae2   : > { %6156 = vmatpush1.bf16.msra.mxu0 %v6083_v34 }
 0xae3   : > { %6157 = vmatprep.subr.bf16.mxu0 %v7400_v57 }
 0xae4   : > { %v6064_v47 = vpop.permute.xlu0 %6063 }
 0xae6   : > { %6158 = vmatpush1.bf16.msra.mxu0 %v6033_v16 }
 0xae7   : > { %6163 = vmatprep.subr.bf16.mxu0 %v7400_v57 }
 0xaea   : > { %6164 = vmatpush2.bf16.msra.mxu0 %v6141_v4 }
 0xaeb   : > { %6165 = vmatprep.subr.bf16.mxu0 %v7400_v57  ;;  %v6116_v32 = vpop.permute.xlu1 %6115 }
 0xaee   : > { %6166 = vmatpush2.bf16.msra.mxu0 %v6077_v23 }
 0xaef   : > { %6167 = vmatprep.subr.bf16.mxu0 %v7400_v57  ;;  %v6111_v14 = vpop.permute.xlu1 %6110 }
 0xaf1   : > { %v6106_v51 = vpop.permute.xlu0 %6105 }
 0xaf2   : > { %6168 = vmatpush2.bf16.msra.mxu0 %v6074_v15 }
 0xaf3   : > { %6169 = vmatprep.subr.bf16.mxu0 %v7400_v57  ;;  %v6208_v19 = vpop.permute.xlu1 %6207 }
 0xaf5   : > { %v6203_v56 = vpop.permute.xlu0 %6202 }
 0xaf6   : > { %6170 = vmatpush2.bf16.msra.mxu0 %v6095_v43 }
 0xaf7   : > { %6171 = vmatprep.subr.bf16.mxu0 %v7400_v57 }
 0xafa   : > { %6172 = vmatpush2.bf16.msra.mxu0 %v6067_v27 }
 0xafb   : > { %6173 = vmatprep.subr.bf16.mxu0 %v7400_v57 }
 0xafe   : > { %6174 = vmatpush2.bf16.msra.mxu0 %v6064_v47 }
 0xb01   : > { %6176 = vmatmul.mubr.bf16.vlgmr.msra.gmra.mxu0 %v7370_v17 }
 0xb02   : > { %6722 = vmatprep.mubr.msk.bf16.mxu0 %vm11100_vm6, %v6720_v42 }
 0xb09   : > { %6184 = vmatmul.mubr.bf16.gmra.mxu0 %v6719_v60 }
 0xbc1   : > { %v6177_v52 = vpop.f32.mrf.mxu0 }
 0xbc2   : > { %v6178_v53 = vadd.f32 %v6177_v52, %v6106_v51 }
 0xbc3   : > { %v6179_v1 = vpop.f32.mrf.mxu0 }
 0xbc4   : > { %v6191_v37 = vmax.f32 %v6178_v53, 0.0 }
 0xbc5   : > { %v6180_v57 = vpop.f32.mrf.mxu0 }
 0xbc6   : > { %v6181_v2 = vadd.f32 %v6180_v57, %v6111_v14 }
 0xbc7   : > { %v6182_v44 = vpop.f32.mrf.mxu0 }
 0xbc8   : > { %v6192_v9 = vmax.f32 %v6181_v2, 0.0 }
 0xbc9   : > { %v6185_v46 = vpop.f32.mrf.mxu0 }
 0xbca   : > { %v6186_v5 = vadd.f32 %v6185_v46, %v6116_v32  ;;  %v6194_v39 = vpack.c.bf16 %v6192_v9, %v6191_v37 }
 0xbcb   : > { %v6187_v62 = vpop.f32.mrf.mxu0 }
 0xbcc   : > { %v6193_v25 = vmax.f32 %v6186_v5, 0.0 }
 0xbcd   : > { %v6188_v29 = vpop.f32.mrf.mxu0 }
 0xbce   : > { %v6195_v49 = vpack.c.bf16 %v6193_v25, %v6193_v25 }
 0xbcf   : > { %v6189_v33 = vpop.f32.mrf.mxu0 }
 0xbd0   : > { %v6219_v21 = vsel %vm1031_vm3, %v6195_v49, 0  ;;  %vm6273_vm3 = vcmask 654336  }
 0xbd1   : > { %6830 = vmatpush3.bf16.msra.mxu1 %v6219_v21 }
 0xbd2   : > { %6831 = vmatprep.subr.bf16.mxu1 %v7401_v35 }
 0xbd5   : > { %6832 = vmatpush3.bf16.msra.mxu1 %v6194_v39 }
 0xbd8   : > { %6834 = vmatmul.mubr.msk.bf16.vlgmr.msra.gmra.mxu1 %vm2007_vm13, %v7373_v18  ;;  %vm6277_vm13 = vcmask 648192  }
 0xc98   : > { %v6255_v36 = vpop.f32.mrf.mxu1 }
 0xc99   : > { %v6256_v61 = vadd.f32 %v6255_v36, %v6203_v56 }
 0xc9a   : > { %v6835_v48 = vpop.f32.mrf.mxu1 }
 0xc9b   : > { %v6262_v50 = vmax.f32 %v6256_v61, 0.0 }
 0xc9c   : > { %v6258_v35 = vpop.f32.mrf.mxu1 }
 0xc9d   : > { %v6271_v16 = vmul.f32 %v6725_v55, %v6262_v50  ;;  %v6259_v63 = vadd.f32 %v6258_v35, %v6208_v19 }
 0xc9e   : > { %v6836_v26 = vpop.f32.mrf.mxu1 }
 0xc9f   : > { %v6263_v11 = vmax.f32 %v6259_v63, 0.0  ;;  %v6274_v13 = vsel %vm6273_vm3, %v6271_v16, 0.0 }
 0xca0   : > { %6275 = vadd.xlane.f32.xlu0 %v6274_v13 }
 0xca1   : > { %v6272_v54 = vmul.f32 %v6725_v55, %v6263_v11 }
 0xca3   : > { %v6278_v41 = vsel %vm6277_vm13, %v6272_v54, 0.0 }
 0xca4   : > { %6279 = vadd.xlane.f32.xlu1 %v6278_v41 }
 0xd29   : > { %v6276_v40 = vpop.xlane.xlu0 %6275 }
 0xd2a   : > { %6282 = vst.msk [vmem:[%s548_s20] sm:$0xff] %vm6281_vm7, %v6276_v40 }
 0xd2d   : > { %v6280_v6 = vpop.xlane.xlu1 %6279 }
 0xd2e   : > { %6284 = vst.msk [vmem:[%s548_s20 + $0x8] sm:$0x3] %vm6283_vm15, %v6280_v6 }
 0xd2f PF: > { %s11104_s26 = sld [smem:[#allocation2_spill]] }
 0xd35   : > { %s27_s24 = sadd.s32 1, %s11104_s26  }
 0xd36   : > { %p24_p4 = scmp.ge.s32.totalorder %s27_s24, 4  }
 0xd38   :  { %26 = sbr.rel (!%p24_p4) target bundleno = 8 (0x8), region = 118 }

</bundles_post_ra>
